<compile_context>
chip_gen: v7x
topology: tpu7x:2x2x1
jax: 0.10.0
libtpu: 0.0.40
codegen_flags: <defaults>
</compile_context>

<pallas_src>
import functools

import jax
import jax.numpy as jnp
from jax.experimental import pallas as pl
from jax.experimental.pallas import tpu as pltpu

EPS = 1e-5

MATMUL_DTYPE = jnp.bfloat16   # MXU inputs (weights + im2col slab); f32 accumulation kept
ACT_DTYPE = jnp.bfloat16      # inter-stage activation storage in HBM (y1, z)


# ---------------------------------------------------------------------------
# hardware / tiling helpers
# ---------------------------------------------------------------------------
def _vmem_capacity_bytes():
    try:
        info = pltpu.get_tpu_info()
        cap = getattr(info, "vmem_capacity_bytes", None)
        if cap:
            return int(cap)
    except Exception:
        pass
    return 64 << 20           # conservative default (v7x per-core VMEM)


def _conv_step_bytes(tr, W, Cin, Cout):
    """Per-grid-step VMEM footprint of a conv stage (f32 upper bound for the blocks)."""
    blk = 2 * ((tr + 2) * W * Cin * 4 + tr * W * Cout * 4 + 2 * Cout * 4)  # double-buffered
    wt = 9 * Cin * Cout * 2 * 2 + 4 * Cin * 4                              # weights + affine
    scratch = (tr + 2) * (W + 2) * Cin * 4 + tr * W * 9 * Cin * 2          # pad + bf16 slab
    return blk + wt + scratch + (4 << 20)


def _pick_row_tile(N, H, W, Cin, Cout, cap):
    divs = [d for d in range(1, H + 1) if H % d == 0]
    cands = [d for d in divs if d % 8 == 0] or [H]
    fitting = [d for d in cands if _conv_step_bytes(d, W, Cin, Cout) <= cap // 2]
    tr = max(fitting) if fitting else min(cands)
    # small batches: shrink the row tile until there are >=4 grid steps so the DMA pipeline
    # has depth and both TensorCores get work
    while N * (H // tr) < 4:
        smaller = [d for d in cands if d < tr]
        if not smaller:
            break
        tr = max(smaller)
    return tr


def _pick_elem_rows(P, WC, cap):
    divs = [d for d in range(1, P + 1) if P % d == 0]
    cands = [d for d in divs if d % 8 == 0] or [P]

    def need(br):
        return 2 * br * WC * (2 + 4 + 4) + 4 * WC * 4 + (2 << 20)

    fitting = [d for d in cands if need(d) <= cap // 2] or [min(cands)]
    target = max(1, (2 << 20) // (WC * 4))            # ~2 MB of f32 output per step
    under = [d for d in fitting if d <= target]
    return max(under) if under else min(fitting)


def _vmem_limit(needed, cap):
    # generation-aware cap: never ask for more than ~90% of physical per-core VMEM
    return int(min(max(needed, 16 << 20), int(cap * 0.9)))


# ---------------------------------------------------------------------------
# kernels
# ---------------------------------------------------------------------------
def _conv3x3_moments_kernel(*refs, pre_bn_relu):
    """3x3 conv (stride 1, pad 1) on a TR-row tile of one image + per-tile BN moments.

    refs (pre_bn_relu=True):
      x_ref    (1, TR, W, Cin)   center rows of the (raw, pre-BN) input activation
      halo_ref (1, 2,  W, Cin)   row above / row below the tile (zeros at image edges)
      w_ref    (9*Cin, Cout)     tap-major im2col weight matrix, bf16
      scale_ref, shift_ref (1, Cin)   previous-BN affine (folded into this stage)
      y_ref    (1, TR, W, Cout)  raw conv output (pre-BN), bf16
      mom_ref  (1, 1, 2, Cout)   per-tile [sum, sum_sq] of the conv output (f32)
      pad_ref  (TR+2, W+2, Cin)  zero-border scratch (f32)
      slab_ref (TR, W, 9*Cin)    im2col scratch (bf16)
    """
    if pre_bn_relu:
        (x_ref, halo_ref, w_ref, scale_ref, shift_ref,
         y_ref, mom_ref, pad_ref, slab_ref) = refs
    else:
        (x_ref, halo_ref, w_ref, y_ref, mom_ref, pad_ref, slab_ref) = refs

    TRp2, Wp2, Cin = pad_ref.shape
    TR, W = TRp2 - 2, Wp2 - 2
    Cout = w_ref.shape[1]

    ctr = x_ref[0].astype(jnp.float32)                 # (TR, W, Cin)
    top = halo_ref[0, 0:1, :, :].astype(jnp.float32)   # (1, W, Cin)  row above the tile
    bot = halo_ref[0, 1:2, :, :].astype(jnp.float32)   # (1, W, Cin)  row below the tile

    if pre_bn_relu:
        scale = scale_ref[...]                         # (1, Cin) broadcasts over (.., W, Cin)
        shift = shift_ref[...]
        aff = lambda v: jnp.maximum(v * scale + shift, 0.0)
        ctr = aff(ctr)
        r, nr = pl.program_id(1), pl.num_programs(1)
        # image-boundary halo rows are conv padding: they must stay exactly zero
        # (post-activation zero), not affine(0).
        top = jnp.where(r == 0, 0.0, aff(top))
        bot = jnp.where(r == nr - 1, 0.0, aff(bot))

    # Only the 1-pixel left/right border columns need zeroing (top/bottom rows come from
    # the halo input).  Redundant after a core's first step but tiny ((TR+2)*Cin each).
    pad_ref[:, 0:1, :] = jnp.zeros((TRp2, 1, Cin), jnp.float32)
    pad_ref[:, W + 1:W + 2, :] = jnp.zeros((TRp2, 1, Cin), jnp.float32)
    pad_ref[0:1, 1:W + 1, :] = top
    pad_ref[1:TR + 1, 1:W + 1, :] = ctr
    pad_ref[TR + 1:TR + 2, 1:W + 1, :] = bot

    # im2col slab; taps written in pairs so slab stores are 2*Cin wide at 2*Cin-aligned
    # offsets (full 128-lane stores when Cin=64; always aligned for Cin>=128).
    for t in range(0, 8, 2):
        dy0, dx0 = divmod(t, 3)
        dy1, dx1 = divmod(t + 1, 3)
        pair = jnp.concatenate(
            [pad_ref[dy0:dy0 + TR, dx0:dx0 + W, :],
             pad_ref[dy1:dy1 + TR, dx1:dx1 + W, :]], axis=-1)
        slab_ref[:, :, t * Cin:(t + 2) * Cin] = pair.astype(slab_ref.dtype)
    slab_ref[:, :, 8 * Cin:9 * Cin] = pad_ref[2:2 + TR, 2:2 + W, :].astype(slab_ref.dtype)

    # single K = 9*Cin MXU matmul (bf16 inputs, f32 accumulation)
    slab = slab_ref[...].reshape(TR * W, 9 * Cin)
    acc = jnp.dot(slab, w_ref[...], preferred_element_type=jnp.float32)   # (TR*W, Cout)

    # TODO(synk): for Cout < 128 layers, folding W into the lane dim of y_ref would make
    # this writeback lane-dense (at the cost of an in-kernel relayout).
    y_ref[...] = acc.reshape(1, TR, W, Cout).astype(y_ref.dtype)

    # per-tile single-pass moments from the f32 accumulator; finalized in the wrapper
    s = jnp.sum(acc, axis=0, keepdims=True)
    ss = jnp.sum(acc * acc, axis=0, keepdims=True)
    mom_ref[0, 0, :, :] = jnp.concatenate([s, ss], axis=0)


def _bn_residual_relu_kernel(z_ref, x_ref, scale_ref, shift_ref, out_ref):
    """out = relu(bn2(z) + residual) on lane-dense (rows, W*C) blocks.

    scale/shift are already tiled to width W*C, so this is pure dense elementwise work.
    """
    z = z_ref[...].astype(jnp.float32)
    out_ref[...] = jnp.maximum(z * scale_ref[...] + shift_ref[...] + x_ref[...], 0.0)


# ---------------------------------------------------------------------------
# pallas_call wrappers
# ---------------------------------------------------------------------------
def _conv_stage(x, halo, wmat, scale=None, shift=None, *, TR, pre_bn_relu, out_dtype):
    N, H, W, Cin = x.shape
    K, Cout = wmat.shape                      # K = 9 * Cin
    R = H // TR
    cap = _vmem_capacity_bytes()
    vmem_limit = _vmem_limit(_conv_step_bytes(TR, W, Cin, Cout), cap)

    in_specs = [
        pl.BlockSpec((1, TR, W, Cin), lambda n, r: (n, r, 0, 0)),
        pl.BlockSpec((1, 2, W, Cin), lambda n, r: (n, r, 0, 0)),
        pl.BlockSpec((K, Cout), lambda n, r: (0, 0)),        # resident, not re-DMA'd
    ]
    args = [x, halo, wmat]
    if pre_bn_relu:
        in_specs += [pl.BlockSpec((1, Cin), lambda n, r: (0, 0)),
                     pl.BlockSpec((1, Cin), lambda n, r: (0, 0))]
        args += [scale, shift]

    kernel = functools.partial(_conv3x3_moments_kernel, pre_bn_relu=pre_bn_relu)
    y, mom = pl.pallas_call(
        kernel,
        out_shape=(jax.ShapeDtypeStruct((N, H, W, Cout), out_dtype),
                   jax.ShapeDtypeStruct((N, R, 2, Cout), jnp.float32)),
        grid_spec=pltpu.PrefetchScalarGridSpec(
            num_scalar_prefetch=0,
            grid=(N, R),
            in_specs=in_specs,
            out_specs=(
                pl.BlockSpec((1, TR, W, Cout), lambda n, r: (n, r, 0, 0)),
                pl.BlockSpec((1, 1, 2, Cout), lambda n, r: (n, r, 0, 0)),
            ),
            scratch_shapes=[
                pltpu.VMEM((TR + 2, W + 2, Cin), jnp.float32),
                pltpu.VMEM((TR, W, K), MATMUL_DTYPE),
            ],
        ),
        compiler_params=pltpu.CompilerParams(
            dimension_semantics=("parallel", "parallel"),
            vmem_limit_bytes=vmem_limit,
        ),
    )(*args)
    return y, mom


def _finalize_stage(z2d, x2d, scale_wc, shift_wc):
    P, WC = z2d.shape
    cap = _vmem_capacity_bytes()
    BR = _pick_elem_rows(P, WC, cap)
    needed = 2 * BR * WC * (jnp.dtype(z2d.dtype).itemsize + 4 + 4) + 4 * WC * 4 + (2 << 20)
    vmem_limit = _vmem_limit(needed, cap)
    return pl.pallas_call(
        _bn_residual_relu_kernel,
        out_shape=jax.ShapeDtypeStruct((P, WC), jnp.float32),
        grid_spec=pltpu.PrefetchScalarGridSpec(
            num_scalar_prefetch=0,
            grid=(P // BR,),
            in_specs=[
                pl.BlockSpec((BR, WC), lambda i: (i, 0)),
                pl.BlockSpec((BR, WC), lambda i: (i, 0)),
                pl.BlockSpec((1, WC), lambda i: (0, 0)),
                pl.BlockSpec((1, WC), lambda i: (0, 0)),
            ],
            out_specs=pl.BlockSpec((BR, WC), lambda i: (i, 0)),
        ),
        compiler_params=pltpu.CompilerParams(
            dimension_semantics=("parallel",),
            vmem_limit_bytes=vmem_limit,
        ),
    )(z2d, x2d, scale_wc, shift_wc)


def _build_halo(act, TR):
    """act: (N, H, W, C) -> (N, 2*R, W, C).  Rows [2r]/[2r+1] are the rows directly above /
    below row-tile r (zero rows at the image top / bottom edge)."""
    N, H, W, C = act.shape
    R = H // TR
    zero = jnp.zeros((N, 1, W, C), act.dtype)
    if R == 1:
        top, bot = zero, zero
    else:
        top = jnp.concatenate([zero, act[:, TR - 1:(R - 1) * TR:TR]], axis=1)   # (N, R, W, C)
        bot = jnp.concatenate([act[:, TR:(R - 1) * TR + 1:TR], zero], axis=1)
    return jnp.stack([top, bot], axis=2).reshape(N, 2 * R, W, C)


def _bn_scale_shift(mom, gamma, beta, count):
    """(N, R, 2, C) per-tile [sum, sum_sq] -> global BN affine.  O(C) work in plain JAX."""
    s = jnp.sum(mom[:, :, 0, :], axis=(0, 1))
    ss = jnp.sum(mom[:, :, 1, :], axis=(0, 1))
    mean = s / count
    # single-pass biased variance in f32; magnitudes here are O(1) so cancellation is benign
    var = jnp.maximum(ss / count - mean * mean, 0.0)
    scale = gamma * jax.lax.rsqrt(var + EPS)
    shift = beta - mean * scale
    return scale.astype(jnp.float32), shift.astype(jnp.float32)


# ---------------------------------------------------------------------------
# forward
# ---------------------------------------------------------------------------
def basic_block_forward(x_nchw, params):
    """x_nchw: (N, C, H, W) float32 (PyTorch convention). Returns (N, C, H, W)."""
    w1, b1, g1, be1, w2, b2, g2, be2 = params
    # Conv biases are intentionally NOT applied in-kernel: a per-channel constant added
    # before BatchNorm is exactly cancelled by the mean subtraction (output-preserving).
    del b1, b2

    x = jnp.transpose(x_nchw, (0, 2, 3, 1)).astype(jnp.float32)      # NHWC, C on lanes
    N, H, W, Cin = x.shape
    Cout = w1.shape[0]
    assert Cin == Cout, "residual add requires in_channels == out_channels (stride=1)"
    # TODO(synk): stride != 1 / downsample path of general ResNet blocks is not implemented.

    cap = _vmem_capacity_bytes()
    TR = _pick_row_tile(N, H, W, Cin, Cout, cap)

    # (Cout, Cin, 3, 3) -> (9*Cin, Cout), row index = (dy*3 + dx)*Cin + c, bf16 for the MXU
    w1m = jnp.transpose(w1, (2, 3, 1, 0)).reshape(9 * Cin, Cout).astype(MATMUL_DTYPE)
    w2m = jnp.transpose(w2, (2, 3, 1, 0)).reshape(9 * Cout, Cout).astype(MATMUL_DTYPE)

    count = N * H * W

    # stage 1: conv1 (raw) + per-tile moments
    y1, mom1 = _conv_stage(x, _build_halo(x, TR), w1m, TR=TR,
                           pre_bn_relu=False, out_dtype=ACT_DTYPE)
    scale1, shift1 = _bn_scale_shift(mom1, g1, be1, count)

    # stage 2: bn1 + relu folded into conv2's input transform; conv2 (raw) + moments
    z, mom2 = _conv_stage(y1, _build_halo(y1, TR), w2m,
                          scale1.reshape(1, Cout), shift1.reshape(1, Cout),
                          TR=TR, pre_bn_relu=True, out_dtype=ACT_DTYPE)
    scale2, shift2 = _bn_scale_shift(mom2, g2, be2, count)

    # stage 3: bn2 + residual add + relu on lane-dense (N*H, W*C) blocks
    s2 = jnp.tile(scale2, W)[None, :]                                # (1, W*C), per-channel tiled
    t2 = jnp.tile(shift2, W)[None, :]
    out = _finalize_stage(z.reshape(N * H, W * Cout),
                          x.reshape(N * H, W * Cin), s2, t2)
    out = out.reshape(N, H, W, Cout)
    return jnp.transpose(out, (0, 3, 1, 2))                          # back to NCHW


# ---------------------------------------------------------------------------
# pure-JAX reference (PyTorch training-mode BN semantics, NCHW, f32)
# ---------------------------------------------------------------------------
def reference_forward(x, params):
    w1, b1, g1, be1, w2, b2, g2, be2 = params

    def conv(inp, w, b):
        y = jax.lax.conv_general_dilated(
            inp, w, window_strides=(1, 1), padding=((1, 1), (1, 1)),
            dimension_numbers=('NCHW', 'OIHW', 'NCHW'),
            precision=jax.lax.Precision.HIGHEST)
        return y + b[None, :, None, None]

    def bn(inp, g, be):
        mean = jnp.mean(inp, axis=(0, 2, 3), keepdims=True)
        var = jnp.mean((inp - mean) ** 2, axis=(0, 2, 3), keepdims=True)
        return ((inp - mean) * jax.lax.rsqrt(var + EPS)
                * g[None, :, None, None] + be[None, :, None, None])

    out = jnp.maximum(bn(conv(x, w1, b1), g1, be1), 0.0)
    out = bn(conv(out, w2, b2), g2, be2)
    return jnp.maximum(out + x, 0.0)


def init_params(key, in_channels, out_channels):
    ks = jax.random.split(key, 8)
    w1 = 0.1 * jax.random.normal(ks[0], (out_channels, in_channels, 3, 3), jnp.float32)
    b1 = 0.1 * jax.random.normal(ks[1], (out_channels,), jnp.float32)
    g1 = 1.0 + 0.1 * jax.random.normal(ks[2], (out_channels,), jnp.float32)
    be1 = 0.1 * jax.random.normal(ks[3], (out_channels,), jnp.float32)
    w2 = 0.1 * jax.random.normal(ks[4], (out_channels, out_channels, 3, 3), jnp.float32)
    b2 = 0.1 * jax.random.normal(ks[5], (out_channels,), jnp.float32)
    g2 = 1.0 + 0.1 * jax.random.normal(ks[6], (out_channels,), jnp.float32)
    be2 = 0.1 * jax.random.normal(ks[7], (out_channels,), jnp.float32)
    return (w1, b1, g1, be1, w2, b2, g2, be2)


if __name__ == "__main__":
    key = jax.random.PRNGKey(0)
    k_x, k_p = jax.random.split(key)

    N, C, H, W = 2, 4, 16, 16          # batch=2, channels=4, spatial=16
    x = jax.random.normal(k_x, (N, C, H, W), jnp.float32)
    params = init_params(k_p, C, C)

    out = jax.block_until_ready(jax.jit(basic_block_forward)(x, params))
    ref = jax.block_until_ready(reference_forward(x, params))

    assert out.shape == (N, C, H, W)
    # kernel uses bf16 MXU inputs + bf16 inter-stage activations vs. the f32 reference,
    # so the comparison tolerance is bf16-scale rather than the previous f32-scale 5e-4.
    err = float(jnp.max(jnp.abs(out - ref)))
    assert jnp.allclose(out, ref, atol=1e-1, rtol=1e-1), f"max abs diff {err}"
    print("KERNEL_OK")
</pallas_src>

<mosaic_0001>
module attributes {stable_mosaic.version = 11 : i64} {
  func.func @_conv3x3_moments_kernel(%arg0: i32, %arg1: i32, %arg2: memref<1x8x16x4xf32, #tpu.memory_space<vmem>>, %arg3: memref<1x2x16x4xf32, #tpu.memory_space<vmem>>, %arg4: memref<36x4xbf16, #tpu.memory_space<vmem>>, %arg5: memref<1x8x16x4xbf16, #tpu.memory_space<vmem>>, %arg6: memref<1x1x2x4xf32, #tpu.memory_space<vmem>>, %arg7: memref<10x18x4xf32, #tpu.memory_space<vmem>>, %arg8: memref<8x16x36xbf16, #tpu.memory_space<vmem>>) attributes {dimension_semantics = [#tpu.dimension_semantics<parallel>, #tpu.dimension_semantics<parallel>], iteration_bounds = array<i64: 2, 2>, scalar_prefetch = 0 : i64, scratch_operands = 2 : i64, tpu.core_type = #tpu.core_type<tc>, window_params = [{transform_indices = @transform_0, window_bounds = array<i64: 1, 8, 16, 4>}, {transform_indices = @transform_1, window_bounds = array<i64: 1, 2, 16, 4>}, {pipeline_mode = #tpu.pipeline_mode<synchronous>, transform_indices = @transform_2, window_bounds = array<i64: 36, 4>}, {transform_indices = @transform_3, window_bounds = array<i64: 1, 8, 16, 4>}, {transform_indices = @transform_4, window_bounds = array<i64: 1, 1, 2, 4>}]} {
    %c0 = arith.constant 0 : index
    %c0_0 = arith.constant 0 : index
    %c0_1 = arith.constant 0 : index
    %c0_2 = arith.constant 0 : index
    %0 = vector.load %arg2[%c0, %c0_0, %c0_1, %c0_2] : memref<1x8x16x4xf32, #tpu.memory_space<vmem>>, vector<1x8x16x4xf32>
    %1 = vector.shape_cast %0 : vector<1x8x16x4xf32> to vector<8x16x4xf32>
    %c0_3 = arith.constant 0 : index
    %c0_4 = arith.constant 0 : index
    %c0_5 = arith.constant 0 : index
    %c0_6 = arith.constant 0 : index
    %2 = vector.load %arg3[%c0_3, %c0_4, %c0_5, %c0_6] : memref<1x2x16x4xf32, #tpu.memory_space<vmem>>, vector<1x1x16x4xf32>
    %3 = vector.shape_cast %2 : vector<1x1x16x4xf32> to vector<1x16x4xf32>
    %c0_7 = arith.constant 0 : index
    %c1 = arith.constant 1 : index
    %c0_8 = arith.constant 0 : index
    %c0_9 = arith.constant 0 : index
    %4 = vector.load %arg3[%c0_7, %c1, %c0_8, %c0_9] : memref<1x2x16x4xf32, #tpu.memory_space<vmem>>, vector<1x1x16x4xf32>
    %5 = vector.shape_cast %4 : vector<1x1x16x4xf32> to vector<1x16x4xf32>
    %cst = arith.constant 0.000000e+00 : f32
    %6 = vector.broadcast %cst : f32 to vector<10x1x4xf32>
    %c0_10 = arith.constant 0 : index
    %c0_11 = arith.constant 0 : index
    %c0_12 = arith.constant 0 : index
    %7 = vector.load %arg7[%c0_10, %c0_11, %c0_12] : memref<10x18x4xf32, #tpu.memory_space<vmem>>, vector<10x1x4xf32>
    tpu.vector_store %arg7[%c0_10, %c0_11, %c0_12], %6 {strides = array<i32>} : memref<10x18x4xf32, #tpu.memory_space<vmem>>, vector<10x1x4xf32>,
    %cst_13 = arith.constant 0.000000e+00 : f32
    %8 = vector.broadcast %cst_13 : f32 to vector<10x1x4xf32>
    %c0_14 = arith.constant 0 : index
    %c17 = arith.constant 17 : index
    %c0_15 = arith.constant 0 : index
    %9 = vector.load %arg7[%c0_14, %c17, %c0_15] : memref<10x18x4xf32, #tpu.memory_space<vmem>>, vector<10x1x4xf32>
    tpu.vector_store %arg7[%c0_14, %c17, %c0_15], %8 {strides = array<i32>} : memref<10x18x4xf32, #tpu.memory_space<vmem>>, vector<10x1x4xf32>,
    %c0_16 = arith.constant 0 : index
    %c1_17 = arith.constant 1 : index
    %c0_18 = arith.constant 0 : index
    %10 = vector.load %arg7[%c0_16, %c1_17, %c0_18] : memref<10x18x4xf32, #tpu.memory_space<vmem>>, vector<1x16x4xf32>
    tpu.vector_store %arg7[%c0_16, %c1_17, %c0_18], %3 {strides = array<i32>} : memref<10x18x4xf32, #tpu.memory_space<vmem>>, vector<1x16x4xf32>,
    %c1_19 = arith.constant 1 : index
    %c1_20 = arith.constant 1 : index
    %c0_21 = arith.constant 0 : index
    %11 = vector.load %arg7[%c1_19, %c1_20, %c0_21] : memref<10x18x4xf32, #tpu.memory_space<vmem>>, vector<8x16x4xf32>
    tpu.vector_store %arg7[%c1_19, %c1_20, %c0_21], %1 {strides = array<i32>} : memref<10x18x4xf32, #tpu.memory_space<vmem>>, vector<8x16x4xf32>,
    %c9 = arith.constant 9 : index
    %c1_22 = arith.constant 1 : index
    %c0_23 = arith.constant 0 : index
    %12 = vector.load %arg7[%c9, %c1_22, %c0_23] : memref<10x18x4xf32, #tpu.memory_space<vmem>>, vector<1x16x4xf32>
    tpu.vector_store %arg7[%c9, %c1_22, %c0_23], %5 {strides = array<i32>} : memref<10x18x4xf32, #tpu.memory_space<vmem>>, vector<1x16x4xf32>,
    %c0_24 = arith.constant 0 : index
    %c0_25 = arith.constant 0 : index
    %c0_26 = arith.constant 0 : index
    %13 = vector.load %arg7[%c0_24, %c0_25, %c0_26] : memref<10x18x4xf32, #tpu.memory_space<vmem>>, vector<8x16x4xf32>
    %c0_27 = arith.constant 0 : index
    %c1_28 = arith.constant 1 : index
    %c0_29 = arith.constant 0 : index
    %14 = vector.load %arg7[%c0_27, %c1_28, %c0_29] : memref<10x18x4xf32, #tpu.memory_space<vmem>>, vector<8x16x4xf32>
    %15 = tpu.concatenate %13, %14 in 2 : vector<8x16x4xf32>, vector<8x16x4xf32> -> vector<8x16x8xf32>
    %16 = arith.truncf %15 : vector<8x16x8xf32> to vector<8x16x8xbf16>
    %c0_30 = arith.constant 0 : index
    %c0_31 = arith.constant 0 : index
    %c0_32 = arith.constant 0 : index
    %17 = vector.load %arg8[%c0_30, %c0_31, %c0_32] : memref<8x16x36xbf16, #tpu.memory_space<vmem>>, vector<8x16x8xbf16>
    tpu.vector_store %arg8[%c0_30, %c0_31, %c0_32], %16 {strides = array<i32>} : memref<8x16x36xbf16, #tpu.memory_space<vmem>>, vector<8x16x8xbf16>,
    %c0_33 = arith.constant 0 : index
    %c2 = arith.constant 2 : index
    %c0_34 = arith.constant 0 : index
    %18 = vector.load %arg7[%c0_33, %c2, %c0_34] : memref<10x18x4xf32, #tpu.memory_space<vmem>>, vector<8x16x4xf32>
    %c1_35 = arith.constant 1 : index
    %c0_36 = arith.constant 0 : index
    %c0_37 = arith.constant 0 : index
    %19 = vector.load %arg7[%c1_35, %c0_36, %c0_37] : memref<10x18x4xf32, #tpu.memory_space<vmem>>, vector<8x16x4xf32>
    %20 = tpu.concatenate %18, %19 in 2 : vector<8x16x4xf32>, vector<8x16x4xf32> -> vector<8x16x8xf32>
    %21 = arith.truncf %20 : vector<8x16x8xf32> to vector<8x16x8xbf16>
    %c0_38 = arith.constant 0 : index
    %c0_39 = arith.constant 0 : index
    %c8 = arith.constant 8 : index
    %22 = vector.load %arg8[%c0_38, %c0_39, %c8] : memref<8x16x36xbf16, #tpu.memory_space<vmem>>, vector<8x16x8xbf16>
    tpu.vector_store %arg8[%c0_38, %c0_39, %c8], %21 {strides = array<i32>} : memref<8x16x36xbf16, #tpu.memory_space<vmem>>, vector<8x16x8xbf16>,
    %c1_40 = arith.constant 1 : index
    %c1_41 = arith.constant 1 : index
    %c0_42 = arith.constant 0 : index
    %23 = vector.load %arg7[%c1_40, %c1_41, %c0_42] : memref<10x18x4xf32, #tpu.memory_space<vmem>>, vector<8x16x4xf32>
    %c1_43 = arith.constant 1 : index
    %c2_44 = arith.constant 2 : index
    %c0_45 = arith.constant 0 : index
    %24 = vector.load %arg7[%c1_43, %c2_44, %c0_45] : memref<10x18x4xf32, #tpu.memory_space<vmem>>, vector<8x16x4xf32>
    %25 = tpu.concatenate %23, %24 in 2 : vector<8x16x4xf32>, vector<8x16x4xf32> -> vector<8x16x8xf32>
    %26 = arith.truncf %25 : vector<8x16x8xf32> to vector<8x16x8xbf16>
    %c0_46 = arith.constant 0 : index
    %c0_47 = arith.constant 0 : index
    %c16 = arith.constant 16 : index
    %27 = vector.load %arg8[%c0_46, %c0_47, %c16] : memref<8x16x36xbf16, #tpu.memory_space<vmem>>, vector<8x16x8xbf16>
    tpu.vector_store %arg8[%c0_46, %c0_47, %c16], %26 {strides = array<i32>} : memref<8x16x36xbf16, #tpu.memory_space<vmem>>, vector<8x16x8xbf16>,
    %c2_48 = arith.constant 2 : index
    %c0_49 = arith.constant 0 : index
    %c0_50 = arith.constant 0 : index
    %28 = vector.load %arg7[%c2_48, %c0_49, %c0_50] : memref<10x18x4xf32, #tpu.memory_space<vmem>>, vector<8x16x4xf32>
    %c2_51 = arith.constant 2 : index
    %c1_52 = arith.constant 1 : index
    %c0_53 = arith.constant 0 : index
    %29 = vector.load %arg7[%c2_51, %c1_52, %c0_53] : memref<10x18x4xf32, #tpu.memory_space<vmem>>, vector<8x16x4xf32>
    %30 = tpu.concatenate %28, %29 in 2 : vector<8x16x4xf32>, vector<8x16x4xf32> -> vector<8x16x8xf32>
    %31 = arith.truncf %30 : vector<8x16x8xf32> to vector<8x16x8xbf16>
    %c0_54 = arith.constant 0 : index
    %c0_55 = arith.constant 0 : index
    %c24 = arith.constant 24 : index
    %32 = vector.load %arg8[%c0_54, %c0_55, %c24] : memref<8x16x36xbf16, #tpu.memory_space<vmem>>, vector<8x16x8xbf16>
    tpu.vector_store %arg8[%c0_54, %c0_55, %c24], %31 {strides = array<i32>} : memref<8x16x36xbf16, #tpu.memory_space<vmem>>, vector<8x16x8xbf16>,
    %c2_56 = arith.constant 2 : index
    %c2_57 = arith.constant 2 : index
    %c0_58 = arith.constant 0 : index
    %33 = vector.load %arg7[%c2_56, %c2_57, %c0_58] : memref<10x18x4xf32, #tpu.memory_space<vmem>>, vector<8x16x4xf32>
    %34 = arith.truncf %33 : vector<8x16x4xf32> to vector<8x16x4xbf16>
    %c0_59 = arith.constant 0 : index
    %c0_60 = arith.constant 0 : index
    %c32 = arith.constant 32 : index
    %35 = vector.load %arg8[%c0_59, %c0_60, %c32] : memref<8x16x36xbf16, #tpu.memory_space<vmem>>, vector<8x16x4xbf16>
    tpu.vector_store %arg8[%c0_59, %c0_60, %c32], %34 {strides = array<i32>} : memref<8x16x36xbf16, #tpu.memory_space<vmem>>, vector<8x16x4xbf16>,
    %c0_61 = arith.constant 0 : index
    %c0_62 = arith.constant 0 : index
    %c0_63 = arith.constant 0 : index
    %36 = vector.load %arg8[%c0_61, %c0_62, %c0_63] : memref<8x16x36xbf16, #tpu.memory_space<vmem>>, vector<8x16x36xbf16>
    %37 = vector.shape_cast %36 : vector<8x16x36xbf16> to vector<128x36xbf16>
    %c0_64 = arith.constant 0 : index
    %c0_65 = arith.constant 0 : index
    %38 = vector.load %arg4[%c0_64, %c0_65] : memref<36x4xbf16, #tpu.memory_space<vmem>>, vector<36x4xbf16>
    %cst_66 = arith.constant dense<0.000000e+00> : vector<128x4xf32>
    %39 = tpu.matmul %37, %38, %cst_66 {dimension_numbers = #tpu.dot_dimension_numbers<[1], [0], [0], [1], [0, 0, 1, 1], [], []>} : vector<128x36xbf16>, vector<36x4xbf16>, vector<128x4xf32> -> vector<128x4xf32>
    %40 = vector.shape_cast %39 : vector<128x4xf32> to vector<1x8x16x4xf32>
    %41 = arith.truncf %40 : vector<1x8x16x4xf32> to vector<1x8x16x4xbf16>
    %c0_67 = arith.constant 0 : index
    %c0_68 = arith.constant 0 : index
    %c0_69 = arith.constant 0 : index
    %c0_70 = arith.constant 0 : index
    %42 = vector.load %arg5[%c0_67, %c0_68, %c0_69, %c0_70] : memref<1x8x16x4xbf16, #tpu.memory_space<vmem>>, vector<1x8x16x4xbf16>
    tpu.vector_store %arg5[%c0_67, %c0_68, %c0_69, %c0_70], %41 {strides = array<i32>} : memref<1x8x16x4xbf16, #tpu.memory_space<vmem>>, vector<1x8x16x4xbf16>,
    %cst_71 = arith.constant dense<0.000000e+00> : vector<4xf32>
    %43 = vector.multi_reduction <add>, %39, %cst_71 [0] : vector<128x4xf32> to vector<4xf32>
    %44 = vector.shape_cast %43 : vector<4xf32> to vector<1x4xf32>
    %45 = arith.mulf %39, %39 : vector<128x4xf32>
    %cst_72 = arith.constant dense<0.000000e+00> : vector<4xf32>
    %46 = vector.multi_reduction <add>, %45, %cst_72 [0] : vector<128x4xf32> to vector<4xf32>
    %47 = vector.shape_cast %46 : vector<4xf32> to vector<1x4xf32>
    %48 = tpu.concatenate %44, %47 in 0 : vector<1x4xf32>, vector<1x4xf32> -> vector<2x4xf32>
    %c0_73 = arith.constant 0 : index
    %c0_74 = arith.constant 0 : index
    %c0_75 = arith.constant 0 : index
    %c0_76 = arith.constant 0 : index
    %49 = vector.load %arg6[%c0_73, %c0_74, %c0_75, %c0_76] : memref<1x1x2x4xf32, #tpu.memory_space<vmem>>, vector<1x1x2x4xf32>
    %50 = vector.shape_cast %49 : vector<1x1x2x4xf32> to vector<2x4xf32>
    %51 = vector.shape_cast %48 : vector<2x4xf32> to vector<1x1x2x4xf32>
    tpu.vector_store %arg6[%c0_73, %c0_74, %c0_75, %c0_76], %51 {strides = array<i32>} : memref<1x1x2x4xf32, #tpu.memory_space<vmem>>, vector<1x1x2x4xf32>,
    return
  }
  func.func @transform_0(%arg0: i32, %arg1: i32) -> (i32, i32, i32, i32) {
    %c0_i32 = arith.constant 0 : i32
    %c0_i32_0 = arith.constant 0 : i32
    %c0_i32_1 = arith.constant 0 : i32
    return %arg0, %arg1, %c0_i32, %c0_i32_0 : i32, i32, i32, i32
  }
  func.func @transform_1(%arg0: i32, %arg1: i32) -> (i32, i32, i32, i32) {
    %c0_i32 = arith.constant 0 : i32
    %c0_i32_0 = arith.constant 0 : i32
    %c0_i32_1 = arith.constant 0 : i32
    return %arg0, %arg1, %c0_i32, %c0_i32_0 : i32, i32, i32, i32
  }
  func.func @transform_2(%arg0: i32, %arg1: i32) -> (i32, i32) {
    %c0_i32 = arith.constant 0 : i32
    %c0_i32_0 = arith.constant 0 : i32
    %c0_i32_1 = arith.constant 0 : i32
    return %c0_i32, %c0_i32_0 : i32, i32
  }
  func.func @transform_3(%arg0: i32, %arg1: i32) -> (i32, i32, i32, i32) {
    %c0_i32 = arith.constant 0 : i32
    %c0_i32_0 = arith.constant 0 : i32
    %c0_i32_1 = arith.constant 0 : i32
    return %arg0, %arg1, %c0_i32, %c0_i32_0 : i32, i32, i32, i32
  }
  func.func @transform_4(%arg0: i32, %arg1: i32) -> (i32, i32, i32, i32) {
    %c0_i32 = arith.constant 0 : i32
    %c0_i32_0 = arith.constant 0 : i32
    %c0_i32_1 = arith.constant 0 : i32
    return %arg0, %arg1, %c0_i32, %c0_i32_0 : i32, i32, i32, i32
  }
}

module attributes {stable_mosaic.version = 11 : i64} {
  func.func @_conv3x3_moments_kernel(%arg0: i32, %arg1: i32, %arg2: memref<1x8x16x4xbf16, #tpu.memory_space<vmem>>, %arg3: memref<1x2x16x4xbf16, #tpu.memory_space<vmem>>, %arg4: memref<36x4xbf16, #tpu.memory_space<vmem>>, %arg5: memref<1x4xf32, #tpu.memory_space<vmem>>, %arg6: memref<1x4xf32, #tpu.memory_space<vmem>>, %arg7: memref<1x8x16x4xbf16, #tpu.memory_space<vmem>>, %arg8: memref<1x1x2x4xf32, #tpu.memory_space<vmem>>, %arg9: memref<10x18x4xf32, #tpu.memory_space<vmem>>, %arg10: memref<8x16x36xbf16, #tpu.memory_space<vmem>>) attributes {dimension_semantics = [#tpu.dimension_semantics<parallel>, #tpu.dimension_semantics<parallel>], iteration_bounds = array<i64: 2, 2>, scalar_prefetch = 0 : i64, scratch_operands = 2 : i64, tpu.core_type = #tpu.core_type<tc>, window_params = [{transform_indices = @transform_0, window_bounds = array<i64: 1, 8, 16, 4>}, {transform_indices = @transform_1, window_bounds = array<i64: 1, 2, 16, 4>}, {pipeline_mode = #tpu.pipeline_mode<synchronous>, transform_indices = @transform_2, window_bounds = array<i64: 36, 4>}, {pipeline_mode = #tpu.pipeline_mode<synchronous>, transform_indices = @transform_3, window_bounds = array<i64: 1, 4>}, {pipeline_mode = #tpu.pipeline_mode<synchronous>, transform_indices = @transform_4, window_bounds = array<i64: 1, 4>}, {transform_indices = @transform_5, window_bounds = array<i64: 1, 8, 16, 4>}, {transform_indices = @transform_6, window_bounds = array<i64: 1, 1, 2, 4>}]} {
    %c0 = arith.constant 0 : index
    %c0_0 = arith.constant 0 : index
    %c0_1 = arith.constant 0 : index
    %c0_2 = arith.constant 0 : index
    %0 = vector.load %arg2[%c0, %c0_0, %c0_1, %c0_2] : memref<1x8x16x4xbf16, #tpu.memory_space<vmem>>, vector<1x8x16x4xbf16>
    %1 = vector.shape_cast %0 : vector<1x8x16x4xbf16> to vector<8x16x4xbf16>
    %2 = arith.extf %1 : vector<8x16x4xbf16> to vector<8x16x4xf32>
    %c0_3 = arith.constant 0 : index
    %c0_4 = arith.constant 0 : index
    %c0_5 = arith.constant 0 : index
    %c0_6 = arith.constant 0 : index
    %3 = vector.load %arg3[%c0_3, %c0_4, %c0_5, %c0_6] : memref<1x2x16x4xbf16, #tpu.memory_space<vmem>>, vector<1x1x16x4xbf16>
    %4 = vector.shape_cast %3 : vector<1x1x16x4xbf16> to vector<1x16x4xbf16>
    %5 = arith.extf %4 : vector<1x16x4xbf16> to vector<1x16x4xf32>
    %c0_7 = arith.constant 0 : index
    %c1 = arith.constant 1 : index
    %c0_8 = arith.constant 0 : index
    %c0_9 = arith.constant 0 : index
    %6 = vector.load %arg3[%c0_7, %c1, %c0_8, %c0_9] : memref<1x2x16x4xbf16, #tpu.memory_space<vmem>>, vector<1x1x16x4xbf16>
    %7 = vector.shape_cast %6 : vector<1x1x16x4xbf16> to vector<1x16x4xbf16>
    %8 = arith.extf %7 : vector<1x16x4xbf16> to vector<1x16x4xf32>
    %c0_10 = arith.constant 0 : index
    %c0_11 = arith.constant 0 : index
    %9 = vector.load %arg5[%c0_10, %c0_11] : memref<1x4xf32, #tpu.memory_space<vmem>>, vector<1x4xf32>
    %c0_12 = arith.constant 0 : index
    %c0_13 = arith.constant 0 : index
    %10 = vector.load %arg6[%c0_12, %c0_13] : memref<1x4xf32, #tpu.memory_space<vmem>>, vector<1x4xf32>
    %11 = vector.shape_cast %9 : vector<1x4xf32> to vector<1x1x4xf32>
    %12 = vector.broadcast %11 : vector<1x1x4xf32> to vector<8x16x4xf32>
    %13 = arith.mulf %2, %12 : vector<8x16x4xf32>
    %14 = vector.shape_cast %10 : vector<1x4xf32> to vector<1x1x4xf32>
    %15 = vector.broadcast %14 : vector<1x1x4xf32> to vector<8x16x4xf32>
    %16 = arith.addf %13, %15 : vector<8x16x4xf32>
    %cst = arith.constant 0.000000e+00 : f32
    %17 = vector.broadcast %cst : f32 to vector<8x16x4xf32>
    %18 = arith.maximumf %16, %17 : vector<8x16x4xf32>
    %c0_i32 = arith.constant 0 : i32
    %19 = arith.cmpi eq, %arg1, %c0_i32 : i32
    %20 = vector.shape_cast %9 : vector<1x4xf32> to vector<1x1x4xf32>
    %21 = vector.broadcast %20 : vector<1x1x4xf32> to vector<1x16x4xf32>
    %22 = arith.mulf %5, %21 : vector<1x16x4xf32>
    %23 = vector.shape_cast %10 : vector<1x4xf32> to vector<1x1x4xf32>
    %24 = vector.broadcast %23 : vector<1x1x4xf32> to vector<1x16x4xf32>
    %25 = arith.addf %22, %24 : vector<1x16x4xf32>
    %cst_14 = arith.constant 0.000000e+00 : f32
    %26 = vector.broadcast %cst_14 : f32 to vector<1x16x4xf32>
    %27 = arith.maximumf %25, %26 : vector<1x16x4xf32>
    %cst_15 = arith.constant 0.000000e+00 : f32
    %28 = vector.broadcast %cst_15 : f32 to vector<1x16x4xf32>
    %29 = arith.select %19, %28, %27 : vector<1x16x4xf32>
    %c1_i32 = arith.constant 1 : i32
    %30 = arith.cmpi eq, %arg1, %c1_i32 : i32
    %31 = vector.shape_cast %9 : vector<1x4xf32> to vector<1x1x4xf32>
    %32 = vector.broadcast %31 : vector<1x1x4xf32> to vector<1x16x4xf32>
    %33 = arith.mulf %8, %32 : vector<1x16x4xf32>
    %34 = vector.shape_cast %10 : vector<1x4xf32> to vector<1x1x4xf32>
    %35 = vector.broadcast %34 : vector<1x1x4xf32> to vector<1x16x4xf32>
    %36 = arith.addf %33, %35 : vector<1x16x4xf32>
    %cst_16 = arith.constant 0.000000e+00 : f32
    %37 = vector.broadcast %cst_16 : f32 to vector<1x16x4xf32>
    %38 = arith.maximumf %36, %37 : vector<1x16x4xf32>
    %cst_17 = arith.constant 0.000000e+00 : f32
    %39 = vector.broadcast %cst_17 : f32 to vector<1x16x4xf32>
    %40 = arith.select %30, %39, %38 : vector<1x16x4xf32>
    %cst_18 = arith.constant 0.000000e+00 : f32
    %41 = vector.broadcast %cst_18 : f32 to vector<10x1x4xf32>
    %c0_19 = arith.constant 0 : index
    %c0_20 = arith.constant 0 : index
    %c0_21 = arith.constant 0 : index
    %42 = vector.load %arg9[%c0_19, %c0_20, %c0_21] : memref<10x18x4xf32, #tpu.memory_space<vmem>>, vector<10x1x4xf32>
    tpu.vector_store %arg9[%c0_19, %c0_20, %c0_21], %41 {strides = array<i32>} : memref<10x18x4xf32, #tpu.memory_space<vmem>>, vector<10x1x4xf32>,
    %cst_22 = arith.constant 0.000000e+00 : f32
    %43 = vector.broadcast %cst_22 : f32 to vector<10x1x4xf32>
    %c0_23 = arith.constant 0 : index
    %c17 = arith.constant 17 : index
    %c0_24 = arith.constant 0 : index
    %44 = vector.load %arg9[%c0_23, %c17, %c0_24] : memref<10x18x4xf32, #tpu.memory_space<vmem>>, vector<10x1x4xf32>
    tpu.vector_store %arg9[%c0_23, %c17, %c0_24], %43 {strides = array<i32>} : memref<10x18x4xf32, #tpu.memory_space<vmem>>, vector<10x1x4xf32>,
    %c0_25 = arith.constant 0 : index
    %c1_26 = arith.constant 1 : index
    %c0_27 = arith.constant 0 : index
    %45 = vector.load %arg9[%c0_25, %c1_26, %c0_27] : memref<10x18x4xf32, #tpu.memory_space<vmem>>, vector<1x16x4xf32>
    tpu.vector_store %arg9[%c0_25, %c1_26, %c0_27], %29 {strides = array<i32>} : memref<10x18x4xf32, #tpu.memory_space<vmem>>, vector<1x16x4xf32>,
    %c1_28 = arith.constant 1 : index
    %c1_29 = arith.constant 1 : index
    %c0_30 = arith.constant 0 : index
    %46 = vector.load %arg9[%c1_28, %c1_29, %c0_30] : memref<10x18x4xf32, #tpu.memory_space<vmem>>, vector<8x16x4xf32>
    tpu.vector_store %arg9[%c1_28, %c1_29, %c0_30], %18 {strides = array<i32>} : memref<10x18x4xf32, #tpu.memory_space<vmem>>, vector<8x16x4xf32>,
    %c9 = arith.constant 9 : index
    %c1_31 = arith.constant 1 : index
    %c0_32 = arith.constant 0 : index
    %47 = vector.load %arg9[%c9, %c1_31, %c0_32] : memref<10x18x4xf32, #tpu.memory_space<vmem>>, vector<1x16x4xf32>
    tpu.vector_store %arg9[%c9, %c1_31, %c0_32], %40 {strides = array<i32>} : memref<10x18x4xf32, #tpu.memory_space<vmem>>, vector<1x16x4xf32>,
    %c0_33 = arith.constant 0 : index
    %c0_34 = arith.constant 0 : index
    %c0_35 = arith.constant 0 : index
    %48 = vector.load %arg9[%c0_33, %c0_34, %c0_35] : memref<10x18x4xf32, #tpu.memory_space<vmem>>, vector<8x16x4xf32>
    %c0_36 = arith.constant 0 : index
    %c1_37 = arith.constant 1 : index
    %c0_38 = arith.constant 0 : index
    %49 = vector.load %arg9[%c0_36, %c1_37, %c0_38] : memref<10x18x4xf32, #tpu.memory_space<vmem>>, vector<8x16x4xf32>
    %50 = tpu.concatenate %48, %49 in 2 : vector<8x16x4xf32>, vector<8x16x4xf32> -> vector<8x16x8xf32>
    %51 = arith.truncf %50 : vector<8x16x8xf32> to vector<8x16x8xbf16>
    %c0_39 = arith.constant 0 : index
    %c0_40 = arith.constant 0 : index
    %c0_41 = arith.constant 0 : index
    %52 = vector.load %arg10[%c0_39, %c0_40, %c0_41] : memref<8x16x36xbf16, #tpu.memory_space<vmem>>, vector<8x16x8xbf16>
    tpu.vector_store %arg10[%c0_39, %c0_40, %c0_41], %51 {strides = array<i32>} : memref<8x16x36xbf16, #tpu.memory_space<vmem>>, vector<8x16x8xbf16>,
    %c0_42 = arith.constant 0 : index
    %c2 = arith.constant 2 : index
    %c0_43 = arith.constant 0 : index
    %53 = vector.load %arg9[%c0_42, %c2, %c0_43] : memref<10x18x4xf32, #tpu.memory_space<vmem>>, vector<8x16x4xf32>
    %c1_44 = arith.constant 1 : index
    %c0_45 = arith.constant 0 : index
    %c0_46 = arith.constant 0 : index
    %54 = vector.load %arg9[%c1_44, %c0_45, %c0_46] : memref<10x18x4xf32, #tpu.memory_space<vmem>>, vector<8x16x4xf32>
    %55 = tpu.concatenate %53, %54 in 2 : vector<8x16x4xf32>, vector<8x16x4xf32> -> vector<8x16x8xf32>
    %56 = arith.truncf %55 : vector<8x16x8xf32> to vector<8x16x8xbf16>
    %c0_47 = arith.constant 0 : index
    %c0_48 = arith.constant 0 : index
    %c8 = arith.constant 8 : index
    %57 = vector.load %arg10[%c0_47, %c0_48, %c8] : memref<8x16x36xbf16, #tpu.memory_space<vmem>>, vector<8x16x8xbf16>
    tpu.vector_store %arg10[%c0_47, %c0_48, %c8], %56 {strides = array<i32>} : memref<8x16x36xbf16, #tpu.memory_space<vmem>>, vector<8x16x8xbf16>,
    %c1_49 = arith.constant 1 : index
    %c1_50 = arith.constant 1 : index
    %c0_51 = arith.constant 0 : index
    %58 = vector.load %arg9[%c1_49, %c1_50, %c0_51] : memref<10x18x4xf32, #tpu.memory_space<vmem>>, vector<8x16x4xf32>
    %c1_52 = arith.constant 1 : index
    %c2_53 = arith.constant 2 : index
    %c0_54 = arith.constant 0 : index
    %59 = vector.load %arg9[%c1_52, %c2_53, %c0_54] : memref<10x18x4xf32, #tpu.memory_space<vmem>>, vector<8x16x4xf32>
    %60 = tpu.concatenate %58, %59 in 2 : vector<8x16x4xf32>, vector<8x16x4xf32> -> vector<8x16x8xf32>
    %61 = arith.truncf %60 : vector<8x16x8xf32> to vector<8x16x8xbf16>
    %c0_55 = arith.constant 0 : index
    %c0_56 = arith.constant 0 : index
    %c16 = arith.constant 16 : index
    %62 = vector.load %arg10[%c0_55, %c0_56, %c16] : memref<8x16x36xbf16, #tpu.memory_space<vmem>>, vector<8x16x8xbf16>
    tpu.vector_store %arg10[%c0_55, %c0_56, %c16], %61 {strides = array<i32>} : memref<8x16x36xbf16, #tpu.memory_space<vmem>>, vector<8x16x8xbf16>,
    %c2_57 = arith.constant 2 : index
    %c0_58 = arith.constant 0 : index
    %c0_59 = arith.constant 0 : index
    %63 = vector.load %arg9[%c2_57, %c0_58, %c0_59] : memref<10x18x4xf32, #tpu.memory_space<vmem>>, vector<8x16x4xf32>
    %c2_60 = arith.constant 2 : index
    %c1_61 = arith.constant 1 : index
    %c0_62 = arith.constant 0 : index
    %64 = vector.load %arg9[%c2_60, %c1_61, %c0_62] : memref<10x18x4xf32, #tpu.memory_space<vmem>>, vector<8x16x4xf32>
    %65 = tpu.concatenate %63, %64 in 2 : vector<8x16x4xf32>, vector<8x16x4xf32> -> vector<8x16x8xf32>
    %66 = arith.truncf %65 : vector<8x16x8xf32> to vector<8x16x8xbf16>
    %c0_63 = arith.constant 0 : index
    %c0_64 = arith.constant 0 : index
    %c24 = arith.constant 24 : index
    %67 = vector.load %arg10[%c0_63, %c0_64, %c24] : memref<8x16x36xbf16, #tpu.memory_space<vmem>>, vector<8x16x8xbf16>
    tpu.vector_store %arg10[%c0_63, %c0_64, %c24], %66 {strides = array<i32>} : memref<8x16x36xbf16, #tpu.memory_space<vmem>>, vector<8x16x8xbf16>,
    %c2_65 = arith.constant 2 : index
    %c2_66 = arith.constant 2 : index
    %c0_67 = arith.constant 0 : index
    %68 = vector.load %arg9[%c2_65, %c2_66, %c0_67] : memref<10x18x4xf32, #tpu.memory_space<vmem>>, vector<8x16x4xf32>
    %69 = arith.truncf %68 : vector<8x16x4xf32> to vector<8x16x4xbf16>
    %c0_68 = arith.constant 0 : index
    %c0_69 = arith.constant 0 : index
    %c32 = arith.constant 32 : index
    %70 = vector.load %arg10[%c0_68, %c0_69, %c32] : memref<8x16x36xbf16, #tpu.memory_space<vmem>>, vector<8x16x4xbf16>
    tpu.vector_store %arg10[%c0_68, %c0_69, %c32], %69 {strides = array<i32>} : memref<8x16x36xbf16, #tpu.memory_space<vmem>>, vector<8x16x4xbf16>,
    %c0_70 = arith.constant 0 : index
    %c0_71 = arith.constant 0 : index
    %c0_72 = arith.constant 0 : index
    %71 = vector.load %arg10[%c0_70, %c0_71, %c0_72] : memref<8x16x36xbf16, #tpu.memory_space<vmem>>, vector<8x16x36xbf16>
    %72 = vector.shape_cast %71 : vector<8x16x36xbf16> to vector<128x36xbf16>
    %c0_73 = arith.constant 0 : index
    %c0_74 = arith.constant 0 : index
    %73 = vector.load %arg4[%c0_73, %c0_74] : memref<36x4xbf16, #tpu.memory_space<vmem>>, vector<36x4xbf16>
    %cst_75 = arith.constant dense<0.000000e+00> : vector<128x4xf32>
    %74 = tpu.matmul %72, %73, %cst_75 {dimension_numbers = #tpu.dot_dimension_numbers<[1], [0], [0], [1], [0, 0, 1, 1], [], []>} : vector<128x36xbf16>, vector<36x4xbf16>, vector<128x4xf32> -> vector<128x4xf32>
    %75 = vector.shape_cast %74 : vector<128x4xf32> to vector<1x8x16x4xf32>
    %76 = arith.truncf %75 : vector<1x8x16x4xf32> to vector<1x8x16x4xbf16>
    %c0_76 = arith.constant 0 : index
    %c0_77 = arith.constant 0 : index
    %c0_78 = arith.constant 0 : index
    %c0_79 = arith.constant 0 : index
    %77 = vector.load %arg7[%c0_76, %c0_77, %c0_78, %c0_79] : memref<1x8x16x4xbf16, #tpu.memory_space<vmem>>, vector<1x8x16x4xbf16>
    tpu.vector_store %arg7[%c0_76, %c0_77, %c0_78, %c0_79], %76 {strides = array<i32>} : memref<1x8x16x4xbf16, #tpu.memory_space<vmem>>, vector<1x8x16x4xbf16>,
    %cst_80 = arith.constant dense<0.000000e+00> : vector<4xf32>
    %78 = vector.multi_reduction <add>, %74, %cst_80 [0] : vector<128x4xf32> to vector<4xf32>
    %79 = vector.shape_cast %78 : vector<4xf32> to vector<1x4xf32>
    %80 = arith.mulf %74, %74 : vector<128x4xf32>
    %cst_81 = arith.constant dense<0.000000e+00> : vector<4xf32>
    %81 = vector.multi_reduction <add>, %80, %cst_81 [0] : vector<128x4xf32> to vector<4xf32>
    %82 = vector.shape_cast %81 : vector<4xf32> to vector<1x4xf32>
    %83 = tpu.concatenate %79, %82 in 0 : vector<1x4xf32>, vector<1x4xf32> -> vector<2x4xf32>
    %c0_82 = arith.constant 0 : index
    %c0_83 = arith.constant 0 : index
    %c0_84 = arith.constant 0 : index
    %c0_85 = arith.constant 0 : index
    %84 = vector.load %arg8[%c0_82, %c0_83, %c0_84, %c0_85] : memref<1x1x2x4xf32, #tpu.memory_space<vmem>>, vector<1x1x2x4xf32>
    %85 = vector.shape_cast %84 : vector<1x1x2x4xf32> to vector<2x4xf32>
    %86 = vector.shape_cast %83 : vector<2x4xf32> to vector<1x1x2x4xf32>
    tpu.vector_store %arg8[%c0_82, %c0_83, %c0_84, %c0_85], %86 {strides = array<i32>} : memref<1x1x2x4xf32, #tpu.memory_space<vmem>>, vector<1x1x2x4xf32>,
    return
  }
  func.func @transform_0(%arg0: i32, %arg1: i32) -> (i32, i32, i32, i32) {
    %c0_i32 = arith.constant 0 : i32
    %c0_i32_0 = arith.constant 0 : i32
    %c0_i32_1 = arith.constant 0 : i32
    return %arg0, %arg1, %c0_i32, %c0_i32_0 : i32, i32, i32, i32
  }
  func.func @transform_1(%arg0: i32, %arg1: i32) -> (i32, i32, i32, i32) {
    %c0_i32 = arith.constant 0 : i32
    %c0_i32_0 = arith.constant 0 : i32
    %c0_i32_1 = arith.constant 0 : i32
    return %arg0, %arg1, %c0_i32, %c0_i32_0 : i32, i32, i32, i32
  }
  func.func @transform_2(%arg0: i32, %arg1: i32) -> (i32, i32) {
    %c0_i32 = arith.constant 0 : i32
    %c0_i32_0 = arith.constant 0 : i32
    %c0_i32_1 = arith.constant 0 : i32
    return %c0_i32, %c0_i32_0 : i32, i32
  }
  func.func @transform_3(%arg0: i32, %arg1: i32) -> (i32, i32) {
    %c0_i32 = arith.constant 0 : i32
    %c0_i32_0 = arith.constant 0 : i32
    %c0_i32_1 = arith.constant 0 : i32
    return %c0_i32, %c0_i32_0 : i32, i32
  }
  func.func @transform_4(%arg0: i32, %arg1: i32) -> (i32, i32) {
    %c0_i32 = arith.constant 0 : i32
    %c0_i32_0 = arith.constant 0 : i32
    %c0_i32_1 = arith.constant 0 : i32
    return %c0_i32, %c0_i32_0 : i32, i32
  }
  func.func @transform_5(%arg0: i32, %arg1: i32) -> (i32, i32, i32, i32) {
    %c0_i32 = arith.constant 0 : i32
    %c0_i32_0 = arith.constant 0 : i32
    %c0_i32_1 = arith.constant 0 : i32
    return %arg0, %arg1, %c0_i32, %c0_i32_0 : i32, i32, i32, i32
  }
  func.func @transform_6(%arg0: i32, %arg1: i32) -> (i32, i32, i32, i32) {
    %c0_i32 = arith.constant 0 : i32
    %c0_i32_0 = arith.constant 0 : i32
    %c0_i32_1 = arith.constant 0 : i32
    return %arg0, %arg1, %c0_i32, %c0_i32_0 : i32, i32, i32, i32
  }
}

module attributes {stable_mosaic.version = 11 : i64} {
  func.func @_bn_residual_relu_kernel(%arg0: i32, %arg1: memref<32x64xbf16, #tpu.memory_space<vmem>>, %arg2: memref<32x64xf32, #tpu.memory_space<vmem>>, %arg3: memref<1x64xf32, #tpu.memory_space<vmem>>, %arg4: memref<1x64xf32, #tpu.memory_space<vmem>>, %arg5: memref<32x64xf32, #tpu.memory_space<vmem>>) attributes {dimension_semantics = [#tpu.dimension_semantics<parallel>], iteration_bounds = array<i64: 1>, scalar_prefetch = 0 : i64, scratch_operands = 0 : i64, tpu.core_type = #tpu.core_type<tc>, window_params = [{transform_indices = @transform_0, window_bounds = array<i64: 32, 64>}, {transform_indices = @transform_1, window_bounds = array<i64: 32, 64>}, {pipeline_mode = #tpu.pipeline_mode<synchronous>, transform_indices = @transform_2, window_bounds = array<i64: 1, 64>}, {pipeline_mode = #tpu.pipeline_mode<synchronous>, transform_indices = @transform_3, window_bounds = array<i64: 1, 64>}, {transform_indices = @transform_4, window_bounds = array<i64: 32, 64>}]} {
    %c0 = arith.constant 0 : index
    %c0_0 = arith.constant 0 : index
    %0 = vector.load %arg1[%c0, %c0_0] : memref<32x64xbf16, #tpu.memory_space<vmem>>, vector<32x64xbf16>
    %1 = arith.extf %0 : vector<32x64xbf16> to vector<32x64xf32>
    %c0_1 = arith.constant 0 : index
    %c0_2 = arith.constant 0 : index
    %2 = vector.load %arg3[%c0_1, %c0_2] : memref<1x64xf32, #tpu.memory_space<vmem>>, vector<1x64xf32>
    %3 = vector.broadcast %2 : vector<1x64xf32> to vector<32x64xf32>
    %4 = arith.mulf %1, %3 : vector<32x64xf32>
    %c0_3 = arith.constant 0 : index
    %c0_4 = arith.constant 0 : index
    %5 = vector.load %arg4[%c0_3, %c0_4] : memref<1x64xf32, #tpu.memory_space<vmem>>, vector<1x64xf32>
    %6 = vector.broadcast %5 : vector<1x64xf32> to vector<32x64xf32>
    %7 = arith.addf %4, %6 : vector<32x64xf32>
    %c0_5 = arith.constant 0 : index
    %c0_6 = arith.constant 0 : index
    %8 = vector.load %arg2[%c0_5, %c0_6] : memref<32x64xf32, #tpu.memory_space<vmem>>, vector<32x64xf32>
    %9 = arith.addf %7, %8 : vector<32x64xf32>
    %cst = arith.constant 0.000000e+00 : f32
    %10 = vector.broadcast %cst : f32 to vector<32x64xf32>
    %11 = arith.maximumf %9, %10 : vector<32x64xf32>
    %c0_7 = arith.constant 0 : index
    %c0_8 = arith.constant 0 : index
    %12 = vector.load %arg5[%c0_7, %c0_8] : memref<32x64xf32, #tpu.memory_space<vmem>>, vector<32x64xf32>
    tpu.vector_store %arg5[%c0_7, %c0_8], %11 {strides = array<i32>} : memref<32x64xf32, #tpu.memory_space<vmem>>, vector<32x64xf32>,
    return
  }
  func.func @transform_0(%arg0: i32) -> (i32, i32) {
    %c0_i32 = arith.constant 0 : i32
    %c0_i32_0 = arith.constant 0 : i32
    return %arg0, %c0_i32 : i32, i32
  }
  func.func @transform_1(%arg0: i32) -> (i32, i32) {
    %c0_i32 = arith.constant 0 : i32
    %c0_i32_0 = arith.constant 0 : i32
    return %arg0, %c0_i32 : i32, i32
  }
  func.func @transform_2(%arg0: i32) -> (i32, i32) {
    %c0_i32 = arith.constant 0 : i32
    %c0_i32_0 = arith.constant 0 : i32
    %c0_i32_1 = arith.constant 0 : i32
    return %c0_i32, %c0_i32_0 : i32, i32
  }
  func.func @transform_3(%arg0: i32) -> (i32, i32) {
    %c0_i32 = arith.constant 0 : i32
    %c0_i32_0 = arith.constant 0 : i32
    %c0_i32_1 = arith.constant 0 : i32
    return %c0_i32, %c0_i32_0 : i32, i32
  }
  func.func @transform_4(%arg0: i32) -> (i32, i32) {
    %c0_i32 = arith.constant 0 : i32
    %c0_i32_0 = arith.constant 0 : i32
    return %arg0, %c0_i32 : i32, i32
  }
}

</mosaic_0001>

<bundles_post_ra>
// kernel: tile.13
= control target key start
LH: loop header
LB: loop body
LE: loop exit
PB: predicated region body
PF: predicated region fallthrough
CT: control target
= control target key end

     0   :  { %s28_s0 = inlined_call_operand.vmem [shape: f32[4], index: 0, kind: input, shape index: {}]   ;;  %s29_s1 = inlined_call_operand.vmem [shape: f32[16,4], index: 1, kind: output, shape index: {}]  }
   0x1   :  { %v4_v0 = vld [vmem:[%s28_s0] ss:$0 sm:$0xff] }
   0x2   :  { %5 = vst [vmem:[%s29_s1] sm:$0xff] %v4_v0  ;;  %8 = vst [vmem:[%s29_s1 + $0x8] sm:$0xff] %v4_v0 }

// kernel: tile.14
= control target key start
LH: loop header
LB: loop body
LE: loop exit
PB: predicated region body
PF: predicated region fallthrough
CT: control target
= control target key end

     0   :  { %s131_s10 = smov 60   ;;  %s132_s11 = smov 52   ;;  %vm3_vm0 = vcmask 31744   ;;  %vm9_vm1 = vcmask 523744   ;;  %vm15_vm2 = vcmask 490944   ;;  %vm21_vm3 = vcmask 458144   ;;  %s207_s0 = inlined_call_operand.vmem [shape: f32[16,4], index: 0, kind: input, shape index: {}]   ;;  %s208_s1 = inlined_call_operand.vmem [shape: f32[1,64], index: 1, kind: output, shape index: {}]  }
   0x1   :  { %v101_v0 = vld [vmem:[%s207_s0 + $0xf] sm:$0x1]   ;;  %v103_v1 = vld [vmem:[%s207_s0 + $0xd] sm:$0x1]   ;;  %v102_v2 = vld [vmem:[%s207_s0 + $0xe] sm:$0x1]  }
   0x2   :  { %7 = vrot.lane.b32.xlu0 %v101_v0, %s131_s10  ;;  %19 = vrot.lane.b32.xlu1 %v103_v1, %s132_s11  ;;  %v104_v3 = vld [vmem:[%s207_s0 + $0xc] sm:$0x1]   ;;  %s133_s16 = smov 56   ;;  %s134_s17 = smov 48   ;;  %v105_v4 = vld [vmem:[%s207_s0 + $0xb] sm:$0x1]  }
   0x3   :  { %v106_v5 = vld [vmem:[%s207_s0 + $0xa] sm:$0x1]   ;;  %v2_v6 = vld [vmem:[%s207_s0] sm:$0x1]   ;;  %s135_s24 = smov 44   ;;  %s136_s25 = smov 40  }
   0x4   :  { %4 = vst.msk [vmem:[#allocation0] sm:$0x1] %vm3_vm0, %v2_v6   ;;  %v107_v7 = vld [vmem:[%s207_s0 + $0x9] sm:$0x1]   ;;  %v108_v8 = vld [vmem:[%s207_s0 + $0x8] sm:$0x1]  }
   0x5   :  { %s137_s30 = smov 36   ;;  %s138_s2 = smov 32   ;;  %v109_v9 = vld [vmem:[%s207_s0 + $0x7] sm:$0x1]   ;;  %v110_v10 = vld [vmem:[%s207_s0 + $0x6] sm:$0x1]  }
   0x6   :  { %13 = vrot.lane.b32.xlu0 %v102_v2, %s133_s16  ;;  %25 = vrot.lane.b32.xlu1 %v104_v3, %s134_s17  ;;  %s139_s7 = smov 28   ;;  %s140_s8 = smov 24   ;;  %v111_v11 = vld [vmem:[%s207_s0 + $0x5] sm:$0x1]   ;;  %v112_v12 = vld [vmem:[%s207_s0 + $0x4] sm:$0x1]  }
   0x7   :  { %s141_s13 = smov 20   ;;  %s142_s14 = smov 16   ;;  %v113_v13 = vld [vmem:[%s207_s0 + $0x3] sm:$0x1]   ;;  %v114_v14 = vld [vmem:[%s207_s0 + $0x2] sm:$0x1]  }
   0x8   :  { %s143_s19 = smov 12   ;;  %s144_s20 = smov 8   ;;  %v115_v15 = vld [vmem:[%s207_s0 + $0x1] sm:$0x1]   ;;  %vm27_vm4 = vcmask 425344   ;;  %vm33_vm5 = vcmask 392544  }
   0x9   :  { %s145_s0 = smov 4   ;;  %vm39_vm6 = vcmask 359744   ;;  %vm45_vm7 = vcmask 326944   ;;  %vm51_vm8 = vcmask 294144   ;;  %vm57_vm9 = vcmask 261344  }
   0xa   :  { %31 = vrot.lane.b32.xlu0 %v105_v4, %s135_s24  ;;  %37 = vrot.lane.b32.xlu1 %v106_v5, %s136_s25  ;;  %vm63_vm10 = vcmask 228544   ;;  %vm69_vm11 = vcmask 195744   ;;  %vm75_vm12 = vcmask 162944   ;;  %vm81_vm13 = vcmask 130144  }
   0xb   :  { %vm87_vm14 = vcmask 97344   ;;  %vm93_vm15 = vcmask 64544  }
   0xe   :  { %43 = vrot.lane.b32.xlu0 %v107_v7, %s137_s30  ;;  %49 = vrot.lane.b32.xlu1 %v108_v8, %s138_s2 }
  0x12   :  { %55 = vrot.lane.b32.xlu0 %v109_v9, %s139_s7  ;;  %61 = vrot.lane.b32.xlu1 %v110_v10, %s140_s8 }
  0x16   :  { %67 = vrot.lane.b32.xlu0 %v111_v11, %s141_s13  ;;  %73 = vrot.lane.b32.xlu1 %v112_v12, %s142_s14 }
  0x1a   :  { %79 = vrot.lane.b32.xlu0 %v113_v13, %s143_s19  ;;  %85 = vrot.lane.b32.xlu1 %v114_v14, %s144_s20 }
  0x1e   :  { %91 = vrot.lane.b32.xlu0 %v115_v15, %s145_s0 }
  0x74   :  { %v8_v16 = vpop.permute.xlu0 %7   ;;  %v20_v17 = vpop.permute.xlu1 %19  }
  0x75   :  { %10 = vst.msk [vmem:[#allocation0] sm:$0x1] %vm9_vm1, %v8_v16  }
  0x78   :  { %v14_v18 = vpop.permute.xlu0 %13   ;;  %v26_v19 = vpop.permute.xlu1 %25  }
  0x79   :  { %16 = vst.msk [vmem:[#allocation0] sm:$0x1] %vm15_vm2, %v14_v18  }
  0x7a   :  { %22 = vst.msk [vmem:[#allocation0] sm:$0x1] %vm21_vm3, %v20_v17  }
  0x7b   :  { %28 = vst.msk [vmem:[#allocation0] sm:$0x1] %vm27_vm4, %v26_v19  }
  0x7c   :  { %v32_v20 = vpop.permute.xlu0 %31   ;;  %v38_v21 = vpop.permute.xlu1 %37  }
  0x7d   :  { %34 = vst.msk [vmem:[#allocation0] sm:$0x1] %vm33_vm5, %v32_v20  }
  0x7e   :  { %40 = vst.msk [vmem:[#allocation0] sm:$0x1] %vm39_vm6, %v38_v21  }
  0x80   :  { %v44_v22 = vpop.permute.xlu0 %43   ;;  %v50_v23 = vpop.permute.xlu1 %49  }
  0x81   :  { %46 = vst.msk [vmem:[#allocation0] sm:$0x1] %vm45_vm7, %v44_v22  }
  0x82   :  { %52 = vst.msk [vmem:[#allocation0] sm:$0x1] %vm51_vm8, %v50_v23  }
  0x84   :  { %v56_v24 = vpop.permute.xlu0 %55   ;;  %v62_v25 = vpop.permute.xlu1 %61  }
  0x85   :  { %58 = vst.msk [vmem:[#allocation0] sm:$0x1] %vm57_vm9, %v56_v24  }
  0x86   :  { %64 = vst.msk [vmem:[#allocation0] sm:$0x1] %vm63_vm10, %v62_v25  }
  0x88   :  { %v68_v26 = vpop.permute.xlu0 %67   ;;  %v74_v27 = vpop.permute.xlu1 %73  }
  0x89   :  { %70 = vst.msk [vmem:[#allocation0] sm:$0x1] %vm69_vm11, %v68_v26  }
  0x8a   :  { %76 = vst.msk [vmem:[#allocation0] sm:$0x1] %vm75_vm12, %v74_v27  }
  0x8c   :  { %v80_v28 = vpop.permute.xlu0 %79   ;;  %v86_v29 = vpop.permute.xlu1 %85  }
  0x8d   :  { %82 = vst.msk [vmem:[#allocation0] sm:$0x1] %vm81_vm13, %v80_v28  }
  0x8e   :  { %88 = vst.msk [vmem:[#allocation0] sm:$0x1] %vm87_vm14, %v86_v29  }
  0x90   :  { %v92_v30 = vpop.permute.xlu0 %91  }
  0x91   :  { %94 = vst.msk [vmem:[#allocation0] sm:$0x1] %vm93_vm15, %v92_v30  }
  0x98   :  { %v98_v31 = vld [vmem:[#allocation0] sm:$0x1] }
  0x99   :  { %100 = vst [vmem:[%s208_s1] sm:$0x1] %v98_v31 }

// kernel: basic_block_forward.5
= control target key start
LH: loop header
LB: loop body
LE: loop exit
PB: predicated region body
PF: predicated region fallthrough
CT: control target
= control target key end

     0   :  { %vm59_vm0 = vcmask 523264   ;;  %s140_s0 = inlined_call_operand.vmem [shape: bf16[32,64], index: 0, kind: input, shape index: {}]   ;;  %s141_s2 = inlined_call_operand.vmem [shape: f32[1,64], index: 2, kind: input, shape index: {}]   ;;  %s142_s3 = inlined_call_operand.vmem [shape: f32[1,64], index: 3, kind: input, shape index: {}]   ;;  %s143_s1 = inlined_call_operand.vmem [shape: f32[32,64], index: 1, kind: input, shape index: {}]   ;;  %s144_s4 = inlined_call_operand.vmem [shape: f32[32,64], index: 4, kind: output, shape index: {}]  }
   0x1   :  { %v71_v0 = vld [vmem:[%s140_s0] sm:$0xff]   ;;  %v78_v4 = vld [vmem:[%s140_s0 + $0x8] sm:$0xff]   ;;  %v49_v16 = vld [vmem:[%s143_s1 + $0x10] sm:$0xff] }
   0x2   :  { %v68_v1 = vld [vmem:[%s141_s2] ss:$0 sm:$0xff]  ;;  %v72_v2 = vunpack.c.l.bf16 %v71_v0  ;;  %v73_v3 = vunpack.c.h.bf16 %v71_v0  ;;  %v76_v6 = vunpack.c.l.bf16 %v78_v4  ;;  %v77_v7 = vunpack.c.h.bf16 %v78_v4  ;;  %v48_v11 = vld [vmem:[%s143_s1 + $0x8] sm:$0xff]  ;;  %v50_v17 = vld [vmem:[%s143_s1 + $0x18] sm:$0xff] }
   0x3   :  { %v69_v5 = vld [vmem:[%s142_s3] ss:$0 sm:$0xff] }
   0x4   :  { %v32_v8 = vmul.f32 %v72_v2, %v68_v1  ;;  %v33_v9 = vmul.f32 %v73_v3, %v68_v1  ;;  %v47_v10 = vld [vmem:[%s143_s1] sm:$0xff]  ;;  %v34_v12 = vmul.f32 %v76_v6, %v68_v1  ;;  %v35_v13 = vmul.f32 %v77_v7, %v68_v1 }
   0x6   :  { %v43_v14 = vadd.f32 %v69_v5, %v32_v8  ;;  %v44_v15 = vadd.f32 %v69_v5, %v33_v9  ;;  %v45_v18 = vadd.f32 %v69_v5, %v34_v12  ;;  %v46_v19 = vadd.f32 %v69_v5, %v35_v13 }
   0x8   :  { %v51_v20 = vadd.f32 %v47_v10, %v43_v14  ;;  %v52_v21 = vadd.f32 %v48_v11, %v44_v15  ;;  %v53_v22 = vadd.f32 %v49_v16, %v45_v18  ;;  %v54_v23 = vadd.f32 %v50_v17, %v46_v19 }
   0xa   :  { %v55_v24 = vmax.f32 %v51_v20, 0.0  ;;  %v56_v25 = vmax.f32 %v52_v21, 0.0  ;;  %v57_v26 = vmax.f32 %v53_v22, 0.0  ;;  %v58_v27 = vmax.f32 %v54_v23, 0.0 }
   0xc   :  { %60 = vst.msk [vmem:[%s144_s4] sm:$0xff] %vm59_vm0, %v55_v24  ;;  %61 = vst.msk [vmem:[%s144_s4 + $0x8] sm:$0xff] %vm59_vm0, %v56_v25 }
   0xd   :  { %62 = vst.msk [vmem:[%s144_s4 + $0x10] sm:$0xff] %vm59_vm0, %v57_v26  ;;  %63 = vst.msk [vmem:[%s144_s4 + $0x18] sm:$0xff] %vm59_vm0, %v58_v27 }

// kernel: basic_block_forward.3
= control target key start
LH: loop header
LB: loop body
LE: loop exit
PB: predicated region body
PF: predicated region fallthrough
CT: control target
= control target key end

     0   :  { %s1929_s15 = smov 0   ;;  %s1931_s16 = smov 0   ;;  %s2549_s0 = inlined_call_operand.vmem [shape: f32[2,16,16,4], index: 0, kind: input, shape index: {}]   ;;  %s2550_s1 = inlined_call_operand.vmem [shape: f32[2,4,16,4], index: 1, kind: input, shape index: {}]   ;;  %s2551_s2 = inlined_call_operand.vmem [shape: bf16[36,4], index: 2, kind: input, shape index: {}]   ;;  %s2552_s3 = inlined_call_operand.vmem [shape: bf16[2,16,16,4], index: 3, kind: output, shape index: {0}]   ;;  %s2553_s4 = inlined_call_operand.vmem [shape: f32[2,2,2,4], index: 4, kind: output, shape index: {1}]  }
   0x1   :  { %s1933_s17 = smov 0   ;;  %s1935_s18 = smov 0  }
   0x2   :  { %s1937_s19 = smov 0  }
   0x3 LB: > { %s24_s20 = sadd.s32 1, %s1888_s17  ;;  %s27_s21 = sadd.s32 1, %s1892_s18  ;;  %s1896_s19 = sphi %s1937_s19, %s15_s19   ;;  %s1892_s18 = sphi %s1935_s18, %s2562_s18   ;;  %s1888_s17 = sphi %s1933_s17, %s2561_s17   ;;  %s1884_s16 = sphi %s1931_s16, %s2560_s16   ;;  %s1880_s15 = sphi %s1929_s15, %s2559_s15  }
   0x4   : > { %p25_p0 = scmp.ge.s32.totalorder %s24_s20, 2  ;;  %p1546_p1 = scmp.ge.s32.totalorder %s1896_s19, 1 }
   0x5   : > { %p207_p2 = scmp.lt.s32.totalorder %s1896_s19, 5 }
   0x6   : > { %s2564_s20 = smov (%p25_p0, %s24_s20), 0  ;;  %s2566_s21 = smov (!%p25_p0, %s27_s21), %s1892_s18 }
   0x7   : > { %p208_p3 = pnand %p1546_p1, %p207_p2  ;;  %p29_p4 = scmp.ge.s32.totalorder %s2566_s21, 2 }
   0x9   : > { %s2568_s21 = smov (%p29_p4, %s2566_s21), 0  ;;  %211 = sbr.rel (%p208_p3) target bundleno = 570 (0x23a), region = 32 }
  0x10   : > { %s1547_s22 = sshll.u32 %s1880_s15, 3  ;;  %p262_p5 = scmp.lt.s32.totalorder %s1884_s16, 1  ;;  %vm324_vm0 = vcmask 24576   ;;  %v1898_v0 = vmov 0.0   ;;  %vm345_vm1 = vcmask 31744   ;;  %vm1099_vm2 = vcmask 1041408  }
  0x11   : > { %p1965_p6 = scmp.lt.s32.totalorder %s1547_s22, 15  ;;  %326 = vst.msk [vmem:[#allocation2 + $0x18] sm:$0x1] %vm324_vm0, %v1898_v0  ;;  %325 = vst.msk [vmem:[#allocation2] sm:$0x1] %vm324_vm0, %v1898_v0  ;;  %s1551_s25 = sshll.u32 %s1880_s15, 1 }
  0x12   : > { %327 = vst.msk [vmem:[#allocation2 + $0x30] sm:$0x1] %vm324_vm0, %v1898_v0  ;;  %328 = vst.msk [vmem:[#allocation2 + $0x48] sm:$0x1] %vm324_vm0, %v1898_v0  ;;  %s2570_s16 = smov (!%p262_p5, %s1884_s16), 1  ;;  %p275_p7 = scmp.lt.s32.totalorder %s1551_s25, 3 }
  0x13   : > { %329 = vst.msk [vmem:[#allocation2 + $0x60] sm:$0x1] %vm324_vm0, %v1898_v0  ;;  %330 = vst.msk [vmem:[#allocation2 + $0x78] sm:$0x1] %vm324_vm0, %v1898_v0  ;;  %s2572_s22 = smov (!%p1965_p6, %s1547_s22), 15  ;;  %s1549_s24 = sshll.u32 %s2570_s16, 5 }
  0x14   : > { %331 = vst.msk [vmem:[#allocation2 + $0x90] sm:$0x1] %vm324_vm0, %v1898_v0  ;;  %332 = vst.msk [vmem:[#allocation2 + $0xa8] sm:$0x1] %vm324_vm0, %v1898_v0  ;;  %s1548_s26 = sshll.u32 %s2572_s22, 1  ;;  %s1553_s6 = sshll.u32 %s2570_s16, 3 }
  0x15   : > { %333 = vst.msk [vmem:[#allocation2 + $0xc0] sm:$0x1] %vm324_vm0, %v1898_v0  ;;  %334 = vst.msk [vmem:[#allocation2 + $0xd8] sm:$0x1] %vm324_vm0, %v1898_v0  ;;  %s1998_s27 = sadd.s32 %s1549_s24, %s1548_s26  ;;  %s2574_s25 = smov (!%p275_p7, %s1551_s25), 3  ;;  %vm488_vm3 = vcmask 64512  }
  0x16   : > { %335 = vst.msk [vmem:[#allocation2 + $0x11] sm:$0x1] %vm324_vm0, %v1898_v0  ;;  %336 = vst.msk [vmem:[#allocation2 + $0x29] sm:$0x1] %vm324_vm0, %v1898_v0  ;;  %s1550_s28 = sshll.u32 %s1998_s27, 3  ;;  %s1552_s7 = sshll.u32 %s2574_s25, 1 }
  0x17   : > { %337 = vst.msk [vmem:[#allocation2 + $0x41] sm:$0x1] %vm324_vm0, %v1898_v0  ;;  %338 = vst.msk [vmem:[#allocation2 + $0x59] sm:$0x1] %vm324_vm0, %v1898_v0  ;;  %s2004_s5 = scalar_lea.vmem %s2549_s0, %s1550_s28  ;;  %s279_s8 = sadd.s32 %s1553_s6, %s1552_s7  ;;  %vm649_vm4 = vcmask 130112   ;;  %vm810_vm5 = vcmask 195712  }
  0x18   : > { %339 = vst.msk [vmem:[#allocation2 + $0x71] sm:$0x1] %vm324_vm0, %v1898_v0  ;;  %340 = vst.msk [vmem:[#allocation2 + $0x89] sm:$0x1] %vm324_vm0, %v1898_v0  ;;  %v303_v1 = vld [vmem:[%s2004_s5] sm:$0xff]  ;;  %v304_v2 = vld [vmem:[%s2004_s5 + $0x8] sm:$0xff] }
  0x19   : > { %341 = vst.msk [vmem:[#allocation2 + $0xa1] sm:$0x1] %vm324_vm0, %v1898_v0  ;;  %342 = vst.msk [vmem:[#allocation2 + $0xb9] sm:$0x1] %vm324_vm0, %v1898_v0  ;;  %v305_v3 = vld [vmem:[%s2004_s5 + $0x10] sm:$0xff]  ;;  %v306_v4 = vld [vmem:[%s2004_s5 + $0x18] sm:$0xff] }
  0x1a   : > { %343 = vst.msk [vmem:[#allocation2 + $0xd1] sm:$0x1] %vm324_vm0, %v1898_v0  ;;  %344 = vst.msk [vmem:[#allocation2 + $0xe9] sm:$0x1] %vm324_vm0, %v1898_v0  ;;  %v307_v5 = vld [vmem:[%s2004_s5 + $0x20] sm:$0xff]  ;;  %v308_v6 = vld [vmem:[%s2004_s5 + $0x28] sm:$0xff] }
  0x1b   : > { %349 = vst.msk [vmem:[#allocation2 + $0x19] sm:$0xff] %vm345_vm1, %v303_v1  ;;  %350 = vst.msk [vmem:[#allocation2 + $0x21] sm:$0xff] %vm345_vm1, %v304_v2  ;;  %v309_v7 = vld [vmem:[%s2004_s5 + $0x30] sm:$0xff]  ;;  %v310_v8 = vld [vmem:[%s2004_s5 + $0x38] sm:$0xff]  ;;  %s1554_s9 = sshll.u32 %s279_s8, 3  ;;  %s1899_s13 = smov 4  }
  0x1c   : > { %351 = vst.msk [vmem:[#allocation2 + $0x31] sm:$0xff] %vm345_vm1, %v305_v3  ;;  %352 = vst.msk [vmem:[#allocation2 + $0x39] sm:$0xff] %vm345_vm1, %v306_v4  ;;  %v311_v9 = vld [vmem:[%s2004_s5 + $0x40] sm:$0xff]  ;;  %v312_v10 = vld [vmem:[%s2004_s5 + $0x48] sm:$0xff]  ;;  %s281_s12 = scalar_lea.vmem %s2550_s1, %s1554_s9  ;;  %s1900_s14 = smov 32   ;;  %vm972_vm6 = vcmask 261312  }
  0x1d   : > { %353 = vst.msk [vmem:[#allocation2 + $0x49] sm:$0xff] %vm345_vm1, %v307_v5  ;;  %354 = vst.msk [vmem:[#allocation2 + $0x51] sm:$0xff] %vm345_vm1, %v308_v6  ;;  %v313_v11 = vld [vmem:[%s2004_s5 + $0x50] sm:$0xff]  ;;  %v314_v12 = vld [vmem:[%s2004_s5 + $0x58] sm:$0xff]  ;;  %s1901_s26 = smov 8   ;;  %s1902_s30 = smov 16  }
  0x1e   : > { %355 = vst.msk [vmem:[#allocation2 + $0x61] sm:$0xff] %vm345_vm1, %v309_v7  ;;  %356 = vst.msk [vmem:[#allocation2 + $0x69] sm:$0xff] %vm345_vm1, %v310_v8  ;;  %v315_v13 = vld [vmem:[%s2004_s5 + $0x60] sm:$0xff]  ;;  %v316_v14 = vld [vmem:[%s2004_s5 + $0x68] sm:$0xff]  ;;  %vm1037_vm7 = vcmask 294144   ;;  %vm1074_vm8 = vcmask 293888  }
  0x1f   : > { %357 = vst.msk [vmem:[#allocation2 + $0x79] sm:$0xff] %vm345_vm1, %v311_v9  ;;  %358 = vst.msk [vmem:[#allocation2 + $0x81] sm:$0xff] %vm345_vm1, %v312_v10  ;;  %v317_v15 = vld [vmem:[%s2004_s5 + $0x70] sm:$0xff]  ;;  %v318_v16 = vld [vmem:[%s2004_s5 + $0x78] sm:$0xff]  ;;  %s1903_s5 = smov 24   ;;  %s1558_s6 = sshll.u32 %s1998_s27, 2 }
  0x20   : > { %359 = vst.msk [vmem:[#allocation2 + $0x91] sm:$0xff] %vm345_vm1, %v313_v11  ;;  %360 = vst.msk [vmem:[#allocation2 + $0x99] sm:$0xff] %vm345_vm1, %v314_v12  ;;  %v1561_v17 = vld [vmem:[%s281_s12 + $0x10] sm:$0xff]  ;;  %v1562_v18 = vld [vmem:[%s281_s12 + $0x18] sm:$0xff]  ;;  %s2462_s9 = scalar_lea.vmem %s2552_s3, %s1558_s6  ;;  %vm1264_vm9 = vcmask 27648   ;;  %p296_p8 = scmp.lt.s32.totalorder %s1880_s15, 1 }
  0x21   : > { %361 = vst.msk [vmem:[#allocation2 + $0xa9] sm:$0xff] %vm345_vm1, %v315_v13  ;;  %362 = vst.msk [vmem:[#allocation2 + $0xb1] sm:$0xff] %vm345_vm1, %v316_v14  ;;  %v319_v19 = vld [vmem:[%s281_s12] sm:$0xff]  ;;  %v320_v20 = vld [vmem:[%s281_s12 + $0x8] sm:$0xff]  ;;  %s1559_s27 = sshll.u32 %s2570_s16, 1  ;;  %vm1371_vm10 = vcmask 1040384  }
  0x22   : > { %363 = vst.msk [vmem:[#allocation2 + $0xc1] sm:$0xff] %vm345_vm1, %v317_v15  ;;  %364 = vst.msk [vmem:[#allocation2 + $0xc9] sm:$0xff] %vm345_vm1, %v318_v16  ;;  %v2045_v21 = vld [vmem:[#allocation2 + $0x18] sm:$0xff]  ;;  %v2047_v22 = vld [vmem:[#allocation2 + $0x20] sm:$0xff]  ;;  %s2576_s15 = smov (!%p296_p8, %s1880_s15), 1  ;;  %vm1373_vm11 = vcmask 25600  }
  0x23   : > { %366 = vst.msk [vmem:[#allocation2 + $0xd9] sm:$0xff] %vm345_vm1, %v1561_v17  ;;  %367 = vst.msk [vmem:[#allocation2 + $0xe1] sm:$0xff] %vm345_vm1, %v1562_v18  ;;  %v2049_v23 = vld [vmem:[#allocation2 + $0x1a] sm:$0xff]  ;;  %v1695_v24 = vpack.i.bf16 %v2047_v22, %v2045_v21  ;;  %v2054_v25 = vld [vmem:[#allocation2 + $0x22] sm:$0xff]  ;;  %s299_s10 = sadd.s32 %s1559_s27, %s2576_s15 }
  0x24   : > { %346 = vst.msk [vmem:[#allocation2 + $0x1] sm:$0xff] %vm345_vm1, %v319_v19  ;;  %2556 = vst [vmem:[#allocation4_spill] sm:$0xff] %v2047_v22  ;;  %v2056_v26 = vld [vmem:[#allocation2 + $0x30] sm:$0xff]  ;;  %v2058_v27 = vld [vmem:[#allocation2 + $0x38] sm:$0xff]  ;;  %v1705_v28 = vpack.i.bf16 %v2054_v25, %v2049_v23  ;;  %s1560_s11 = sshll.u32 %s299_s10, 1 }
  0x25   : > { %347 = vst.msk [vmem:[#allocation2 + $0x9] sm:$0xff] %vm345_vm1, %v320_v20  ;;  %v2062_v29 = vld [vmem:[#allocation2 + $0x32] sm:$0xff]  ;;  %v2064_v30 = vld [vmem:[#allocation2 + $0x3a] sm:$0xff]  ;;  %1696 = vrot.lane.b32.xlu0 %v1695_v24, %s1899_s13  ;;  %v1700_v31 = vpack.i.bf16 %v2058_v27, %v2056_v26  ;;  %v2076_v35 = vld [vmem:[#allocation2 + $0x49] sm:$0xff] }
  0x26   : > { %1706 = vrot.lane.b32.xlu1 %v1705_v28, %s1899_s13  ;;  %v1710_v32 = vpack.i.bf16 %v2064_v30, %v2062_v29  ;;  %v2072_v33 = vld [vmem:[#allocation2 + $0x31] sm:$0xff]  ;;  %v2074_v34 = vld [vmem:[#allocation2 + $0x39] sm:$0xff]  ;;  %v2090_v39 = vld [vmem:[#allocation2 + $0x48] sm:$0xff] }
  0x27   : > { %v2078_v36 = vld [vmem:[#allocation2 + $0x51] sm:$0xff]  ;;  %v2083_v37 = vpack.i.bf16 %v2074_v34, %v2072_v33  ;;  %v2094_v41 = vld [vmem:[#allocation2 + $0x60] sm:$0xff]  ;;  %v2096_v42 = vld [vmem:[#allocation2 + $0x68] sm:$0xff] }
  0x28   : > { %v2088_v38 = vpack.i.bf16 %v2078_v36, %v2076_v35  ;;  %v2092_v40 = vld [vmem:[#allocation2 + $0x50] sm:$0xff]  ;;  %v1730_v44 = vpack.i.bf16 %v2096_v42, %v2094_v41  ;;  %v2110_v47 = vld [vmem:[#allocation2 + $0x62] sm:$0xff]  ;;  %v2124_v53 = vld [vmem:[#allocation2 + $0x79] sm:$0xff] }
  0x29   : > { %1701 = vrot.lane.b32.xlu0 %v1700_v31, %s1899_s13  ;;  %v1725_v43 = vpack.i.bf16 %v2092_v40, %v2090_v39  ;;  %v2106_v45 = vld [vmem:[#allocation2 + $0x4a] sm:$0xff]  ;;  %v2108_v46 = vld [vmem:[#allocation2 + $0x52] sm:$0xff]  ;;  %v2120_v51 = vld [vmem:[#allocation2 + $0x61] sm:$0xff] }
  0x2a   : > { %1711 = vrot.lane.b32.xlu1 %v1710_v32, %s1899_s13  ;;  %v2112_v48 = vld [vmem:[#allocation2 + $0x6a] sm:$0xff]  ;;  %v1735_v49 = vpack.i.bf16 %v2108_v46, %v2106_v45  ;;  %v2126_v54 = vld [vmem:[#allocation2 + $0x81] sm:$0xff]  ;;  %v2138_v57 = vld [vmem:[#allocation2 + $0x78] sm:$0xff] }
  0x2b   : > { %v1740_v50 = vpack.i.bf16 %v2112_v48, %v2110_v47  ;;  %v2122_v52 = vld [vmem:[#allocation2 + $0x69] sm:$0xff]  ;;  %v2136_v56 = vpack.i.bf16 %v2126_v54, %v2124_v53  ;;  %v2140_v58 = vld [vmem:[#allocation2 + $0x80] sm:$0xff]  ;;  %v2144_v60 = vld [vmem:[#allocation2 + $0x98] sm:$0xff] }
  0x2c   : > { %v2131_v55 = vpack.i.bf16 %v2122_v52, %v2120_v51  ;;  %v2142_v59 = vld [vmem:[#allocation2 + $0x90] sm:$0xff]  ;;  %v1755_v61 = vpack.i.bf16 %v2140_v58, %v2138_v57  ;;  %v2154_v63 = vld [vmem:[#allocation2 + $0x7a] sm:$0xff]  ;;  %v2156_v0 = vld [vmem:[#allocation2 + $0x82] sm:$0xff] }
  0x2d   : > { %1716 = vrot.lane.b32.xlu0 %v2083_v37, %s1899_s13  ;;  %v1760_v62 = vpack.i.bf16 %v2144_v60, %v2142_v59  ;;  %v2158_v1 = vld [vmem:[#allocation2 + $0x92] sm:$0xff]  ;;  %v2160_v2 = vld [vmem:[#allocation2 + $0x9a] sm:$0xff]  ;;  %v1765_v3 = vpack.i.bf16 %v2156_v0, %v2154_v63  ;;  %v2172_v7 = vld [vmem:[#allocation2 + $0xa9] sm:$0xff] }
  0x2e   : > { %1721 = vrot.lane.b32.xlu1 %v2088_v38, %s1899_s13  ;;  %v1770_v4 = vpack.i.bf16 %v2160_v2, %v2158_v1  ;;  %v2168_v5 = vld [vmem:[#allocation2 + $0x91] sm:$0xff]  ;;  %v2170_v6 = vld [vmem:[#allocation2 + $0x99] sm:$0xff]  ;;  %v2182_v11 = vld [vmem:[#allocation2 + $0xa8] sm:$0xff] }
  0x2f   : > { %v2174_v8 = vld [vmem:[#allocation2 + $0xb1] sm:$0xff]  ;;  %v1775_v9 = vpack.i.bf16 %v2170_v6, %v2168_v5  ;;  %v2186_v13 = vld [vmem:[#allocation2 + $0xc0] sm:$0xff]  ;;  %v2188_v14 = vld [vmem:[#allocation2 + $0xc8] sm:$0xff] }
  0x30   : > { %v1780_v10 = vpack.i.bf16 %v2174_v8, %v2172_v7  ;;  %v2184_v12 = vld [vmem:[#allocation2 + $0xb0] sm:$0xff]  ;;  %v1790_v16 = vpack.i.bf16 %v2188_v14, %v2186_v13  ;;  %v2200_v19 = vld [vmem:[#allocation2 + $0xc2] sm:$0xff] }
  0x31   : > { %1726 = vrot.lane.b32.xlu0 %v1725_v43, %s1899_s13  ;;  %v1785_v15 = vpack.i.bf16 %v2184_v12, %v2182_v11  ;;  %v2196_v17 = vld [vmem:[#allocation2 + $0xaa] sm:$0xff]  ;;  %v2198_v18 = vld [vmem:[#allocation2 + $0xb2] sm:$0xff]  ;;  %v2210_v31 = vld [vmem:[#allocation2 + $0xc1] sm:$0xff] }
  0x32   : > { %1731 = vrot.lane.b32.xlu1 %v1730_v44, %s1899_s13  ;;  %v2202_v20 = vld [vmem:[#allocation2 + $0xca] sm:$0xff]  ;;  %v1795_v24 = vpack.i.bf16 %v2198_v18, %v2196_v17  ;;  %v850_v43 = vld [vmem:[#allocation2 + $0xd9] sm:$0xff]  ;;  %v851_v44 = vld [vmem:[#allocation2 + $0xe1] sm:$0xff] }
  0x33   : > { %v1800_v28 = vpack.i.bf16 %v2202_v20, %v2200_v19  ;;  %v2212_v32 = vld [vmem:[#allocation2 + $0xc9] sm:$0xff] }
  0x35   : > { %1736 = vrot.lane.b32.xlu0 %v1735_v49, %s1899_s13  ;;  %v1805_v49 = vpack.i.bf16 %v2212_v32, %v2210_v31 }
  0x36   : > { %1741 = vrot.lane.b32.xlu1 %v1740_v50, %s1899_s13 }
  0x39   : > { %1746 = vrot.lane.b32.xlu0 %v2131_v55, %s1899_s13 }
  0x3a   : > { %1751 = vrot.lane.b32.xlu1 %v2136_v56, %s1899_s13 }
  0x3d   : > { %1756 = vrot.lane.b32.xlu0 %v1755_v61, %s1899_s13  ;;  %v1810_v61 = vpack.i.bf16 %v851_v44, %v850_v43  ;;  %v999_v43 = vpack.c.bf16 %v2112_v48, %v2110_v47  ;;  %v497_v44 = vld [vmem:[#allocation2 + $0x2] sm:$0xff] }
  0x3e   : > { %1761 = vrot.lane.b32.xlu1 %v1760_v62, %s1899_s13  ;;  %v384_v62 = vld [vmem:[#allocation2 + $0x1] sm:$0xff] }
  0x41   : > { %1766 = vrot.lane.b32.xlu0 %v1765_v3, %s1899_s13  ;;  %v385_v3 = vld [vmem:[#allocation2 + $0x9] sm:$0xff] }
  0x42   : > { %1771 = vrot.lane.b32.xlu1 %v1770_v4, %s1899_s13  ;;  %v386_v4 = vld [vmem:[#allocation2 + $0x19] sm:$0xff] }
  0x45   : > { %1776 = vrot.lane.b32.xlu0 %v1775_v9, %s1899_s13 }
  0x46   : > { %1781 = vrot.lane.b32.xlu1 %v1780_v10, %s1899_s13 }
  0x49   : > { %1786 = vrot.lane.b32.xlu0 %v1785_v15, %s1899_s13  ;;  %v387_v15 = vld [vmem:[#allocation2 + $0x21] sm:$0xff] }
  0x4a   : > { %1791 = vrot.lane.b32.xlu1 %v1790_v16, %s1899_s13  ;;  %v1815_v16 = vpack.i.bf16 %v385_v3, %v384_v62  ;;  %v1820_v22 = vpack.i.bf16 %v387_v15, %v386_v4 }
  0x4d   : > { %1796 = vrot.lane.b32.xlu0 %v1795_v24, %s1899_s13  ;;  %v997_v24 = vpack.c.bf16 %v2064_v30, %v2062_v29 }
  0x4e   : > { %1801 = vrot.lane.b32.xlu1 %v1800_v28, %s1899_s13  ;;  %v998_v28 = vpack.c.bf16 %v2108_v46, %v2106_v45 }
  0x51   : > { %1806 = vrot.lane.b32.xlu0 %v1805_v49, %s1899_s13  ;;  %v498_v49 = vld [vmem:[#allocation2 + $0xa] sm:$0xff] }
  0x52   : > { %1811 = vrot.lane.b32.xlu1 %v1810_v61, %s1899_s13  ;;  %v1855_v61 = vld [vmem:[%s2551_s2] sm:$0xff]  }
  0x53   : > { %1619 = vmatprep.subr.bf16.mxu0 %v1855_v61  ;;  %1641 = vmatprep.subr.bf16.mxu1 %v1855_v61 }
  0x54   : > { %1620 = vmatpush3.bf16.msra.mxu0 %v1855_v61  ;;  %1644 = vmatpush3.bf16.msra.mxu1 %v1855_v61 }
  0x55   : > { %1816 = vrot.lane.b32.xlu0 %v1815_v16, %s1899_s13 }
  0x56   : > { %1821 = vrot.lane.b32.xlu1 %v1820_v22, %s1899_s13  ;;  %v1000_v22 = vpack.c.bf16 %v2156_v0, %v2154_v63 }
  0x59   : > { %1013 = vrot.lane.b32.xlu0 %v997_v24, %s1900_s14 }
  0x5a   : > { %1826 = vrot.lane.b32.xlu1 %v2083_v37, %s1899_s13  ;;  %v1001_v37 = vpack.c.bf16 %v2160_v2, %v2158_v1 }
  0x5d   : > { %1015 = vrot.lane.b32.xlu0 %v998_v28, %s1900_s14 }
  0x5e   : > { %1831 = vrot.lane.b32.xlu1 %v2088_v38, %s1899_s13  ;;  %v1002_v38 = vpack.c.bf16 %v2198_v18, %v2196_v17 }
  0x61   : > { %1017 = vrot.lane.b32.xlu0 %v999_v43, %s1900_s14 }
  0x62   : > { %1836 = vrot.lane.b32.xlu1 %v2131_v55, %s1899_s13 }
  0x65   : > { %1019 = vrot.lane.b32.xlu0 %v1000_v22, %s1900_s14 }
  0x66   : > { %1841 = vrot.lane.b32.xlu1 %v2136_v56, %s1899_s13 }
  0x69   : > { %1021 = vrot.lane.b32.xlu0 %v1001_v37, %s1900_s14 }
  0x6a   : > { %1846 = vrot.lane.b32.xlu1 %v1775_v9, %s1899_s13 }
  0x6d   : > { %1023 = vrot.lane.b32.xlu0 %v1002_v38, %s1900_s14  ;;  %v1856_v38 = vld [vmem:[%s2551_s2 + $0x8] sm:$0xff]  }
  0x6e   : > { %1851 = vrot.lane.b32.xlu1 %v1780_v10, %s1899_s13  ;;  %1621 = vmatprep.subr.bf16.mxu0 %v1856_v38 }
  0x6f   : > { %1622 = vmatpush3.bf16.msra.mxu0 %v1856_v38  ;;  %1642 = vmatprep.subr.bf16.mxu1 %v1856_v38 }
  0x70   : > { %1645 = vmatpush3.bf16.msra.mxu1 %v1856_v38 }
  0x97   : > { %v1697_v55 = vpop.permute.xlu0 %1696 }
  0x98   : > { %v1699_v62 = vunpack.i.h.bf16 %v1697_v55  ;;  %v1698_v56 = vunpack.i.l.bf16 %v1697_v55  ;;  %v1707_v3 = vpop.permute.xlu1 %1706 }
  0x99   : > { %v1709_v16 = vunpack.i.h.bf16 %v1707_v3  ;;  %v1708_v24 = vunpack.i.l.bf16 %v1707_v3 }
  0x9a   : > { %v593_v9 = vsel %vm345_vm1, %v497_v44, %v1698_v56  ;;  %v594_v28 = vsel %vm345_vm1, %v498_v49, %v1699_v62 }
  0x9b   : > { %v1702_v10 = vpop.permute.xlu0 %1701  ;;  %v609_v43 = vpack.c.bf16 %v594_v28, %v593_v9  ;;  %v754_v22 = vsel %vm345_vm1, %v386_v4, %v1708_v24  ;;  %v755_v37 = vsel %vm345_vm1, %v387_v15, %v1709_v16 }
  0x9c   : > { %v1704_v55 = vunpack.i.h.bf16 %v1702_v10  ;;  %v1703_v3 = vunpack.i.l.bf16 %v1702_v10  ;;  %v1712_v50 = vpop.permute.xlu1 %1711  ;;  %v770_v62 = vpack.c.bf16 %v755_v37, %v754_v22 }
  0x9d   : > { %625 = vrot.lane.b32.xlu0 %v609_v43, %s1901_s26  ;;  %v1714_v44 = vunpack.i.h.bf16 %v1712_v50  ;;  %v1713_v49 = vunpack.i.l.bf16 %v1712_v50  ;;  %v1857_v50 = vld [vmem:[%s2551_s2 + $0x10] ss:$0 sps:$4 sm:$0x33]  }
  0x9e   : > { %v595_v61 = vsel %vm345_vm1, %v2049_v23, %v1703_v3  ;;  %v596_v4 = vsel %vm345_vm1, %v2054_v25, %v1704_v55  ;;  %v1101_v43 = vsel %vm1099_vm2, %v1857_v50, 0  ;;  %1647 = vmatprep.subr.msk.bf16.mxu0 %vm1099_vm2, %v1857_v50  ;;  %1648 = vmatprep.subr.msk.bf16.mxu1 %vm1099_vm2, %v1857_v50 }
  0x9f   : > { %v1717_v15 = vpop.permute.xlu0 %1716  ;;  %v610_v56 = vpack.c.bf16 %v596_v4, %v595_v61  ;;  %v756_v16 = vsel %vm345_vm1, %v2072_v33, %v1713_v49  ;;  %v757_v24 = vsel %vm345_vm1, %v2074_v34, %v1714_v44  ;;  %1624 = vmatpush3.bf16.msra.mxu0 %v1101_v43  ;;  %1646 = vmatpush3.bf16.msra.mxu1 %v1101_v43 }
  0xa0   : > { %v1719_v9 = vunpack.i.h.bf16 %v1717_v15  ;;  %v1718_v23 = vunpack.i.l.bf16 %v1717_v15  ;;  %v1722_v28 = vpop.permute.xlu1 %1721  ;;  %v771_v33 = vpack.c.bf16 %v757_v24, %v756_v16 }
  0xa1   : > { %786 = vrot.lane.b32.xlu0 %v770_v62, %s1902_s30  ;;  %627 = vrot.lane.b32.xlu1 %v610_v56, %s1901_s26  ;;  %v1724_v25 = vunpack.i.h.bf16 %v1722_v28  ;;  %v1723_v10 = vunpack.i.l.bf16 %v1722_v28 }
  0xa2   : > { %v916_v34 = vsel %vm345_vm1, %v2056_v26, %v1718_v23  ;;  %v917_v22 = vsel %vm345_vm1, %v2058_v27, %v1719_v9 }
  0xa3   : > { %v1727_v37 = vpop.permute.xlu0 %1726  ;;  %v932_v38 = vpack.c.bf16 %v917_v22, %v916_v34  ;;  %v918_v55 = vsel %vm345_vm1, %v2090_v39, %v1723_v10  ;;  %v919_v3 = vsel %vm345_vm1, %v2092_v40, %v1724_v25 }
  0xa4   : > { %v1729_v44 = vunpack.i.h.bf16 %v1727_v37  ;;  %v1728_v49 = vunpack.i.l.bf16 %v1727_v37  ;;  %v1732_v62 = vpop.permute.xlu1 %1731  ;;  %v933_v15 = vpack.c.bf16 %v919_v3, %v918_v55 }
  0xa5   : > { %948 = vrot.lane.b32.xlu0 %v932_v38, %s1903_s5  ;;  %788 = vrot.lane.b32.xlu1 %v771_v33, %s1902_s30  ;;  %v1734_v61 = vunpack.i.h.bf16 %v1732_v62  ;;  %v1733_v4 = vunpack.i.l.bf16 %v1732_v62 }
  0xa6   : > { %v597_v56 = vsel %vm345_vm1, %v2062_v29, %v1728_v49  ;;  %v598_v16 = vsel %vm345_vm1, %v2064_v30, %v1729_v44 }
  0xa7   : > { %v1737_v24 = vpop.permute.xlu0 %1736  ;;  %v611_v50 = vpack.c.bf16 %v598_v16, %v597_v56  ;;  %v599_v9 = vsel %vm345_vm1, %v2106_v45, %v1733_v4  ;;  %v600_v23 = vsel %vm345_vm1, %v2108_v46, %v1734_v61 }
  0xa8   : > { %v1739_v28 = vunpack.i.h.bf16 %v1737_v24  ;;  %v1738_v25 = vunpack.i.l.bf16 %v1737_v24  ;;  %v1742_v10 = vpop.permute.xlu1 %1741  ;;  %v612_v43 = vpack.c.bf16 %v600_v23, %v599_v9 }
  0xa9   : > { %629 = vrot.lane.b32.xlu0 %v611_v50, %s1901_s26  ;;  %950 = vrot.lane.b32.xlu1 %v933_v15, %s1903_s5  ;;  %v1744_v33 = vunpack.i.h.bf16 %v1742_v10  ;;  %v1743_v29 = vunpack.i.l.bf16 %v1742_v10 }
  0xaa   : > { %v758_v30 = vsel %vm345_vm1, %v2076_v35, %v1738_v25  ;;  %v759_v34 = vsel %vm345_vm1, %v2078_v36, %v1739_v28 }
  0xab   : > { %v1747_v45 = vpop.permute.xlu0 %1746  ;;  %v772_v22 = vpack.c.bf16 %v759_v34, %v758_v30  ;;  %v760_v46 = vsel %vm345_vm1, %v2120_v51, %v1743_v29  ;;  %v761_v37 = vsel %vm345_vm1, %v2122_v52, %v1744_v33 }
  0xac   : > { %v1749_v38 = vunpack.i.h.bf16 %v1747_v45  ;;  %v1748_v55 = vunpack.i.l.bf16 %v1747_v45  ;;  %v1752_v3 = vpop.permute.xlu1 %1751  ;;  %v773_v49 = vpack.c.bf16 %v761_v37, %v760_v46 }
  0xad   : > { %790 = vrot.lane.b32.xlu0 %v772_v22, %s1902_s30  ;;  %631 = vrot.lane.b32.xlu1 %v612_v43, %s1901_s26  ;;  %v1754_v44 = vunpack.i.h.bf16 %v1752_v3  ;;  %v1753_v35 = vunpack.i.l.bf16 %v1752_v3 }
  0xae   : > { %v920_v36 = vsel %vm345_vm1, %v2094_v41, %v1748_v55  ;;  %v921_v62 = vsel %vm345_vm1, %v2096_v42, %v1749_v38 }
  0xaf   : > { %v1757_v51 = vpop.permute.xlu0 %1756  ;;  %v934_v61 = vpack.c.bf16 %v921_v62, %v920_v36  ;;  %v922_v52 = vsel %vm345_vm1, %v2138_v57, %v1753_v35  ;;  %v923_v4 = vsel %vm345_vm1, %v2140_v58, %v1754_v44 }
  0xb0   : > { %v1759_v15 = vunpack.i.h.bf16 %v1757_v51  ;;  %v1758_v56 = vunpack.i.l.bf16 %v1757_v51  ;;  %v1762_v16 = vpop.permute.xlu1 %1761  ;;  %v935_v9 = vpack.c.bf16 %v923_v4, %v922_v52 }
  0xb1   : > { %952 = vrot.lane.b32.xlu0 %v934_v61, %s1903_s5  ;;  %792 = vrot.lane.b32.xlu1 %v773_v49, %s1902_s30  ;;  %v1764_v24 = vunpack.i.h.bf16 %v1762_v16  ;;  %v1763_v50 = vunpack.i.l.bf16 %v1762_v16 }
  0xb2   : > { %v601_v23 = vsel %vm345_vm1, %v2110_v47, %v1758_v56  ;;  %v602_v28 = vsel %vm345_vm1, %v2112_v48, %v1759_v15 }
  0xb3   : > { %v1767_v25 = vpop.permute.xlu0 %1766  ;;  %v613_v10 = vpack.c.bf16 %v602_v28, %v601_v23  ;;  %v603_v33 = vsel %vm345_vm1, %v2154_v63, %v1763_v50  ;;  %v604_v29 = vsel %vm345_vm1, %v2156_v0, %v1764_v24 }
  0xb4   : > { %v1769_v43 = vunpack.i.h.bf16 %v1767_v25  ;;  %v1768_v30 = vunpack.i.l.bf16 %v1767_v25  ;;  %v1772_v34 = vpop.permute.xlu1 %1771  ;;  %v614_v22 = vpack.c.bf16 %v604_v29, %v603_v33 }
  0xb5   : > { %633 = vrot.lane.b32.xlu0 %v613_v10, %s1901_s26  ;;  %954 = vrot.lane.b32.xlu1 %v935_v9, %s1903_s5  ;;  %v1774_v45 = vunpack.i.h.bf16 %v1772_v34  ;;  %v1773_v47 = vunpack.i.l.bf16 %v1772_v34 }
  0xb6   : > { %v762_v48 = vsel %vm345_vm1, %v2124_v53, %v1768_v30  ;;  %v763_v46 = vsel %vm345_vm1, %v2126_v54, %v1769_v43 }
  0xb7   : > { %v1777_v63 = vpop.permute.xlu0 %1776  ;;  %v774_v37 = vpack.c.bf16 %v763_v46, %v762_v48  ;;  %v764_v0 = vsel %vm345_vm1, %v2168_v5, %v1773_v47  ;;  %v765_v38 = vsel %vm345_vm1, %v2170_v6, %v1774_v45 }
  0xb8   : > { %v1779_v55 = vunpack.i.h.bf16 %v1777_v63  ;;  %v1778_v3 = vunpack.i.l.bf16 %v1777_v63  ;;  %v1782_v44 = vpop.permute.xlu1 %1781  ;;  %v775_v49 = vpack.c.bf16 %v765_v38, %v764_v0  ;;  %v834_v63 = vld [vmem:[#allocation2 + $0xd8] sm:$0xff] }
  0xb9   : > { %794 = vrot.lane.b32.xlu0 %v774_v37, %s1902_s30  ;;  %635 = vrot.lane.b32.xlu1 %v614_v22, %s1901_s26  ;;  %v1784_v35 = vunpack.i.h.bf16 %v1782_v44  ;;  %v1783_v53 = vunpack.i.l.bf16 %v1782_v44  ;;  %v835_v37 = vld [vmem:[#allocation2 + $0xe0] sm:$0xff] }
  0xba   : > { %v924_v54 = vsel %vm345_vm1, %v2142_v59, %v1778_v3  ;;  %v925_v36 = vsel %vm345_vm1, %v2144_v60, %v1779_v55  ;;  %v368_v44 = vld [vmem:[#allocation2] sm:$0xff] }
  0xbb   : > { %v936_v5 = vpack.c.bf16 %v925_v36, %v924_v54  ;;  %v1787_v62 = vpop.permute.xlu0 %1786  ;;  %v926_v6 = vsel %vm345_vm1, %v2182_v11, %v1783_v53  ;;  %v927_v51 = vsel %vm345_vm1, %v2184_v12, %v1784_v35  ;;  %v369_v35 = vld [vmem:[#allocation2 + $0x8] sm:$0xff] }
  0xbc   : > { %v1789_v61 = vunpack.i.h.bf16 %v1787_v62  ;;  %v1788_v52 = vunpack.i.l.bf16 %v1787_v62  ;;  %v1792_v4 = vpop.permute.xlu1 %1791  ;;  %v937_v16 = vpack.c.bf16 %v927_v51, %v926_v6  ;;  %v995_v6 = vld [vmem:[#allocation2 + $0xda] sm:$0xff] }
  0xbd   : > { %956 = vrot.lane.b32.xlu0 %v936_v5, %s1903_s5  ;;  %796 = vrot.lane.b32.xlu1 %v775_v49, %s1902_s30  ;;  %v1794_v15 = vunpack.i.h.bf16 %v1792_v4  ;;  %v1793_v56 = vunpack.i.l.bf16 %v1792_v4  ;;  %v2557_v4 = vld [vmem:[#allocation4_spill] sm:$0xff] }
  0xbe   : > { %v605_v24 = vsel %vm345_vm1, %v2158_v1, %v1788_v52  ;;  %v606_v50 = vsel %vm345_vm1, %v2160_v2, %v1789_v61 }
  0xbf   : > { %v1797_v9 = vpop.permute.xlu0 %1796  ;;  %v615_v23 = vpack.c.bf16 %v606_v50, %v605_v24  ;;  %v607_v28 = vsel %vm345_vm1, %v2196_v17, %v1793_v56  ;;  %v608_v25 = vsel %vm345_vm1, %v2198_v18, %v1794_v15  ;;  %v2558_v50 = vpack.c.bf16 %v2202_v20, %v2200_v19 }
  0xc0   : > { %v1799_v10 = vunpack.i.h.bf16 %v1797_v9  ;;  %v1798_v33 = vunpack.i.l.bf16 %v1797_v9  ;;  %v1802_v29 = vpop.permute.xlu1 %1801  ;;  %v616_v1 = vpack.c.bf16 %v608_v25, %v607_v28 }
  0xc1   : > { %958 = vrot.lane.b32.xlu1 %v937_v16, %s1903_s5  ;;  %v1804_v43 = vunpack.i.h.bf16 %v1802_v29  ;;  %v1803_v30 = vunpack.i.l.bf16 %v1802_v29  ;;  %637 = vrot.lane.b32.xlu0 %v615_v23, %s1901_s26 }
  0xc2   : > { %v766_v2 = vsel %vm345_vm1, %v2172_v7, %v1798_v33  ;;  %v767_v34 = vsel %vm345_vm1, %v2174_v8, %v1799_v10 }
  0xc3   : > { %v1807_v17 = vpop.permute.xlu0 %1806  ;;  %v776_v45 = vpack.c.bf16 %v767_v34, %v766_v2  ;;  %v768_v18 = vsel %vm345_vm1, %v2210_v31, %v1803_v30  ;;  %v769_v47 = vsel %vm345_vm1, %v2212_v32, %v1804_v43 }
  0xc4   : > { %v1809_v22 = vunpack.i.h.bf16 %v1807_v17  ;;  %v1808_v48 = vunpack.i.l.bf16 %v1807_v17  ;;  %v1812_v46 = vpop.permute.xlu1 %1811  ;;  %v777_v8 = vpack.c.bf16 %v769_v47, %v768_v18 }
  0xc5   : > { %639 = vrot.lane.b32.xlu1 %v616_v1, %s1901_s26  ;;  %v1814_v0 = vunpack.i.h.bf16 %v1812_v46  ;;  %v1813_v7 = vunpack.i.l.bf16 %v1812_v46  ;;  %798 = vrot.lane.b32.xlu0 %v776_v45, %s1902_s30 }
  0xc6   : > { %v928_v38 = vsel %vm345_vm1, %v2186_v13, %v1808_v48  ;;  %v929_v31 = vsel %vm345_vm1, %v2188_v14, %v1809_v22  ;;  %v996_v14 = vld [vmem:[#allocation2 + $0xe2] sm:$0xff] }
  0xc7   : > { %v938_v55 = vpack.c.bf16 %v929_v31, %v928_v38  ;;  %v930_v32 = vsel %vm345_vm1, %v834_v63, %v1813_v7  ;;  %v931_v3 = vsel %vm345_vm1, %v835_v37, %v1814_v0  ;;  %v1817_v53 = vpop.permute.xlu0 %1816  ;;  %v1004_v9 = vpack.c.bf16 %v996_v14, %v995_v6 }
  0xc8   : > { %v1819_v49 = vunpack.i.h.bf16 %v1817_v53  ;;  %v1818_v54 = vunpack.i.l.bf16 %v1817_v53  ;;  %v1822_v36 = vpop.permute.xlu1 %1821  ;;  %v939_v5 = vpack.c.bf16 %v931_v3, %v930_v32 }
  0xc9   : > { %800 = vrot.lane.b32.xlu1 %v777_v8, %s1902_s30  ;;  %960 = vrot.lane.b32.xlu0 %v938_v55, %s1903_s5  ;;  %v1824_v13 = vunpack.i.h.bf16 %v1822_v36  ;;  %v1823_v62 = vunpack.i.l.bf16 %v1822_v36 }
  0xca   : > { %v465_v51 = vsel %vm345_vm1, %v369_v35, %v1819_v49  ;;  %v464_v61 = vsel %vm345_vm1, %v368_v44, %v1818_v54 }
  0xcb   : > { %v466_v52 = vsel %vm345_vm1, %v2045_v21, %v1823_v62  ;;  %v467_v15 = vsel %vm345_vm1, %v2557_v4, %v1824_v13  ;;  %v480_v56 = vpack.c.bf16 %v465_v51, %v464_v61  ;;  %v1014_v31 = vpop.permute.xlu0 %1013 }
  0xcc   : > { %v1827_v16 = vpop.permute.xlu1 %1826  ;;  %v481_v24 = vpack.c.bf16 %v467_v15, %v466_v52 }
  0xcd   : > { %962 = vrot.lane.b32.xlu1 %v939_v5, %s1903_s5  ;;  %1025 = vrot.lane.b32.xlu0 %v2558_v50, %s1900_s14  ;;  %v1829_v23 = vunpack.i.h.bf16 %v1827_v16  ;;  %v1828_v28 = vunpack.i.l.bf16 %v1827_v16  ;;  %489 = vst.msk [vmem:[#allocation3] sm:$0xff] %vm488_vm3, %v480_v56 }
  0xce   : > { %490 = vst.msk [vmem:[#allocation3 + $0x8] sm:$0xff] %vm488_vm3, %v481_v24 }
  0xcf   : > { %v469_v21 = vsel %vm345_vm1, %v2058_v27, %v1829_v23  ;;  %v468_v25 = vsel %vm345_vm1, %v2056_v26, %v1828_v28 }
  0xd0   : > { %v1832_v10 = vpop.permute.xlu1 %1831  ;;  %v482_v33 = vpack.c.bf16 %v469_v21, %v468_v25 }
  0xd1   : > { %1027 = vrot.lane.b32.xlu1 %v1004_v9, %s1900_s14  ;;  %v1834_v29 = vunpack.i.h.bf16 %v1832_v10  ;;  %v1833_v19 = vunpack.i.l.bf16 %v1832_v10  ;;  %s301_s14 = scalar_lea.vmem %s2553_s4, %s1560_s11 }
  0xd2   : > { %491 = vst.msk [vmem:[#allocation3 + $0x10] sm:$0xff] %vm488_vm3, %v482_v33 }
  0xd3   : > { %v471_v20 = vsel %vm345_vm1, %v2092_v40, %v1834_v29  ;;  %v470_v43 = vsel %vm345_vm1, %v2090_v39, %v1833_v19 }
  0xd4   : > { %v1837_v30 = vpop.permute.xlu1 %1836  ;;  %v483_v1 = vpack.c.bf16 %v471_v20, %v470_v43 }
  0xd5   : > { %v1839_v27 = vunpack.i.h.bf16 %v1837_v30  ;;  %v1838_v2 = vunpack.i.l.bf16 %v1837_v30 }
  0xd6   : > { %492 = vst.msk [vmem:[#allocation3 + $0x18] sm:$0xff] %vm488_vm3, %v483_v1 }
  0xd7   : > { %v473_v26 = vsel %vm345_vm1, %v2096_v42, %v1839_v27  ;;  %v472_v34 = vsel %vm345_vm1, %v2094_v41, %v1838_v2 }
  0xd8   : > { %v1842_v17 = vpop.permute.xlu1 %1841  ;;  %v484_v45 = vpack.c.bf16 %v473_v26, %v472_v34 }
  0xd9   : > { %v1844_v18 = vunpack.i.h.bf16 %v1842_v17  ;;  %v1843_v47 = vunpack.i.l.bf16 %v1842_v17 }
  0xda   : > { %493 = vst.msk [vmem:[#allocation3 + $0x20] sm:$0xff] %vm488_vm3, %v484_v45 }
  0xdb   : > { %v475_v39 = vsel %vm345_vm1, %v2140_v58, %v1844_v18  ;;  %v474_v40 = vsel %vm345_vm1, %v2138_v57, %v1843_v47 }
  0xdc   : > { %v1847_v22 = vpop.permute.xlu1 %1846  ;;  %v485_v48 = vpack.c.bf16 %v475_v39, %v474_v40 }
  0xdd   : > { %v1849_v46 = vunpack.i.h.bf16 %v1847_v22  ;;  %v1848_v63 = vunpack.i.l.bf16 %v1847_v22 }
  0xde   : > { %494 = vst.msk [vmem:[#allocation3 + $0x28] sm:$0xff] %vm488_vm3, %v485_v48 }
  0xdf   : > { %v477_v41 = vsel %vm345_vm1, %v2144_v60, %v1849_v46  ;;  %v476_v42 = vsel %vm345_vm1, %v2142_v59, %v1848_v63  ;;  %v1016_v60 = vpop.permute.xlu0 %1015 }
  0xe0   : > { %v1852_v37 = vpop.permute.xlu1 %1851  ;;  %v486_v0 = vpack.c.bf16 %v477_v41, %v476_v42 }
  0xe1   : > { %v1854_v7 = vunpack.i.h.bf16 %v1852_v37  ;;  %v1853_v8 = vunpack.i.l.bf16 %v1852_v37 }
  0xe2   : > { %495 = vst.msk [vmem:[#allocation3 + $0x30] sm:$0xff] %vm488_vm3, %v486_v0 }
  0xe3   : > { %v479_v57 = vsel %vm345_vm1, %v2184_v12, %v1854_v7  ;;  %v478_v58 = vsel %vm345_vm1, %v2182_v11, %v1853_v8  ;;  %v1018_v55 = vpop.permute.xlu0 %1017 }
  0xe4   : > { %v487_v38 = vpack.c.bf16 %v479_v57, %v478_v58 }
  0xe6   : > { %496 = vst.msk [vmem:[#allocation3 + $0x38] sm:$0xff] %vm488_vm3, %v487_v38 }
  0xe7   : > { %v1020_v32 = vpop.permute.xlu0 %1019 }
  0xeb   : > { %v1022_v59 = vpop.permute.xlu0 %1021 }
  0xef   : > { %v1024_v3 = vpop.permute.xlu0 %1023 }
 0x10f   : > { %v626_v44 = vpop.permute.xlu0 %625 }
 0x110   : > { %650 = vst.msk [vmem:[#allocation3] sm:$0xff] %vm649_vm4, %v626_v44 }
 0x113   : > { %v787_v35 = vpop.permute.xlu0 %786  ;;  %v628_v53 = vpop.permute.xlu1 %627 }
 0x114   : > { %811 = vst.msk [vmem:[#allocation3] sm:$0xff] %vm810_vm5, %v787_v35 }
 0x115   : > { %651 = vst.msk [vmem:[#allocation3 + $0x8] sm:$0xff] %vm649_vm4, %v628_v53 }
 0x117   : > { %v949_v11 = vpop.permute.xlu0 %948  ;;  %v789_v12 = vpop.permute.xlu1 %788 }
 0x118   : > { %973 = vst.msk [vmem:[#allocation3] sm:$0xff] %vm972_vm6, %v949_v11 }
 0x119   : > { %812 = vst.msk [vmem:[#allocation3 + $0x8] sm:$0xff] %vm810_vm5, %v789_v12 }
 0x11a   : > { %1038 = vst.msk [vmem:[#allocation3] sm:$0xff] %vm1037_vm7, %v1014_v31 }
 0x11b   : > { %v630_v49 = vpop.permute.xlu0 %629  ;;  %v951_v54 = vpop.permute.xlu1 %950 }
 0x11c   : > { %652 = vst.msk [vmem:[#allocation3 + $0x10] sm:$0xff] %vm649_vm4, %v630_v49 }
 0x11d   : > { %974 = vst.msk [vmem:[#allocation3 + $0x8] sm:$0xff] %vm972_vm6, %v951_v54 }
 0x11e   : > { %1039 = vst.msk [vmem:[#allocation3 + $0x8] sm:$0xff] %vm1037_vm7, %v1016_v60 }
 0x11f   : > { %v791_v36 = vpop.permute.xlu0 %790  ;;  %v632_v5 = vpop.permute.xlu1 %631 }
 0x120   : > { %813 = vst.msk [vmem:[#allocation3 + $0x10] sm:$0xff] %vm810_vm5, %v791_v36 }
 0x121   : > { %653 = vst.msk [vmem:[#allocation3 + $0x18] sm:$0xff] %vm649_vm4, %v632_v5  ;;  %v1046_v13 = vld [vmem:[#allocation3] sm:$0xff] }
 0x122   : > { %1625 = vmatprep.mubr.msk.bf16.mxu0 %vm1074_vm8, %v1046_v13 }
 0x123   : > { %v953_v62 = vpop.permute.xlu0 %952  ;;  %v793_v6 = vpop.permute.xlu1 %792 }
 0x124   : > { %975 = vst.msk [vmem:[#allocation3 + $0x10] sm:$0xff] %vm972_vm6, %v953_v62 }
 0x125   : > { %814 = vst.msk [vmem:[#allocation3 + $0x18] sm:$0xff] %vm810_vm5, %v793_v6  ;;  %v1047_v14 = vld [vmem:[#allocation3 + $0x8] sm:$0xff] }
 0x126   : > { %1040 = vst.msk [vmem:[#allocation3 + $0x10] sm:$0xff] %vm1037_vm7, %v1018_v55  ;;  %1626 = vmatmul.mubr.msk.bf16.vlgmr.msra.gmra.mrb[0].mxu0 %vm1074_vm8, %v1047_v14 }
 0x127   : > { %v634_v51 = vpop.permute.xlu0 %633  ;;  %v955_v61 = vpop.permute.xlu1 %954 }
 0x128   : > { %654 = vst.msk [vmem:[#allocation3 + $0x20] sm:$0xff] %vm649_vm4, %v634_v51 }
 0x129   : > { %976 = vst.msk [vmem:[#allocation3 + $0x18] sm:$0xff] %vm972_vm6, %v955_v61 }
 0x12a   : > { %1041 = vst.msk [vmem:[#allocation3 + $0x18] sm:$0xff] %vm1037_vm7, %v1020_v32 }
 0x12b   : > { %v795_v52 = vpop.permute.xlu0 %794  ;;  %v636_v4 = vpop.permute.xlu1 %635 }
 0x12c   : > { %815 = vst.msk [vmem:[#allocation3 + $0x20] sm:$0xff] %vm810_vm5, %v795_v52 }
 0x12d   : > { %655 = vst.msk [vmem:[#allocation3 + $0x28] sm:$0xff] %vm649_vm4, %v636_v4  ;;  %v1048_v15 = vld [vmem:[#allocation3 + $0x10] sm:$0xff] }
 0x12e   : > { %1629 = vmatprep.mubr.msk.bf16.mxu0 %vm1074_vm8, %v1048_v15 }
 0x12f   : > { %v957_v56 = vpop.permute.xlu0 %956  ;;  %v797_v16 = vpop.permute.xlu1 %796 }
 0x130   : > { %977 = vst.msk [vmem:[#allocation3 + $0x20] sm:$0xff] %vm972_vm6, %v957_v56 }
 0x131   : > { %816 = vst.msk [vmem:[#allocation3 + $0x28] sm:$0xff] %vm810_vm5, %v797_v16  ;;  %v1049_v24 = vld [vmem:[#allocation3 + $0x18] sm:$0xff] }
 0x132   : > { %1042 = vst.msk [vmem:[#allocation3 + $0x20] sm:$0xff] %vm1037_vm7, %v1022_v59  ;;  %1630 = vmatmul.mubr.msk.bf16.gmra.mrb[4].mxu0 %vm1074_vm8, %v1049_v24 }
 0x133   : > { %v959_v50 = vpop.permute.xlu1 %958  ;;  %v638_v9 = vpop.permute.xlu0 %637 }
 0x134   : > { %978 = vst.msk [vmem:[#allocation3 + $0x28] sm:$0xff] %vm972_vm6, %v959_v50 }
 0x135   : > { %656 = vst.msk [vmem:[#allocation3 + $0x30] sm:$0xff] %vm649_vm4, %v638_v9 }
 0x136   : > { %1043 = vst.msk [vmem:[#allocation3 + $0x28] sm:$0xff] %vm1037_vm7, %v1024_v3 }
 0x137   : > { %v640_v23 = vpop.permute.xlu1 %639  ;;  %v799_v28 = vpop.permute.xlu0 %798 }
 0x138   : > { %657 = vst.msk [vmem:[#allocation3 + $0x38] sm:$0xff] %vm649_vm4, %v640_v23 }
 0x139   : > { %v1050_v21 = vld [vmem:[#allocation3 + $0x20] sm:$0xff]  ;;  %817 = vst.msk [vmem:[#allocation3 + $0x30] sm:$0xff] %vm810_vm5, %v799_v28 }
 0x13a   : > { %1633 = vmatprep.mubr.msk.bf16.mxu1 %vm1074_vm8, %v1050_v21 }
 0x13b   : > { %v801_v25 = vpop.permute.xlu1 %800  ;;  %v961_v10 = vpop.permute.xlu0 %960 }
 0x13c   : > { %818 = vst.msk [vmem:[#allocation3 + $0x38] sm:$0xff] %vm810_vm5, %v801_v25 }
 0x13d   : > { %v1051_v33 = vld [vmem:[#allocation3 + $0x28] sm:$0xff]  ;;  %979 = vst.msk [vmem:[#allocation3 + $0x30] sm:$0xff] %vm972_vm6, %v961_v10 }
 0x13e   : > { %1634 = vmatmul.mubr.msk.bf16.vlgmr.msra.gmra.mrb[0].mxu1 %vm1074_vm8, %v1051_v33 }
 0x13f   : > { %v963_v29 = vpop.permute.xlu1 %962  ;;  %v1026_v19 = vpop.permute.xlu0 %1025 }
 0x140   : > { %980 = vst.msk [vmem:[#allocation3 + $0x38] sm:$0xff] %vm972_vm6, %v963_v29 }
 0x141   : > { %1044 = vst.msk [vmem:[#allocation3 + $0x30] sm:$0xff] %vm1037_vm7, %v1026_v19 }
 0x143   : > { %v1028_v20 = vpop.permute.xlu1 %1027 }
 0x144   : > { %1045 = vst.msk [vmem:[#allocation3 + $0x38] sm:$0xff] %vm1037_vm7, %v1028_v20 }
 0x148   : > { %v1052_v43 = vld [vmem:[#allocation3 + $0x30] sm:$0xff] }
 0x149   : > { %1637 = vmatprep.mubr.msk.bf16.mxu1 %vm1074_vm8, %v1052_v43 }
 0x14b   : > { %v1053_v30 = vld [vmem:[#allocation3 + $0x38] sm:$0xff] }
 0x14c   : > { %1638 = vmatmul.mubr.msk.bf16.gmra.mrb[4].mxu1 %vm1074_vm8, %v1053_v30 }
 0x1f9   : > { %v1627_v1 = vpop.f32.mrb[0].mxu0 }
 0x1fa   : > { %v1594_v27 = vpack.c.bf16 %v1627_v1, %v1627_v1  ;;  %v1137_v2 = vpop.f32.mrb[1].mxu0  ;;  %v1320_v45 = vmul.f32 %v1627_v1, %v1627_v1  ;;  %v1284_v63 = vsel %vm345_vm1, %v1627_v1, 0.0 }
 0x1fb   : > { %v1592_v26 = vpack.c.bf16 %v1137_v2, %v1137_v2  ;;  %v1318_v34 = vmul.f32 %v1137_v2, %v1137_v2  ;;  %v1628_v17 = vpop.f32.mrb[2].mxu0  ;;  %v1281_v39 = vsel %vm345_vm1, %v1137_v2, 0.0 }
 0x1fc   : > { %1267 = vst.msk [vmem:[%s2462_s9 + $0x8] sm:$0xf] %vm1264_vm9, %v1594_v27  ;;  %v1595_v18 = vpack.c.bf16 %v1628_v17, %v1628_v17  ;;  %v1140_v47 = vpop.f32.mrb[3].mxu0  ;;  %v1321_v42 = vmul.f32 %v1628_v17, %v1628_v17  ;;  %v1337_v8 = vsel %vm345_vm1, %v1320_v45, 0.0  ;;  %v1286_v57 = vsel %vm345_vm1, %v1628_v17, 0.0 }
 0x1fd   : > { %1265 = vst.msk [vmem:[%s2462_s9] sm:$0xf] %vm1264_vm9, %v1592_v26  ;;  %v1593_v40 = vpack.c.bf16 %v1140_v47, %v1140_v47  ;;  %v1282_v22 = vsel %vm345_vm1, %v1140_v47, 0.0  ;;  %v1319_v48 = vmul.f32 %v1140_v47, %v1140_v47  ;;  %v1334_v41 = vsel %vm345_vm1, %v1318_v34, 0.0 }
 0x1fe   : > { %1268 = vst.msk [vmem:[%s2462_s9 + $0xc] sm:$0xf] %vm1264_vm9, %v1595_v18  ;;  %v1283_v46 = vadd.f32 %v1282_v22, %v1281_v39  ;;  %v1339_v31 = vsel %vm345_vm1, %v1321_v42, 0.0 }
 0x1ff   : > { %1266 = vst.msk [vmem:[%s2462_s9 + $0x4] sm:$0xf] %vm1264_vm9, %v1593_v40  ;;  %v1335_v37 = vsel %vm345_vm1, %v1319_v48, 0.0 }
 0x200   : > { %v1285_v0 = vadd.f32 %v1284_v63, %v1283_v46  ;;  %v1336_v7 = vadd.f32 %v1335_v37, %v1334_v41 }
 0x202   : > { %v1338_v58 = vadd.f32 %v1337_v8, %v1336_v7  ;;  %v1287_v38 = vadd.f32 %v1286_v57, %v1285_v0 }
 0x204   : > { %v1340_v60 = vadd.f32 %v1339_v31, %v1338_v58 }
 0x205   : > { %v1631_v55 = vpop.f32.mrb[4].mxu0 }
 0x206   : > { %v1598_v32 = vpack.c.bf16 %v1631_v55, %v1631_v55  ;;  %v1153_v59 = vpop.f32.mrb[5].mxu0  ;;  %v1324_v13 = vmul.f32 %v1631_v55, %v1631_v55  ;;  %v1292_v51 = vsel %vm345_vm1, %v1631_v55, 0.0 }
 0x207   : > { %v1596_v3 = vpack.c.bf16 %v1153_v59, %v1153_v59  ;;  %v1288_v44 = vsel %vm345_vm1, %v1153_v59, 0.0  ;;  %v1322_v35 = vmul.f32 %v1153_v59, %v1153_v59  ;;  %v1632_v53 = vpop.f32.mrb[6].mxu0 }
 0x208   : > { %1271 = vst.msk [vmem:[%s2462_s9 + $0x18] sm:$0xf] %vm1264_vm9, %v1598_v32  ;;  %v1289_v11 = vadd.f32 %v1288_v44, %v1287_v38  ;;  %v1599_v12 = vpack.c.bf16 %v1632_v53, %v1632_v53  ;;  %v1156_v49 = vpop.f32.mrb[7].mxu0  ;;  %v1325_v61 = vmul.f32 %v1632_v53, %v1632_v53  ;;  %v1294_v15 = vsel %vm345_vm1, %v1632_v53, 0.0 }
 0x209   : > { %1269 = vst.msk [vmem:[%s2462_s9 + $0x10] sm:$0xf] %vm1264_vm9, %v1596_v3  ;;  %v1341_v54 = vsel %vm345_vm1, %v1322_v35, 0.0  ;;  %v1597_v36 = vpack.c.bf16 %v1156_v49, %v1156_v49  ;;  %v1290_v5 = vsel %vm345_vm1, %v1156_v49, 0.0  ;;  %v1323_v14 = vmul.f32 %v1156_v49, %v1156_v49 }
 0x20a   : > { %v1342_v62 = vadd.f32 %v1341_v54, %v1340_v60  ;;  %1272 = vst.msk [vmem:[%s2462_s9 + $0x1c] sm:$0xf] %vm1264_vm9, %v1599_v12  ;;  %v1291_v6 = vadd.f32 %v1290_v5, %v1289_v11  ;;  %v1345_v16 = vsel %vm345_vm1, %v1324_v13, 0.0  ;;  %v1347_v9 = vsel %vm345_vm1, %v1325_v61, 0.0 }
 0x20b   : > { %1270 = vst.msk [vmem:[%s2462_s9 + $0x14] sm:$0xf] %vm1264_vm9, %v1597_v36  ;;  %v1343_v4 = vsel %vm345_vm1, %v1323_v14, 0.0 }
 0x20c   : > { %v1293_v52 = vadd.f32 %v1292_v51, %v1291_v6  ;;  %v1344_v56 = vadd.f32 %v1343_v4, %v1342_v62 }
 0x20e   : > { %v1295_v24 = vadd.f32 %v1294_v15, %v1293_v52  ;;  %v1346_v50 = vadd.f32 %v1345_v16, %v1344_v56 }
 0x210   : > { %v1348_v28 = vadd.f32 %v1347_v9, %v1346_v50 }
 0x211   : > { %v1635_v23 = vpop.f32.mrb[0].mxu1 }
 0x212   : > { %v1602_v21 = vpack.c.bf16 %v1635_v23, %v1635_v23  ;;  %v1169_v25 = vpop.f32.mrb[1].mxu1  ;;  %v1328_v26 = vmul.f32 %v1635_v23, %v1635_v23  ;;  %v1300_v18 = vsel %vm345_vm1, %v1635_v23, 0.0 }
 0x213   : > { %v1600_v10 = vpack.c.bf16 %v1169_v25, %v1169_v25  ;;  %v1296_v33 = vsel %vm345_vm1, %v1169_v25, 0.0  ;;  %v1326_v29 = vmul.f32 %v1169_v25, %v1169_v25  ;;  %v1636_v19 = vpop.f32.mrb[2].mxu1 }
 0x214   : > { %1275 = vst.msk [vmem:[%s2462_s9 + $0x28] sm:$0xf] %vm1264_vm9, %v1602_v21  ;;  %v1297_v20 = vadd.f32 %v1296_v33, %v1295_v24  ;;  %v1603_v43 = vpack.c.bf16 %v1636_v19, %v1636_v19  ;;  %v1172_v30 = vpop.f32.mrb[3].mxu1  ;;  %v1329_v47 = vmul.f32 %v1636_v19, %v1636_v19  ;;  %v1302_v22 = vsel %vm345_vm1, %v1636_v19, 0.0 }
 0x215   : > { %1273 = vst.msk [vmem:[%s2462_s9 + $0x20] sm:$0xf] %vm1264_vm9, %v1600_v10  ;;  %v1349_v1 = vsel %vm345_vm1, %v1326_v29, 0.0  ;;  %v1601_v27 = vpack.c.bf16 %v1172_v30, %v1172_v30  ;;  %v1298_v2 = vsel %vm345_vm1, %v1172_v30, 0.0  ;;  %v1327_v45 = vmul.f32 %v1172_v30, %v1172_v30 }
 0x216   : > { %v1350_v34 = vadd.f32 %v1349_v1, %v1348_v28  ;;  %1276 = vst.msk [vmem:[%s2462_s9 + $0x2c] sm:$0xf] %vm1264_vm9, %v1603_v43  ;;  %v1299_v17 = vadd.f32 %v1298_v2, %v1297_v20  ;;  %v1353_v46 = vsel %vm345_vm1, %v1328_v26, 0.0  ;;  %v1355_v42 = vsel %vm345_vm1, %v1329_v47, 0.0 }
 0x217   : > { %1274 = vst.msk [vmem:[%s2462_s9 + $0x24] sm:$0xf] %vm1264_vm9, %v1601_v27  ;;  %v1351_v40 = vsel %vm345_vm1, %v1327_v45, 0.0 }
 0x218   : > { %v1301_v39 = vadd.f32 %v1300_v18, %v1299_v17  ;;  %v1352_v48 = vadd.f32 %v1351_v40, %v1350_v34 }
 0x21a   : > { %v1303_v63 = vadd.f32 %v1302_v22, %v1301_v39  ;;  %v1354_v41 = vadd.f32 %v1353_v46, %v1352_v48 }
 0x21c   : > { %v1356_v37 = vadd.f32 %v1355_v42, %v1354_v41 }
 0x21f   : > { %v1639_v0 = vpop.f32.mrb[4].mxu1 }
 0x220   : > { %v1606_v7 = vpack.c.bf16 %v1639_v0, %v1639_v0  ;;  %v1185_v8 = vpop.f32.mrb[5].mxu1  ;;  %v1332_v35 = vmul.f32 %v1639_v0, %v1639_v0  ;;  %v1308_v49 = vsel %vm345_vm1, %v1639_v0, 0.0 }
 0x221   : > { %v1604_v57 = vpack.c.bf16 %v1185_v8, %v1185_v8  ;;  %v1304_v58 = vsel %vm345_vm1, %v1185_v8, 0.0  ;;  %v1330_v38 = vmul.f32 %v1185_v8, %v1185_v8  ;;  %v1640_v31 = vpop.f32.mrb[6].mxu1 }
 0x222   : > { %1279 = vst.msk [vmem:[%s2462_s9 + $0x38] sm:$0xf] %vm1264_vm9, %v1606_v7  ;;  %v1305_v60 = vadd.f32 %v1304_v58, %v1303_v63  ;;  %v1607_v55 = vpack.c.bf16 %v1640_v31, %v1640_v31  ;;  %v1188_v32 = vpop.f32.mrb[7].mxu1  ;;  %v1333_v54 = vmul.f32 %v1640_v31, %v1640_v31  ;;  %v1310_v13 = vsel %vm345_vm1, %v1640_v31, 0.0 }
 0x223   : > { %1277 = vst.msk [vmem:[%s2462_s9 + $0x30] sm:$0xf] %vm1264_vm9, %v1604_v57  ;;  %v1357_v59 = vsel %vm345_vm1, %v1330_v38, 0.0  ;;  %v1605_v3 = vpack.c.bf16 %v1188_v32, %v1188_v32  ;;  %v1306_v44 = vsel %vm345_vm1, %v1188_v32, 0.0  ;;  %v1331_v12 = vmul.f32 %v1188_v32, %v1188_v32 }
 0x224   : > { %v1358_v53 = vadd.f32 %v1357_v59, %v1356_v37  ;;  %1280 = vst.msk [vmem:[%s2462_s9 + $0x3c] sm:$0xf] %vm1264_vm9, %v1607_v55  ;;  %v1307_v11 = vadd.f32 %v1306_v44, %v1305_v60  ;;  %v1361_v6 = vsel %vm345_vm1, %v1332_v35, 0.0  ;;  %v1363_v61 = vsel %vm345_vm1, %v1333_v54, 0.0 }
 0x225   : > { %1278 = vst.msk [vmem:[%s2462_s9 + $0x34] sm:$0xf] %vm1264_vm9, %v1605_v3  ;;  %v1359_v5 = vsel %vm345_vm1, %v1331_v12, 0.0 }
 0x226   : > { %v1309_v36 = vadd.f32 %v1308_v49, %v1307_v11  ;;  %v1360_v62 = vadd.f32 %v1359_v5, %v1358_v53 }
 0x228   : > { %v1311_v14 = vadd.f32 %v1310_v13, %v1309_v36  ;;  %v1362_v51 = vadd.f32 %v1361_v6, %v1360_v62 }
 0x22a   : > { %v1312_v52 = vrot.slane %v1311_v14, 4  ;;  %v1364_v4 = vadd.f32 %v1363_v61, %v1362_v51 }
 0x22c   : > { %v1313_v15 = vadd.f32 %v1312_v52, %v1311_v14  ;;  %v1365_v56 = vrot.slane %v1364_v4, 4 }
 0x22e   : > { %v1314_v16 = vrot.slane %v1313_v15, 2  ;;  %v1366_v24 = vadd.f32 %v1365_v56, %v1364_v4 }
 0x230   : > { %v1315_v50 = vadd.f32 %v1314_v16, %v1313_v15  ;;  %v1367_v9 = vrot.slane %v1366_v24, 2 }
 0x232   : > { %v1316_v23 = vrot.slane %v1315_v50, 1  ;;  %v1368_v28 = vadd.f32 %v1367_v9, %v1366_v24 }
 0x234   : > { %v1369_v21 = vrot.slane %v1368_v28, 1  ;;  %v1317_v25 = vadd.f32 %v1316_v23, %v1315_v50 }
 0x236   : > { %v1370_v10 = vadd.f32 %v1369_v21, %v1368_v28 }
 0x238   : > { %v1372_v33 = vsel %vm1371_vm10, %v1317_v25, %v1370_v10 }
 0x239   : > { %1374 = vst.msk [vmem:[%s301_s14] sm:$0x3] %vm1373_vm11, %v1372_v33 }
 0x23a PF: > { %s15_s19 = sadd.s32 1, %s1896_s19   ;;  %s2559_s15 = smov %s1888_s17 }
 0x23b   : > { %p12_p9 = scmp.ge.s32.totalorder %s15_s19, 6   ;;  %s2560_s16 = smov %s1892_s18 }
 0x23c   : > { %s2561_s17 = smov %s2564_s20  ;;  %s2562_s18 = smov %s2568_s21 }
 0x23d   :  { %14 = sbr.rel (!%p12_p9) target bundleno = 3 (0x3), region = 81 }

// kernel: basic_block_forward.4
= control target key start
LH: loop header
LB: loop body
LE: loop exit
PB: predicated region body
PF: predicated region fallthrough
CT: control target
= control target key end

     0   :  { %s2149_s21 = smov 0   ;;  %s2151_s22 = smov 0   ;;  %s2823_s0 = inlined_call_operand.vmem [shape: bf16[2,16,16,4], index: 0, kind: input, shape index: {}]   ;;  %s2824_s1 = inlined_call_operand.vmem [shape: bf16[2,4,16,4], index: 1, kind: input, shape index: {}]   ;;  %s2825_s2 = inlined_call_operand.vmem [shape: bf16[36,4], index: 2, kind: input, shape index: {}]   ;;  %s2826_s3 = inlined_call_operand.vmem [shape: f32[1,4], index: 3, kind: input, shape index: {}]   ;;  %s2827_s4 = inlined_call_operand.vmem [shape: f32[1,4], index: 4, kind: input, shape index: {}]   ;;  %s2828_s5 = inlined_call_operand.vmem [shape: bf16[2,16,16,4], index: 5, kind: output, shape index: {0}]   ;;  %s2829_s6 = inlined_call_operand.vmem [shape: f32[2,2,2,4], index: 6, kind: output, shape index: {1}]  }
   0x1   :  { %s2153_s23 = smov 0   ;;  %s2155_s24 = smov 0  }
   0x2   :  { %s2157_s25 = smov 0  }
   0x3 LB: > { %s26_s26 = sadd.s32 1, %s2098_s23  ;;  %s29_s27 = sadd.s32 1, %s2102_s24  ;;  %s2106_s25 = sphi %s2157_s25, %s17_s25   ;;  %s2102_s24 = sphi %s2155_s24, %s2836_s24   ;;  %s2098_s23 = sphi %s2153_s23, %s2835_s23   ;;  %s2094_s22 = sphi %s2151_s22, %s2834_s22   ;;  %s2090_s21 = sphi %s2149_s21, %s2833_s21  }
   0x4   : > { %p27_p0 = scmp.ge.s32.totalorder %s26_s26, 2  ;;  %p1706_p1 = scmp.ge.s32.totalorder %s2106_s25, 1 }
   0x5   : > { %p257_p2 = scmp.lt.s32.totalorder %s2106_s25, 5 }
   0x6   : > { %s2838_s26 = smov (%p27_p0, %s26_s26), 0  ;;  %s2840_s27 = smov (!%p27_p0, %s29_s27), %s2102_s24 }
   0x7   : > { %p258_p3 = pnand %p1706_p1, %p257_p2  ;;  %p31_p4 = scmp.ge.s32.totalorder %s2840_s27, 2 }
   0x8   : > { %s1707_s28 = sshll.u32 (!%p258_p3), %s2090_s21, 3  ;;  %p316_p5 = scmp.lt.s32.totalorder (!%p258_p3), %s2094_s22, 1  ;;  %vm484_vm0 = vcmask (!%p258_p3), 24576   ;;  %v2108_v0 = vmov (!%p258_p3), 0.0   ;;  %v2225_v1 = vld [vmem:[%s2826_s3] ss:$0 sm:$0xff] (!%p258_p3) }
   0x9   : > { %s2842_s27 = smov (%p31_p4, %s2840_s27), 0  ;;  %261 = sbr.rel (%p258_p3) target bundleno = 573 (0x23d), region = 40 }
   0xa   : > { %p2182_p6 = scmp.lt.s32.totalorder (!%p258_p3), %s1707_s28, 15  ;;  %486 = vst.msk [vmem:[#allocation2 + $0x18] sm:$0x1] (!%p258_p3), %vm484_vm0, %v2108_v0  ;;  %485 = vst.msk [vmem:[#allocation2] sm:$0x1] (!%p258_p3), %vm484_vm0, %v2108_v0  ;;  %s1711_s7 = sshll.u32 (!%p258_p3), %s2090_s21, 1 }
   0xb   : > { %487 = vst.msk [vmem:[#allocation2 + $0x30] sm:$0x1] (!%p258_p3), %vm484_vm0, %v2108_v0  ;;  %488 = vst.msk [vmem:[#allocation2 + $0x48] sm:$0x1] (!%p258_p3), %vm484_vm0, %v2108_v0  ;;  %p329_p7 = scmp.lt.s32.totalorder (!%p258_p3), %s1711_s7, 3  ;;  %vm505_vm1 = vcmask (!%p258_p3), 31744  }
   0xc   : > { %489 = vst.msk [vmem:[#allocation2 + $0x60] sm:$0x1] (!%p258_p3), %vm484_vm0, %v2108_v0  ;;  %490 = vst.msk [vmem:[#allocation2 + $0x78] sm:$0x1] (!%p258_p3), %vm484_vm0, %v2108_v0  ;;  %v2235_v10 = vld [vmem:[%s2827_s4] ss:$0 sm:$0xff] (!%p258_p3) }
   0xd   : > { %491 = vst.msk [vmem:[#allocation2 + $0x90] sm:$0x1] (!%p258_p3), %vm484_vm0, %v2108_v0  ;;  %492 = vst.msk [vmem:[#allocation2 + $0xa8] sm:$0x1] (!%p258_p3), %vm484_vm0, %v2108_v0  ;;  %p472_p8 = scmp.eq.s32.totalorder (!%p258_p3), %s2090_s21, 1  ;;  %p460_p9 = scmp.eq.s32.totalorder (!%p258_p3), %s2090_s21, 0 }
   0xe   : > { %493 = vst.msk [vmem:[#allocation2 + $0xc0] sm:$0x1] (!%p258_p3), %vm484_vm0, %v2108_v0  ;;  %494 = vst.msk [vmem:[#allocation2 + $0xd8] sm:$0x1] (!%p258_p3), %vm484_vm0, %v2108_v0  ;;  %s2109_s12 = smov (!%p258_p3), 4   ;;  %s2111_s18 = smov (!%p258_p3), 8  }
   0xf   : > { %495 = vst.msk [vmem:[#allocation2 + $0x11] sm:$0x1] (!%p258_p3), %vm484_vm0, %v2108_v0  ;;  %496 = vst.msk [vmem:[#allocation2 + $0x29] sm:$0x1] (!%p258_p3), %vm484_vm0, %v2108_v0  ;;  %vm1259_vm4 = vcmask (!%p258_p3), 1041408   ;;  %s2113_s29 = smov (!%p258_p3), 24  }
  0x10   : > { %s2844_s22 = smov (!%p316_p5, %s2094_s22), 1  ;;  %497 = vst.msk [vmem:[#allocation2 + $0x41] sm:$0x1] %vm484_vm0, %v2108_v0  ;;  %498 = vst.msk [vmem:[#allocation2 + $0x59] sm:$0x1] %vm484_vm0, %v2108_v0  ;;  %s2846_s28 = smov (!%p2182_p6, %s1707_s28), 15 }
  0x11   : > { %499 = vst.msk [vmem:[#allocation2 + $0x71] sm:$0x1] %vm484_vm0, %v2108_v0  ;;  %500 = vst.msk [vmem:[#allocation2 + $0x89] sm:$0x1] %vm484_vm0, %v2108_v0  ;;  %s1709_s30 = sshll.u32 %s2844_s22, 5  ;;  %s1708_s8 = sshll.u32 %s2846_s28, 1 }
  0x12   : > { %501 = vst.msk [vmem:[#allocation2 + $0xa1] sm:$0x1] %vm484_vm0, %v2108_v0  ;;  %502 = vst.msk [vmem:[#allocation2 + $0xb9] sm:$0x1] %vm484_vm0, %v2108_v0  ;;  %s2212_s9 = sadd.s32 %s1709_s30, %s1708_s8  ;;  %s2848_s7 = smov (!%p329_p7, %s1711_s7), 3  ;;  %vm648_vm5 = vcmask 64512  }
  0x13   : > { %503 = vst.msk [vmem:[#allocation2 + $0xd1] sm:$0x1] %vm484_vm0, %v2108_v0  ;;  %504 = vst.msk [vmem:[#allocation2 + $0xe9] sm:$0x1] %vm484_vm0, %v2108_v0  ;;  %s1710_s10 = sshll.u32 %s2212_s9, 2  ;;  %s1713_s16 = sshll.u32 %s2844_s22, 3 }
  0x14   : > { %s2220_s13 = scalar_lea.vmem %s2823_s0, %s1710_s10  ;;  %s1712_s19 = sshll.u32 %s2848_s7, 1  ;;  %vm809_vm6 = vcmask 130112   ;;  %vm970_vm7 = vcmask 195712   ;;  %vm1132_vm8 = vcmask 261312   ;;  %vm1197_vm9 = vcmask 294144  }
  0x15   : > { %v1771_v2 = vld [vmem:[%s2220_s13] sm:$0xff]   ;;  %v1810_v3 = vld [vmem:[%s2220_s13 + $0x8] sm:$0xff]   ;;  %v1811_v4 = vld [vmem:[%s2220_s13 + $0x10] sm:$0xff]   ;;  %s2245_s20 = sadd.s32 %s1713_s16, %s1712_s19  ;;  %vm1234_vm10 = vcmask 293888   ;;  %vm1424_vm11 = vcmask 27648   ;;  %p350_p10 = scmp.lt.s32.totalorder %s2090_s21, 1 }
  0x16   : > { %v1772_v5 = vunpack.c.l.bf16 %v1771_v2  ;;  %v1773_v6 = vunpack.c.h.bf16 %v1771_v2  ;;  %v1776_v7 = vunpack.c.l.bf16 %v1810_v3  ;;  %v1777_v8 = vunpack.c.h.bf16 %v1810_v3  ;;  %v1812_v9 = vld [vmem:[%s2220_s13 + $0x18] sm:$0xff]   ;;  %v1813_v31 = vld [vmem:[%s2220_s13 + $0x20] sm:$0xff]   ;;  %v1814_v32 = vld [vmem:[%s2220_s13 + $0x28] sm:$0xff]   ;;  %s1714_s28 = sshll.u32 %s2245_s20, 2  ;;  %s1719_s9 = sshll.u32 %s2844_s22, 1 }
  0x17   : > { %v1780_v11 = vunpack.c.l.bf16 %v1811_v4  ;;  %v1781_v12 = vunpack.c.h.bf16 %v1811_v4  ;;  %v1784_v13 = vunpack.c.l.bf16 %v1812_v9  ;;  %v1785_v14 = vunpack.c.h.bf16 %v1812_v9  ;;  %v1815_v33 = vld [vmem:[%s2220_s13 + $0x30] sm:$0xff]   ;;  %v1816_v38 = vld [vmem:[%s2220_s13 + $0x38] sm:$0xff]   ;;  %s335_s7 = scalar_lea.vmem %s2824_s1, %s1714_s28  ;;  %s2110_s13 = smov 32  }
  0x18   : > { %v406_v15 = vmul.f32 %v1772_v5, %v2225_v1  ;;  %v407_v16 = vmul.f32 %v1773_v6, %v2225_v1  ;;  %v408_v17 = vmul.f32 %v1776_v7, %v2225_v1  ;;  %v409_v18 = vmul.f32 %v1777_v8, %v2225_v1  ;;  %s2282_s8 = scalar_select %p472_p8, 1, 0  ;;  %v1817_v63 = vld [vmem:[%s335_s7 + $0x8] sm:$0xff]   ;;  %v1803_v9 = vld [vmem:[%s335_s7] sm:$0xff]  }
  0x19   : > { %v410_v19 = vmul.f32 %v1780_v11, %v2225_v1  ;;  %v411_v20 = vmul.f32 %v1781_v12, %v2225_v1  ;;  %v412_v21 = vmul.f32 %v1784_v13, %v2225_v1  ;;  %v413_v22 = vmul.f32 %v1785_v14, %v2225_v1  ;;  %s2308_s11 = scalar_select %p460_p9, 1, 0 }
  0x1a   : > { %v428_v23 = vadd.f32 %v2235_v10, %v406_v15  ;;  %v429_v24 = vadd.f32 %v2235_v10, %v407_v16  ;;  %v430_v25 = vadd.f32 %v2235_v10, %v408_v17  ;;  %v431_v26 = vadd.f32 %v2235_v10, %v409_v18  ;;  %s2112_s28 = smov 16   ;;  %s2850_s21 = smov (!%p350_p10, %s2090_s21), 1 }
  0x1b   : > { %v432_v27 = vadd.f32 %v2235_v10, %v410_v19  ;;  %v433_v28 = vadd.f32 %v2235_v10, %v411_v20  ;;  %v434_v29 = vadd.f32 %v2235_v10, %v412_v21  ;;  %v435_v30 = vadd.f32 %v2235_v10, %v413_v22 }
  0x1c   : > { %v444_v34 = vmax.f32 %v428_v23, 0.0  ;;  %v445_v35 = vmax.f32 %v429_v24, 0.0  ;;  %v446_v36 = vmax.f32 %v430_v25, 0.0  ;;  %v447_v37 = vmax.f32 %v431_v26, 0.0 }
  0x1d   : > { %v448_v39 = vmax.f32 %v432_v27, 0.0  ;;  %v449_v40 = vmax.f32 %v433_v28, 0.0  ;;  %v450_v41 = vmax.f32 %v434_v29, 0.0  ;;  %v451_v42 = vmax.f32 %v435_v30, 0.0 }
  0x1e   : > { %509 = vst.msk [vmem:[#allocation2 + $0x19] sm:$0xff] %vm505_vm1, %v444_v34  ;;  %510 = vst.msk [vmem:[#allocation2 + $0x21] sm:$0xff] %vm505_vm1, %v445_v35  ;;  %v1788_v43 = vunpack.c.l.bf16 %v1813_v31  ;;  %v1789_v44 = vunpack.c.h.bf16 %v1813_v31  ;;  %v1792_v45 = vunpack.c.l.bf16 %v1814_v32  ;;  %v1793_v46 = vunpack.c.h.bf16 %v1814_v32 }
  0x1f   : > { %511 = vst.msk [vmem:[#allocation2 + $0x31] sm:$0xff] %vm505_vm1, %v446_v36  ;;  %512 = vst.msk [vmem:[#allocation2 + $0x39] sm:$0xff] %vm505_vm1, %v447_v37  ;;  %v1796_v47 = vunpack.c.l.bf16 %v1815_v33  ;;  %v1797_v48 = vunpack.c.h.bf16 %v1815_v33  ;;  %v1800_v49 = vunpack.c.l.bf16 %v1816_v38  ;;  %v1801_v50 = vunpack.c.h.bf16 %v1816_v38 }
  0x20   : > { %513 = vst.msk [vmem:[#allocation2 + $0x49] sm:$0xff] %vm505_vm1, %v448_v39  ;;  %514 = vst.msk [vmem:[#allocation2 + $0x51] sm:$0xff] %vm505_vm1, %v449_v40  ;;  %v414_v51 = vmul.f32 %v1788_v43, %v2225_v1  ;;  %v415_v52 = vmul.f32 %v1789_v44, %v2225_v1  ;;  %v416_v53 = vmul.f32 %v1792_v45, %v2225_v1  ;;  %v1808_v17 = vunpack.c.l.bf16 %v1817_v63 }
  0x21   : > { %515 = vst.msk [vmem:[#allocation2 + $0x61] sm:$0xff] %vm505_vm1, %v450_v41  ;;  %516 = vst.msk [vmem:[#allocation2 + $0x69] sm:$0xff] %vm505_vm1, %v451_v42  ;;  %v417_v54 = vmul.f32 %v1793_v46, %v2225_v1  ;;  %v418_v55 = vmul.f32 %v1796_v47, %v2225_v1  ;;  %v419_v56 = vmul.f32 %v1797_v48, %v2225_v1  ;;  %v1809_v23 = vunpack.c.h.bf16 %v1817_v63 }
  0x22   : > { %v420_v57 = vmul.f32 %v1800_v49, %v2225_v1  ;;  %v421_v58 = vmul.f32 %v1801_v50, %v2225_v1  ;;  %v436_v59 = vadd.f32 %v2235_v10, %v414_v51  ;;  %v437_v60 = vadd.f32 %v2235_v10, %v415_v52 }
  0x23   : > { %v438_v61 = vadd.f32 %v2235_v10, %v416_v53  ;;  %v439_v62 = vadd.f32 %v2235_v10, %v417_v54  ;;  %v440_v0 = vadd.f32 %v2235_v10, %v418_v55  ;;  %v441_v2 = vadd.f32 %v2235_v10, %v419_v56 }
  0x24   : > { %v442_v3 = vadd.f32 %v2235_v10, %v420_v57  ;;  %v443_v4 = vadd.f32 %v2235_v10, %v421_v58  ;;  %v452_v5 = vmax.f32 %v436_v59, 0.0  ;;  %v453_v6 = vmax.f32 %v437_v60, 0.0 }
  0x25   : > { %v454_v7 = vmax.f32 %v438_v61, 0.0  ;;  %v455_v8 = vmax.f32 %v439_v62, 0.0  ;;  %v673_v11 = vld [vmem:[#allocation2 + $0x18] sm:$0xff]  ;;  %v674_v12 = vld [vmem:[#allocation2 + $0x20] sm:$0xff]  ;;  %v456_v14 = vmax.f32 %v440_v0, 0.0  ;;  %v457_v15 = vmax.f32 %v441_v2, 0.0 }
  0x26   : > { %v2293_v13 = vld [vmem:[#allocation2 + $0x1a] sm:$0xff]  ;;  %v458_v16 = vmax.f32 %v442_v3, 0.0  ;;  %v1905_v18 = vpack.i.bf16 %v674_v12, %v673_v11  ;;  %v2295_v19 = vld [vmem:[#allocation2 + $0x22] sm:$0xff]  ;;  %v2297_v20 = vld [vmem:[#allocation2 + $0x30] sm:$0xff]  ;;  %517 = vst.msk [vmem:[#allocation2 + $0x79] sm:$0xff] %vm505_vm1, %v452_v5  ;;  %v459_v22 = vmax.f32 %v443_v4, 0.0  ;;  %v480_v24 = vstv %s2282_s8  ;;  %s2736_s8 = scalar_lea.vmem %s2828_s5, %s1710_s10  ;;  %s353_s10 = sadd.s32 %s1719_s9, %s2850_s21 }
  0x27   : > { %v2299_v21 = vld [vmem:[#allocation2 + $0x38] sm:$0xff]  ;;  %518 = vst.msk [vmem:[#allocation2 + $0x81] sm:$0xff] %vm505_vm1, %v453_v6  ;;  %519 = vst.msk [vmem:[#allocation2 + $0x91] sm:$0xff] %vm505_vm1, %v454_v7  ;;  %v1915_v25 = vpack.i.bf16 %v2295_v19, %v2293_v13  ;;  %v473_v28 = vmul.f32 %v1808_v17, %v2225_v1  ;;  %v474_v30 = vmul.f32 %v1809_v23, %v2225_v1  ;;  %v1804_v31 = vunpack.c.l.bf16 %v1803_v9  ;;  %v2337_v38 = vld [vmem:[#allocation2 + $0x49] sm:$0xff] }
  0x28   : > { %520 = vst.msk [vmem:[#allocation2 + $0x99] sm:$0xff] %vm505_vm1, %v455_v8  ;;  %v2312_v26 = vld [vmem:[#allocation2 + $0x32] sm:$0xff]  ;;  %v2314_v27 = vld [vmem:[#allocation2 + $0x3a] sm:$0xff]  ;;  %521 = vst.msk [vmem:[#allocation2 + $0xa9] sm:$0xff] %vm505_vm1, %v456_v14  ;;  %1906 = vrot.lane.b32.xlu0 %v1905_v18, %s2109_s12  ;;  %v1910_v29 = vpack.i.bf16 %v2299_v21, %v2297_v20  ;;  %v1805_v32 = vunpack.c.h.bf16 %v1803_v9  ;;  %vm2333_vm2 = vcmp.eq.s32.totalorder %v480_v24, 1  ;;  %v468_v43 = vstv %s2308_s11  ;;  %s1720_s11 = sshll.u32 %s353_s10, 1 }
  0x29   : > { %522 = vst.msk [vmem:[#allocation2 + $0xb1] sm:$0xff] %vm505_vm1, %v457_v15  ;;  %523 = vst.msk [vmem:[#allocation2 + $0xc1] sm:$0xff] %vm505_vm1, %v458_v16  ;;  %1916 = vrot.lane.b32.xlu1 %v1915_v25, %s2109_s12  ;;  %v1920_v33 = vpack.i.bf16 %v2314_v27, %v2312_v26  ;;  %v2328_v34 = vld [vmem:[#allocation2 + $0x31] sm:$0xff]  ;;  %v2330_v35 = vld [vmem:[#allocation2 + $0x39] sm:$0xff]  ;;  %v475_v36 = vadd.f32 %v2235_v10, %v473_v28  ;;  %v476_v40 = vadd.f32 %v2235_v10, %v474_v30  ;;  %vm1531_vm12 = vcmask 1040384   ;;  %s355_s14 = scalar_lea.vmem %s2829_s6, %s1720_s11 }
  0x2a   : > { %524 = vst.msk [vmem:[#allocation2 + $0xc9] sm:$0xff] %vm505_vm1, %v459_v22  ;;  %v2339_v39 = vld [vmem:[#allocation2 + $0x51] sm:$0xff]  ;;  %v461_v41 = vmul.f32 %v1804_v31, %v2225_v1  ;;  %v462_v42 = vmul.f32 %v1805_v32, %v2225_v1  ;;  %v2348_v45 = vpack.i.bf16 %v2330_v35, %v2328_v34  ;;  %v2357_v1 = vld [vmem:[#allocation2 + $0x48] sm:$0xff]  ;;  %vm469_vm3 = vcmp.eq.s32.totalorder %v468_v43, 1  ;;  %v2363_v52 = vld [vmem:[#allocation2 + $0x60] sm:$0xff] }
  0x2b   : > { %v477_v44 = vmax.f32 %v475_v36, 0.0  ;;  %v478_v46 = vmax.f32 %v476_v40, 0.0  ;;  %v2355_v49 = vpack.i.bf16 %v2339_v39, %v2337_v38  ;;  %v2359_v50 = vld [vmem:[#allocation2 + $0x50] sm:$0xff]  ;;  %v2365_v53 = vld [vmem:[#allocation2 + $0x68] sm:$0xff]  ;;  %vm1533_vm13 = vcmask 25600  }
  0x2c   : > { %1911 = vrot.lane.b32.xlu0 %v1910_v29, %s2109_s12  ;;  %v463_v47 = vadd.f32 %v2235_v10, %v461_v41  ;;  %v464_v48 = vadd.f32 %v2235_v10, %v462_v42  ;;  %v1935_v56 = vpack.i.bf16 %v2359_v50, %v2357_v1  ;;  %v1940_v59 = vpack.i.bf16 %v2365_v53, %v2363_v52  ;;  %v2379_v60 = vld [vmem:[#allocation2 + $0x4a] sm:$0xff]  ;;  %v2381_v61 = vld [vmem:[#allocation2 + $0x52] sm:$0xff]  ;;  %v2385_v62 = vld [vmem:[#allocation2 + $0x62] sm:$0xff] }
  0x2d   : > { %1921 = vrot.lane.b32.xlu1 %v1920_v33, %s2109_s12  ;;  %v482_v51 = vsel %vm2333_vm2, 0.0, %v477_v44  ;;  %v483_v10 = vsel %vm2333_vm2, 0.0, %v478_v46  ;;  %v2387_v63 = vld [vmem:[#allocation2 + $0x6a] sm:$0xff]  ;;  %v1945_v0 = vpack.i.bf16 %v2381_v61, %v2379_v60  ;;  %v2395_v3 = vld [vmem:[#allocation2 + $0x61] sm:$0xff]  ;;  %v2399_v5 = vld [vmem:[#allocation2 + $0x79] sm:$0xff] }
  0x2e   : > { %526 = vst.msk [vmem:[#allocation2 + $0xd9] sm:$0xff] %vm505_vm1, %v482_v51  ;;  %v465_v54 = vmax.f32 %v463_v47, 0.0  ;;  %v466_v55 = vmax.f32 %v464_v48, 0.0  ;;  %527 = vst.msk [vmem:[#allocation2 + $0xe1] sm:$0xff] %vm505_vm1, %v483_v10  ;;  %v1950_v2 = vpack.i.bf16 %v2387_v63, %v2385_v62  ;;  %v2397_v4 = vld [vmem:[#allocation2 + $0x69] sm:$0xff]  ;;  %v2401_v6 = vld [vmem:[#allocation2 + $0x81] sm:$0xff] }
  0x2f   : > { %v2406_v7 = vpack.i.bf16 %v2397_v4, %v2395_v3  ;;  %v2411_v8 = vpack.i.bf16 %v2401_v6, %v2399_v5  ;;  %v2413_v9 = vld [vmem:[#allocation2 + $0x78] sm:$0xff]  ;;  %v2415_v11 = vld [vmem:[#allocation2 + $0x80] sm:$0xff]  ;;  %v2417_v12 = vld [vmem:[#allocation2 + $0x90] sm:$0xff] }
  0x30   : > { %1926 = vrot.lane.b32.xlu0 %v2348_v45, %s2109_s12  ;;  %v470_v57 = vsel %vm469_vm3, 0.0, %v465_v54  ;;  %v471_v58 = vsel %vm469_vm3, 0.0, %v466_v55  ;;  %v2419_v14 = vld [vmem:[#allocation2 + $0x98] sm:$0xff]  ;;  %v1965_v15 = vpack.i.bf16 %v2415_v11, %v2413_v9  ;;  %v2431_v18 = vld [vmem:[#allocation2 + $0x82] sm:$0xff]  ;;  %v2459_v37 = vld [vmem:[#allocation2 + $0xb0] sm:$0xff] }
  0x31   : > { %1931 = vrot.lane.b32.xlu1 %v2355_v49, %s2109_s12  ;;  %506 = vst.msk [vmem:[#allocation2 + $0x1] sm:$0xff] %vm505_vm1, %v470_v57  ;;  %507 = vst.msk [vmem:[#allocation2 + $0x9] sm:$0xff] %vm505_vm1, %v471_v58  ;;  %v1970_v16 = vpack.i.bf16 %v2419_v14, %v2417_v12  ;;  %v2429_v17 = vld [vmem:[#allocation2 + $0x7a] sm:$0xff]  ;;  %v2433_v22 = vld [vmem:[#allocation2 + $0x92] sm:$0xff] }
  0x32   : > { %v2435_v23 = vld [vmem:[#allocation2 + $0x9a] sm:$0xff]  ;;  %v1975_v24 = vpack.i.bf16 %v2431_v18, %v2429_v17  ;;  %v2443_v28 = vld [vmem:[#allocation2 + $0x91] sm:$0xff]  ;;  %v2447_v30 = vld [vmem:[#allocation2 + $0xa9] sm:$0xff] }
  0x33   : > { %v1980_v25 = vpack.i.bf16 %v2435_v23, %v2433_v22  ;;  %v2445_v29 = vld [vmem:[#allocation2 + $0x99] sm:$0xff]  ;;  %v2449_v31 = vld [vmem:[#allocation2 + $0xb1] sm:$0xff]  ;;  %v2457_v36 = vld [vmem:[#allocation2 + $0xa8] sm:$0xff] }
  0x34   : > { %1936 = vrot.lane.b32.xlu0 %v1935_v56, %s2109_s12  ;;  %v1985_v32 = vpack.i.bf16 %v2445_v29, %v2443_v28  ;;  %v1990_v33 = vpack.i.bf16 %v2449_v31, %v2447_v30  ;;  %v2461_v40 = vld [vmem:[#allocation2 + $0xc0] sm:$0xff]  ;;  %v2463_v41 = vld [vmem:[#allocation2 + $0xc8] sm:$0xff]  ;;  %v1995_v42 = vpack.i.bf16 %v2459_v37, %v2457_v36  ;;  %v2473_v46 = vld [vmem:[#allocation2 + $0xb2] sm:$0xff] }
  0x35   : > { %1941 = vrot.lane.b32.xlu1 %v1940_v59, %s2109_s12  ;;  %v2000_v43 = vpack.i.bf16 %v2463_v41, %v2461_v40  ;;  %v2471_v44 = vld [vmem:[#allocation2 + $0xaa] sm:$0xff]  ;;  %v2475_v47 = vld [vmem:[#allocation2 + $0xc2] sm:$0xff]  ;;  %v1010_v56 = vld [vmem:[#allocation2 + $0xd9] sm:$0xff] }
  0x36   : > { %v2477_v48 = vld [vmem:[#allocation2 + $0xca] sm:$0xff]  ;;  %v2005_v51 = vpack.i.bf16 %v2473_v46, %v2471_v44  ;;  %v2485_v54 = vld [vmem:[#allocation2 + $0xc1] sm:$0xff] }
  0x37   : > { %v2010_v10 = vpack.i.bf16 %v2477_v48, %v2475_v47  ;;  %v2487_v55 = vld [vmem:[#allocation2 + $0xc9] sm:$0xff]  ;;  %v1011_v57 = vld [vmem:[#allocation2 + $0xe1] sm:$0xff]  ;;  %v1163_v59 = vpack.c.bf16 %v2477_v48, %v2475_v47 }
  0x38   : > { %1946 = vrot.lane.b32.xlu0 %v1945_v0, %s2109_s12  ;;  %v2015_v58 = vpack.i.bf16 %v2487_v55, %v2485_v54  ;;  %v2020_v0 = vpack.i.bf16 %v1011_v57, %v1010_v56  ;;  %v1160_v56 = vpack.c.bf16 %v2431_v18, %v2429_v17  ;;  %v657_v57 = vld [vmem:[#allocation2 + $0x2] sm:$0xff] }
  0x39   : > { %1951 = vrot.lane.b32.xlu1 %v1950_v2, %s2109_s12  ;;  %v544_v2 = vld [vmem:[#allocation2 + $0x1] sm:$0xff] }
  0x3c   : > { %1956 = vrot.lane.b32.xlu0 %v2406_v7, %s2109_s12 }
  0x3d   : > { %1961 = vrot.lane.b32.xlu1 %v2411_v8, %s2109_s12 }
  0x40   : > { %1966 = vrot.lane.b32.xlu0 %v1965_v15, %s2109_s12  ;;  %v545_v15 = vld [vmem:[#allocation2 + $0x9] sm:$0xff] }
  0x41   : > { %1971 = vrot.lane.b32.xlu1 %v1970_v16, %s2109_s12  ;;  %v546_v16 = vld [vmem:[#allocation2 + $0x19] sm:$0xff] }
  0x44   : > { %1976 = vrot.lane.b32.xlu0 %v1975_v24, %s2109_s12  ;;  %v547_v24 = vld [vmem:[#allocation2 + $0x21] sm:$0xff] }
  0x45   : > { %1981 = vrot.lane.b32.xlu1 %v1980_v25, %s2109_s12  ;;  %v2025_v25 = vpack.i.bf16 %v545_v15, %v544_v2 }
  0x48   : > { %1986 = vrot.lane.b32.xlu0 %v1985_v32, %s2109_s12 }
  0x49   : > { %1991 = vrot.lane.b32.xlu1 %v1990_v33, %s2109_s12 }
  0x4c   : > { %1996 = vrot.lane.b32.xlu0 %v1995_v42, %s2109_s12  ;;  %v2030_v42 = vpack.i.bf16 %v547_v24, %v546_v16 }
  0x4d   : > { %2001 = vrot.lane.b32.xlu1 %v2000_v43, %s2109_s12  ;;  %v1157_v43 = vpack.c.bf16 %v2314_v27, %v2312_v26 }
  0x50   : > { %2006 = vrot.lane.b32.xlu0 %v2005_v51, %s2109_s12  ;;  %v1158_v51 = vpack.c.bf16 %v2381_v61, %v2379_v60 }
  0x51   : > { %2011 = vrot.lane.b32.xlu1 %v2010_v10, %s2109_s12  ;;  %v1159_v10 = vpack.c.bf16 %v2387_v63, %v2385_v62 }
  0x54   : > { %2016 = vrot.lane.b32.xlu0 %v2015_v58, %s2109_s12  ;;  %v658_v58 = vld [vmem:[#allocation2 + $0xa] sm:$0xff] }
  0x55   : > { %2021 = vrot.lane.b32.xlu1 %v2020_v0, %s2109_s12  ;;  %v2065_v0 = vld [vmem:[%s2825_s2] sm:$0xff]  }
  0x56   : > { %1829 = vmatprep.subr.bf16.mxu0 %v2065_v0  ;;  %1851 = vmatprep.subr.bf16.mxu1 %v2065_v0 }
  0x57   : > { %1830 = vmatpush3.bf16.msra.mxu0 %v2065_v0  ;;  %1854 = vmatpush3.bf16.msra.mxu1 %v2065_v0 }
  0x58   : > { %2026 = vrot.lane.b32.xlu0 %v2025_v25, %s2109_s12 }
  0x59   : > { %2031 = vrot.lane.b32.xlu1 %v2030_v42, %s2109_s12 }
  0x5c   : > { %1173 = vrot.lane.b32.xlu0 %v1157_v43, %s2110_s13 }
  0x5d   : > { %2036 = vrot.lane.b32.xlu1 %v2348_v45, %s2109_s12  ;;  %v1161_v45 = vpack.c.bf16 %v2435_v23, %v2433_v22 }
  0x60   : > { %1175 = vrot.lane.b32.xlu0 %v1158_v51, %s2110_s13 }
  0x61   : > { %2041 = vrot.lane.b32.xlu1 %v2355_v49, %s2109_s12  ;;  %v1162_v49 = vpack.c.bf16 %v2473_v46, %v2471_v44 }
  0x64   : > { %1177 = vrot.lane.b32.xlu0 %v1159_v10, %s2110_s13 }
  0x65   : > { %2046 = vrot.lane.b32.xlu1 %v2406_v7, %s2109_s12 }
  0x68   : > { %1179 = vrot.lane.b32.xlu0 %v1160_v56, %s2110_s13 }
  0x69   : > { %2051 = vrot.lane.b32.xlu1 %v2411_v8, %s2109_s12 }
  0x6c   : > { %1181 = vrot.lane.b32.xlu0 %v1161_v45, %s2110_s13  ;;  %v2066_v45 = vld [vmem:[%s2825_s2 + $0x8] sm:$0xff]  }
  0x6d   : > { %2056 = vrot.lane.b32.xlu1 %v1985_v32, %s2109_s12  ;;  %1831 = vmatprep.subr.bf16.mxu0 %v2066_v45 }
  0x6e   : > { %1832 = vmatpush3.bf16.msra.mxu0 %v2066_v45  ;;  %1852 = vmatprep.subr.bf16.mxu1 %v2066_v45 }
  0x6f   : > { %1855 = vmatpush3.bf16.msra.mxu1 %v2066_v45 }
  0x70   : > { %1183 = vrot.lane.b32.xlu0 %v1162_v49, %s2110_s13 }
  0x71   : > { %2061 = vrot.lane.b32.xlu1 %v1990_v33, %s2109_s12 }
  0x9a   : > { %v1907_v7 = vpop.permute.xlu0 %1906 }
  0x9b   : > { %v1909_v2 = vunpack.i.h.bf16 %v1907_v7  ;;  %v1908_v8 = vunpack.i.l.bf16 %v1907_v7  ;;  %v1917_v15 = vpop.permute.xlu1 %1916 }
  0x9c   : > { %v1919_v25 = vunpack.i.h.bf16 %v1917_v15  ;;  %v1918_v42 = vunpack.i.l.bf16 %v1917_v15 }
  0x9d   : > { %v753_v32 = vsel %vm505_vm1, %v657_v57, %v1908_v8  ;;  %v754_v43 = vsel %vm505_vm1, %v658_v58, %v1909_v2 }
  0x9e   : > { %v1912_v33 = vpop.permute.xlu0 %1911  ;;  %v769_v51 = vpack.c.bf16 %v754_v43, %v753_v32  ;;  %v914_v10 = vsel %vm505_vm1, %v546_v16, %v1918_v42  ;;  %v915_v56 = vsel %vm505_vm1, %v547_v24, %v1919_v25  ;;  %v2067_v32 = vld [vmem:[%s2825_s2 + $0x10] ss:$0 sps:$4 sm:$0x33]  }
  0x9f   : > { %v1914_v49 = vunpack.i.h.bf16 %v1912_v33  ;;  %v1913_v7 = vunpack.i.l.bf16 %v1912_v33  ;;  %v1922_v15 = vpop.permute.xlu1 %1921  ;;  %v930_v2 = vpack.c.bf16 %v915_v56, %v914_v10  ;;  %v1261_v10 = vsel %vm1259_vm4, %v2067_v32, 0  ;;  %1857 = vmatprep.subr.msk.bf16.mxu0 %vm1259_vm4, %v2067_v32  ;;  %1858 = vmatprep.subr.msk.bf16.mxu1 %vm1259_vm4, %v2067_v32 }
  0xa0   : > { %785 = vrot.lane.b32.xlu0 %v769_v51, %s2111_s18  ;;  %v1924_v57 = vunpack.i.h.bf16 %v1922_v15  ;;  %v1923_v58 = vunpack.i.l.bf16 %v1922_v15  ;;  %1834 = vmatpush3.bf16.msra.mxu0 %v1261_v10 }
  0xa1   : > { %v755_v0 = vsel %vm505_vm1, %v2293_v13, %v1913_v7  ;;  %v756_v16 = vsel %vm505_vm1, %v2295_v19, %v1914_v49  ;;  %1856 = vmatpush3.bf16.msra.mxu1 %v1261_v10 }
  0xa2   : > { %v1927_v24 = vpop.permute.xlu0 %1926  ;;  %v770_v8 = vpack.c.bf16 %v756_v16, %v755_v0  ;;  %v916_v25 = vsel %vm505_vm1, %v2328_v34, %v1923_v58  ;;  %v917_v42 = vsel %vm505_vm1, %v2330_v35, %v1924_v57 }
  0xa3   : > { %v1929_v43 = vunpack.i.h.bf16 %v1927_v24  ;;  %v1928_v13 = vunpack.i.l.bf16 %v1927_v24  ;;  %v1932_v33 = vpop.permute.xlu1 %1931  ;;  %v931_v34 = vpack.c.bf16 %v917_v42, %v916_v25 }
  0xa4   : > { %946 = vrot.lane.b32.xlu0 %v930_v2, %s2112_s28  ;;  %787 = vrot.lane.b32.xlu1 %v770_v8, %s2111_s18  ;;  %v1934_v19 = vunpack.i.h.bf16 %v1932_v33  ;;  %v1933_v51 = vunpack.i.l.bf16 %v1932_v33 }
  0xa5   : > { %v1076_v35 = vsel %vm505_vm1, %v2297_v20, %v1928_v13  ;;  %v1077_v56 = vsel %vm505_vm1, %v2299_v21, %v1929_v43 }
  0xa6   : > { %v1937_v45 = vpop.permute.xlu0 %1936  ;;  %v1092_v49 = vpack.c.bf16 %v1077_v56, %v1076_v35  ;;  %v1078_v7 = vsel %vm505_vm1, %v2357_v1, %v1933_v51  ;;  %v1079_v15 = vsel %vm505_vm1, %v2359_v50, %v1934_v19 }
  0xa7   : > { %v1939_v57 = vunpack.i.h.bf16 %v1937_v45  ;;  %v1938_v58 = vunpack.i.l.bf16 %v1937_v45  ;;  %v1942_v2 = vpop.permute.xlu1 %1941  ;;  %v1093_v24 = vpack.c.bf16 %v1079_v15, %v1078_v7 }
  0xa8   : > { %1108 = vrot.lane.b32.xlu0 %v1092_v49, %s2113_s29  ;;  %948 = vrot.lane.b32.xlu1 %v931_v34, %s2112_s28  ;;  %v1944_v0 = vunpack.i.h.bf16 %v1942_v2  ;;  %v1943_v16 = vunpack.i.l.bf16 %v1942_v2 }
  0xa9   : > { %v757_v8 = vsel %vm505_vm1, %v2312_v26, %v1938_v58  ;;  %v758_v25 = vsel %vm505_vm1, %v2314_v27, %v1939_v57 }
  0xaa   : > { %v1947_v42 = vpop.permute.xlu0 %1946  ;;  %v771_v32 = vpack.c.bf16 %v758_v25, %v757_v8  ;;  %v759_v43 = vsel %vm505_vm1, %v2379_v60, %v1943_v16  ;;  %v760_v13 = vsel %vm505_vm1, %v2381_v61, %v1944_v0 }
  0xab   : > { %v1949_v33 = vunpack.i.h.bf16 %v1947_v42  ;;  %v1948_v19 = vunpack.i.l.bf16 %v1947_v42  ;;  %v1952_v51 = vpop.permute.xlu1 %1951  ;;  %v772_v10 = vpack.c.bf16 %v760_v13, %v759_v43 }
  0xac   : > { %789 = vrot.lane.b32.xlu0 %v771_v32, %s2111_s18  ;;  %1110 = vrot.lane.b32.xlu1 %v1093_v24, %s2113_s29  ;;  %v1954_v34 = vunpack.i.h.bf16 %v1952_v51  ;;  %v1953_v26 = vunpack.i.l.bf16 %v1952_v51 }
  0xad   : > { %v918_v27 = vsel %vm505_vm1, %v2337_v38, %v1948_v19  ;;  %v919_v35 = vsel %vm505_vm1, %v2339_v39, %v1949_v33 }
  0xae   : > { %v1957_v60 = vpop.permute.xlu0 %1956  ;;  %v932_v56 = vpack.c.bf16 %v919_v35, %v918_v27  ;;  %v920_v61 = vsel %vm505_vm1, %v2395_v3, %v1953_v26  ;;  %v921_v45 = vsel %vm505_vm1, %v2397_v4, %v1954_v34 }
  0xaf   : > { %v1959_v49 = vunpack.i.h.bf16 %v1957_v60  ;;  %v1958_v7 = vunpack.i.l.bf16 %v1957_v60  ;;  %v1962_v15 = vpop.permute.xlu1 %1961  ;;  %v933_v58 = vpack.c.bf16 %v921_v45, %v920_v61 }
  0xb0   : > { %950 = vrot.lane.b32.xlu0 %v932_v56, %s2112_s28  ;;  %791 = vrot.lane.b32.xlu1 %v772_v10, %s2111_s18  ;;  %v1964_v57 = vunpack.i.h.bf16 %v1962_v15  ;;  %v1963_v38 = vunpack.i.l.bf16 %v1962_v15 }
  0xb1   : > { %v1080_v39 = vsel %vm505_vm1, %v2363_v52, %v1958_v7  ;;  %v1081_v2 = vsel %vm505_vm1, %v2365_v53, %v1959_v49 }
  0xb2   : > { %v1967_v3 = vpop.permute.xlu0 %1966  ;;  %v1094_v0 = vpack.c.bf16 %v1081_v2, %v1080_v39  ;;  %v1082_v4 = vsel %vm505_vm1, %v2413_v9, %v1963_v38  ;;  %v1083_v16 = vsel %vm505_vm1, %v2415_v11, %v1964_v57 }
  0xb3   : > { %v1969_v24 = vunpack.i.h.bf16 %v1967_v3  ;;  %v1968_v8 = vunpack.i.l.bf16 %v1967_v3  ;;  %v1972_v25 = vpop.permute.xlu1 %1971  ;;  %v1095_v43 = vpack.c.bf16 %v1083_v16, %v1082_v4 }
  0xb4   : > { %1112 = vrot.lane.b32.xlu0 %v1094_v0, %s2113_s29  ;;  %952 = vrot.lane.b32.xlu1 %v933_v58, %s2112_s28  ;;  %v1974_v42 = vunpack.i.h.bf16 %v1972_v25  ;;  %v1973_v32 = vunpack.i.l.bf16 %v1972_v25 }
  0xb5   : > { %v761_v13 = vsel %vm505_vm1, %v2385_v62, %v1968_v8  ;;  %v762_v33 = vsel %vm505_vm1, %v2387_v63, %v1969_v24 }
  0xb6   : > { %v1977_v19 = vpop.permute.xlu0 %1976  ;;  %v773_v51 = vpack.c.bf16 %v762_v33, %v761_v13  ;;  %v763_v34 = vsel %vm505_vm1, %v2429_v17, %v1973_v32  ;;  %v764_v26 = vsel %vm505_vm1, %v2431_v18, %v1974_v42 }
  0xb7   : > { %v1979_v10 = vunpack.i.h.bf16 %v1977_v19  ;;  %v1978_v27 = vunpack.i.l.bf16 %v1977_v19  ;;  %v1982_v35 = vpop.permute.xlu1 %1981  ;;  %v774_v56 = vpack.c.bf16 %v764_v26, %v763_v34 }
  0xb8   : > { %793 = vrot.lane.b32.xlu0 %v773_v51, %s2111_s18  ;;  %1114 = vrot.lane.b32.xlu1 %v1095_v43, %s2113_s29  ;;  %v1984_v60 = vunpack.i.h.bf16 %v1982_v35  ;;  %v1983_v62 = vunpack.i.l.bf16 %v1982_v35 }
  0xb9   : > { %v922_v63 = vsel %vm505_vm1, %v2399_v5, %v1978_v27  ;;  %v923_v61 = vsel %vm505_vm1, %v2401_v6, %v1979_v10 }
  0xba   : > { %v1987_v17 = vpop.permute.xlu0 %1986  ;;  %v934_v45 = vpack.c.bf16 %v923_v61, %v922_v63  ;;  %v924_v18 = vsel %vm505_vm1, %v2443_v28, %v1983_v62  ;;  %v925_v49 = vsel %vm505_vm1, %v2445_v29, %v1984_v60 }
  0xbb   : > { %v1989_v7 = vunpack.i.h.bf16 %v1987_v17  ;;  %v1988_v15 = vunpack.i.l.bf16 %v1987_v17  ;;  %v1992_v57 = vpop.permute.xlu1 %1991  ;;  %v935_v58 = vpack.c.bf16 %v925_v49, %v924_v18  ;;  %v994_v17 = vld [vmem:[#allocation2 + $0xd8] sm:$0xff] }
  0xbc   : > { %954 = vrot.lane.b32.xlu0 %v934_v45, %s2112_s28  ;;  %795 = vrot.lane.b32.xlu1 %v774_v56, %s2111_s18  ;;  %v1994_v38 = vunpack.i.h.bf16 %v1992_v57  ;;  %v1993_v5 = vunpack.i.l.bf16 %v1992_v57  ;;  %v995_v45 = vld [vmem:[#allocation2 + $0xe0] sm:$0xff] }
  0xbd   : > { %v1084_v6 = vsel %vm505_vm1, %v2417_v12, %v1988_v15  ;;  %v1085_v39 = vsel %vm505_vm1, %v2419_v14, %v1989_v7  ;;  %v528_v57 = vld [vmem:[#allocation2] sm:$0xff] }
  0xbe   : > { %v1096_v28 = vpack.c.bf16 %v1085_v39, %v1084_v6  ;;  %v1997_v2 = vpop.permute.xlu0 %1996  ;;  %v1086_v29 = vsel %vm505_vm1, %v2457_v36, %v1993_v5  ;;  %v1087_v3 = vsel %vm505_vm1, %v2459_v37, %v1994_v38  ;;  %v529_v38 = vld [vmem:[#allocation2 + $0x8] sm:$0xff] }
  0xbf   : > { %v1999_v0 = vunpack.i.h.bf16 %v1997_v2  ;;  %v1998_v4 = vunpack.i.l.bf16 %v1997_v2  ;;  %v2002_v16 = vpop.permute.xlu1 %2001  ;;  %v1097_v25 = vpack.c.bf16 %v1087_v3, %v1086_v29  ;;  %v531_v2 = vld [vmem:[#allocation2 + $0x20] sm:$0xff] }
  0xc0   : > { %1116 = vrot.lane.b32.xlu0 %v1096_v28, %s2113_s29  ;;  %956 = vrot.lane.b32.xlu1 %v935_v58, %s2112_s28  ;;  %v2004_v24 = vunpack.i.h.bf16 %v2002_v16  ;;  %v2003_v8 = vunpack.i.l.bf16 %v2002_v16  ;;  %v530_v28 = vld [vmem:[#allocation2 + $0x18] sm:$0xff] }
  0xc1   : > { %v765_v42 = vsel %vm505_vm1, %v2433_v22, %v1998_v4  ;;  %v766_v32 = vsel %vm505_vm1, %v2435_v23, %v1999_v0  ;;  %v1155_v3 = vld [vmem:[#allocation2 + $0xda] sm:$0xff]  ;;  %v1156_v0 = vld [vmem:[#allocation2 + $0xe2] sm:$0xff] }
  0xc2   : > { %v2007_v43 = vpop.permute.xlu0 %2006  ;;  %v775_v13 = vpack.c.bf16 %v766_v32, %v765_v42  ;;  %v767_v33 = vsel %vm505_vm1, %v2471_v44, %v2003_v8  ;;  %v768_v19 = vsel %vm505_vm1, %v2473_v46, %v2004_v24 }
  0xc3   : > { %v2009_v51 = vunpack.i.h.bf16 %v2007_v43  ;;  %v2008_v34 = vunpack.i.l.bf16 %v2007_v43  ;;  %v2012_v26 = vpop.permute.xlu1 %2011  ;;  %v776_v22 = vpack.c.bf16 %v768_v19, %v767_v33  ;;  %v1164_v43 = vpack.c.bf16 %v1156_v0, %v1155_v3 }
  0xc4   : > { %1118 = vrot.lane.b32.xlu1 %v1097_v25, %s2113_s29  ;;  %v2014_v10 = vunpack.i.h.bf16 %v2012_v26  ;;  %v2013_v27 = vunpack.i.l.bf16 %v2012_v26  ;;  %797 = vrot.lane.b32.xlu0 %v775_v13, %s2111_s18 }
  0xc5   : > { %v926_v23 = vsel %vm505_vm1, %v2447_v30, %v2008_v34  ;;  %v927_v35 = vsel %vm505_vm1, %v2449_v31, %v2009_v51 }
  0xc6   : > { %v2017_v44 = vpop.permute.xlu0 %2016  ;;  %v936_v60 = vpack.c.bf16 %v927_v35, %v926_v23  ;;  %v928_v46 = vsel %vm505_vm1, %v2485_v54, %v2013_v27  ;;  %v929_v62 = vsel %vm505_vm1, %v2487_v55, %v2014_v10 }
  0xc7   : > { %v2019_v56 = vunpack.i.h.bf16 %v2017_v44  ;;  %v2018_v63 = vunpack.i.l.bf16 %v2017_v44  ;;  %v2022_v61 = vpop.permute.xlu1 %2021  ;;  %v937_v31 = vpack.c.bf16 %v929_v62, %v928_v46 }
  0xc8   : > { %799 = vrot.lane.b32.xlu1 %v776_v22, %s2111_s18  ;;  %v2024_v18 = vunpack.i.h.bf16 %v2022_v61  ;;  %v2023_v30 = vunpack.i.l.bf16 %v2022_v61  ;;  %958 = vrot.lane.b32.xlu0 %v936_v60, %s2112_s28 }
  0xc9   : > { %v1088_v49 = vsel %vm505_vm1, %v2461_v40, %v2018_v63  ;;  %v1089_v54 = vsel %vm505_vm1, %v2463_v41, %v2019_v56 }
  0xca   : > { %v1098_v7 = vpack.c.bf16 %v1089_v54, %v1088_v49  ;;  %v1090_v55 = vsel %vm505_vm1, %v994_v17, %v2023_v30  ;;  %v1091_v15 = vsel %vm505_vm1, %v995_v45, %v2024_v18  ;;  %v2027_v5 = vpop.permute.xlu0 %2026 }
  0xcb   : > { %v2029_v58 = vunpack.i.h.bf16 %v2027_v5  ;;  %v2028_v6 = vunpack.i.l.bf16 %v2027_v5  ;;  %v2032_v39 = vpop.permute.xlu1 %2031  ;;  %v1099_v40 = vpack.c.bf16 %v1091_v15, %v1090_v55 }
  0xcc   : > { %960 = vrot.lane.b32.xlu1 %v937_v31, %s2112_s28  ;;  %1120 = vrot.lane.b32.xlu0 %v1098_v7, %s2113_s29  ;;  %v2034_v29 = vunpack.i.h.bf16 %v2032_v39  ;;  %v2033_v41 = vunpack.i.l.bf16 %v2032_v39 }
  0xcd   : > { %v625_v4 = vsel %vm505_vm1, %v529_v38, %v2029_v58  ;;  %v624_v16 = vsel %vm505_vm1, %v528_v57, %v2028_v6 }
  0xce   : > { %v626_v24 = vsel %vm505_vm1, %v530_v28, %v2033_v41  ;;  %v627_v8 = vsel %vm505_vm1, %v531_v2, %v2034_v29  ;;  %v640_v25 = vpack.c.bf16 %v625_v4, %v624_v16  ;;  %v1174_v54 = vpop.permute.xlu0 %1173 }
  0xcf   : > { %v2037_v42 = vpop.permute.xlu1 %2036  ;;  %v641_v32 = vpack.c.bf16 %v627_v8, %v626_v24 }
  0xd0   : > { %1122 = vrot.lane.b32.xlu1 %v1099_v40, %s2113_s29  ;;  %1185 = vrot.lane.b32.xlu0 %v1163_v59, %s2110_s13  ;;  %v2039_v13 = vunpack.i.h.bf16 %v2037_v42  ;;  %v2038_v33 = vunpack.i.l.bf16 %v2037_v42  ;;  %649 = vst.msk [vmem:[#allocation3] sm:$0xff] %vm648_vm5, %v640_v25 }
  0xd1   : > { %650 = vst.msk [vmem:[#allocation3 + $0x8] sm:$0xff] %vm648_vm5, %v641_v32 }
  0xd2   : > { %v629_v19 = vsel %vm505_vm1, %v2299_v21, %v2039_v13  ;;  %v628_v51 = vsel %vm505_vm1, %v2297_v20, %v2038_v33 }
  0xd3   : > { %v2042_v34 = vpop.permute.xlu1 %2041  ;;  %v642_v26 = vpack.c.bf16 %v629_v19, %v628_v51 }
  0xd4   : > { %1187 = vrot.lane.b32.xlu1 %v1164_v43, %s2110_s13  ;;  %v2044_v10 = vunpack.i.h.bf16 %v2042_v34  ;;  %v2043_v47 = vunpack.i.l.bf16 %v2042_v34 }
  0xd5   : > { %651 = vst.msk [vmem:[#allocation3 + $0x10] sm:$0xff] %vm648_vm5, %v642_v26 }
  0xd6   : > { %v631_v48 = vsel %vm505_vm1, %v2359_v50, %v2044_v10  ;;  %v630_v59 = vsel %vm505_vm1, %v2357_v1, %v2043_v47 }
  0xd7   : > { %v2047_v27 = vpop.permute.xlu1 %2046  ;;  %v643_v22 = vpack.c.bf16 %v631_v48, %v630_v59 }
  0xd8   : > { %v2049_v21 = vunpack.i.h.bf16 %v2047_v27  ;;  %v2048_v23 = vunpack.i.l.bf16 %v2047_v27 }
  0xd9   : > { %652 = vst.msk [vmem:[#allocation3 + $0x18] sm:$0xff] %vm648_vm5, %v643_v22 }
  0xda   : > { %v633_v20 = vsel %vm505_vm1, %v2365_v53, %v2049_v21  ;;  %v632_v35 = vsel %vm505_vm1, %v2363_v52, %v2048_v23 }
  0xdb   : > { %v2052_v44 = vpop.permute.xlu1 %2051  ;;  %v644_v60 = vpack.c.bf16 %v633_v20, %v632_v35 }
  0xdc   : > { %v2054_v46 = vunpack.i.h.bf16 %v2052_v44  ;;  %v2053_v62 = vunpack.i.l.bf16 %v2052_v44 }
  0xdd   : > { %653 = vst.msk [vmem:[#allocation3 + $0x20] sm:$0xff] %vm648_vm5, %v644_v60 }
  0xde   : > { %v635_v1 = vsel %vm505_vm1, %v2415_v11, %v2054_v46  ;;  %v634_v50 = vsel %vm505_vm1, %v2413_v9, %v2053_v62 }
  0xdf   : > { %v2057_v56 = vpop.permute.xlu1 %2056  ;;  %v645_v63 = vpack.c.bf16 %v635_v1, %v634_v50 }
  0xe0   : > { %v2059_v61 = vunpack.i.h.bf16 %v2057_v56  ;;  %v2058_v17 = vunpack.i.l.bf16 %v2057_v56 }
  0xe1   : > { %654 = vst.msk [vmem:[#allocation3 + $0x28] sm:$0xff] %vm648_vm5, %v645_v63 }
  0xe2   : > { %v637_v52 = vsel %vm505_vm1, %v2419_v14, %v2059_v61  ;;  %v636_v53 = vsel %vm505_vm1, %v2417_v12, %v2058_v17  ;;  %v1176_v14 = vpop.permute.xlu0 %1175 }
  0xe3   : > { %v2062_v45 = vpop.permute.xlu1 %2061  ;;  %v646_v18 = vpack.c.bf16 %v637_v52, %v636_v53 }
  0xe4   : > { %v2064_v30 = vunpack.i.h.bf16 %v2062_v45  ;;  %v2063_v31 = vunpack.i.l.bf16 %v2062_v45 }
  0xe5   : > { %655 = vst.msk [vmem:[#allocation3 + $0x30] sm:$0xff] %vm648_vm5, %v646_v18 }
  0xe6   : > { %v639_v9 = vsel %vm505_vm1, %v2459_v37, %v2064_v30  ;;  %v638_v11 = vsel %vm505_vm1, %v2457_v36, %v2063_v31  ;;  %v1178_v7 = vpop.permute.xlu0 %1177 }
  0xe7   : > { %v647_v49 = vpack.c.bf16 %v639_v9, %v638_v11 }
  0xe9   : > { %656 = vst.msk [vmem:[#allocation3 + $0x38] sm:$0xff] %vm648_vm5, %v647_v49 }
  0xea   : > { %v1180_v55 = vpop.permute.xlu0 %1179 }
  0xee   : > { %v1182_v12 = vpop.permute.xlu0 %1181 }
  0xf2   : > { %v1184_v15 = vpop.permute.xlu0 %1183 }
 0x112   : > { %v786_v57 = vpop.permute.xlu0 %785 }
 0x113   : > { %810 = vst.msk [vmem:[#allocation3] sm:$0xff] %vm809_vm6, %v786_v57 }
 0x116   : > { %v947_v38 = vpop.permute.xlu0 %946  ;;  %v788_v5 = vpop.permute.xlu1 %787 }
 0x117   : > { %971 = vst.msk [vmem:[#allocation3] sm:$0xff] %vm970_vm7, %v947_v38 }
 0x118   : > { %811 = vst.msk [vmem:[#allocation3 + $0x8] sm:$0xff] %vm809_vm6, %v788_v5 }
 0x11a   : > { %v1109_v36 = vpop.permute.xlu0 %1108  ;;  %v949_v37 = vpop.permute.xlu1 %948 }
 0x11b   : > { %1133 = vst.msk [vmem:[#allocation3] sm:$0xff] %vm1132_vm8, %v1109_v36 }
 0x11c   : > { %972 = vst.msk [vmem:[#allocation3 + $0x8] sm:$0xff] %vm970_vm7, %v949_v37 }
 0x11d   : > { %1198 = vst.msk [vmem:[#allocation3] sm:$0xff] %vm1197_vm9, %v1174_v54 }
 0x11e   : > { %v790_v58 = vpop.permute.xlu0 %789  ;;  %v1111_v6 = vpop.permute.xlu1 %1110 }
 0x11f   : > { %812 = vst.msk [vmem:[#allocation3 + $0x10] sm:$0xff] %vm809_vm6, %v790_v58 }
 0x120   : > { %1134 = vst.msk [vmem:[#allocation3 + $0x8] sm:$0xff] %vm1132_vm8, %v1111_v6 }
 0x121   : > { %1199 = vst.msk [vmem:[#allocation3 + $0x8] sm:$0xff] %vm1197_vm9, %v1176_v14 }
 0x122   : > { %v951_v39 = vpop.permute.xlu0 %950  ;;  %v792_v28 = vpop.permute.xlu1 %791 }
 0x123   : > { %973 = vst.msk [vmem:[#allocation3 + $0x10] sm:$0xff] %vm970_vm7, %v951_v39 }
 0x124   : > { %813 = vst.msk [vmem:[#allocation3 + $0x18] sm:$0xff] %vm809_vm6, %v792_v28  ;;  %v1206_v2 = vld [vmem:[#allocation3] sm:$0xff] }
 0x125   : > { %1835 = vmatprep.mubr.msk.bf16.mxu0 %vm1234_vm10, %v1206_v2 }
 0x126   : > { %v1113_v40 = vpop.permute.xlu0 %1112  ;;  %v953_v29 = vpop.permute.xlu1 %952 }
 0x127   : > { %1135 = vst.msk [vmem:[#allocation3 + $0x10] sm:$0xff] %vm1132_vm8, %v1113_v40 }
 0x128   : > { %974 = vst.msk [vmem:[#allocation3 + $0x18] sm:$0xff] %vm970_vm7, %v953_v29  ;;  %v1207_v41 = vld [vmem:[#allocation3 + $0x8] sm:$0xff] }
 0x129   : > { %1200 = vst.msk [vmem:[#allocation3 + $0x10] sm:$0xff] %vm1197_vm9, %v1178_v7  ;;  %1836 = vmatmul.mubr.msk.bf16.vlgmr.msra.gmra.mrb[0].mxu0 %vm1234_vm10, %v1207_v41 }
 0x12a   : > { %v794_v3 = vpop.permute.xlu0 %793  ;;  %v1115_v0 = vpop.permute.xlu1 %1114 }
 0x12b   : > { %814 = vst.msk [vmem:[#allocation3 + $0x20] sm:$0xff] %vm809_vm6, %v794_v3 }
 0x12c   : > { %1136 = vst.msk [vmem:[#allocation3 + $0x18] sm:$0xff] %vm1132_vm8, %v1115_v0 }
 0x12d   : > { %1201 = vst.msk [vmem:[#allocation3 + $0x18] sm:$0xff] %vm1197_vm9, %v1180_v55 }
 0x12e   : > { %v955_v4 = vpop.permute.xlu0 %954  ;;  %v796_v16 = vpop.permute.xlu1 %795 }
 0x12f   : > { %975 = vst.msk [vmem:[#allocation3 + $0x20] sm:$0xff] %vm970_vm7, %v955_v4 }
 0x130   : > { %815 = vst.msk [vmem:[#allocation3 + $0x28] sm:$0xff] %vm809_vm6, %v796_v16  ;;  %v1208_v24 = vld [vmem:[#allocation3 + $0x10] sm:$0xff] }
 0x131   : > { %1839 = vmatprep.mubr.msk.bf16.mxu0 %vm1234_vm10, %v1208_v24 }
 0x132   : > { %v1117_v8 = vpop.permute.xlu0 %1116  ;;  %v957_v25 = vpop.permute.xlu1 %956 }
 0x133   : > { %1137 = vst.msk [vmem:[#allocation3 + $0x20] sm:$0xff] %vm1132_vm8, %v1117_v8 }
 0x134   : > { %976 = vst.msk [vmem:[#allocation3 + $0x28] sm:$0xff] %vm970_vm7, %v957_v25  ;;  %v1209_v42 = vld [vmem:[#allocation3 + $0x18] sm:$0xff] }
 0x135   : > { %1202 = vst.msk [vmem:[#allocation3 + $0x20] sm:$0xff] %vm1197_vm9, %v1182_v12  ;;  %1840 = vmatmul.mubr.msk.bf16.gmra.mrb[4].mxu0 %vm1234_vm10, %v1209_v42 }
 0x136   : > { %v1119_v32 = vpop.permute.xlu1 %1118  ;;  %v798_v43 = vpop.permute.xlu0 %797 }
 0x137   : > { %1138 = vst.msk [vmem:[#allocation3 + $0x28] sm:$0xff] %vm1132_vm8, %v1119_v32 }
 0x138   : > { %816 = vst.msk [vmem:[#allocation3 + $0x30] sm:$0xff] %vm809_vm6, %v798_v43 }
 0x139   : > { %1203 = vst.msk [vmem:[#allocation3 + $0x28] sm:$0xff] %vm1197_vm9, %v1184_v15 }
 0x13a   : > { %v800_v13 = vpop.permute.xlu1 %799  ;;  %v959_v33 = vpop.permute.xlu0 %958 }
 0x13b   : > { %817 = vst.msk [vmem:[#allocation3 + $0x38] sm:$0xff] %vm809_vm6, %v800_v13 }
 0x13c   : > { %v1210_v19 = vld [vmem:[#allocation3 + $0x20] sm:$0xff]  ;;  %977 = vst.msk [vmem:[#allocation3 + $0x30] sm:$0xff] %vm970_vm7, %v959_v33 }
 0x13d   : > { %1843 = vmatprep.mubr.msk.bf16.mxu1 %vm1234_vm10, %v1210_v19 }
 0x13e   : > { %v961_v51 = vpop.permute.xlu1 %960  ;;  %v1121_v34 = vpop.permute.xlu0 %1120 }
 0x13f   : > { %978 = vst.msk [vmem:[#allocation3 + $0x38] sm:$0xff] %vm970_vm7, %v961_v51 }
 0x140   : > { %v1211_v26 = vld [vmem:[#allocation3 + $0x28] sm:$0xff]  ;;  %1139 = vst.msk [vmem:[#allocation3 + $0x30] sm:$0xff] %vm1132_vm8, %v1121_v34 }
 0x141   : > { %1844 = vmatmul.mubr.msk.bf16.vlgmr.msra.gmra.mrb[0].mxu1 %vm1234_vm10, %v1211_v26 }
 0x142   : > { %v1123_v10 = vpop.permute.xlu1 %1122  ;;  %v1186_v47 = vpop.permute.xlu0 %1185 }
 0x143   : > { %1140 = vst.msk [vmem:[#allocation3 + $0x38] sm:$0xff] %vm1132_vm8, %v1123_v10 }
 0x144   : > { %1204 = vst.msk [vmem:[#allocation3 + $0x30] sm:$0xff] %vm1197_vm9, %v1186_v47 }
 0x146   : > { %v1188_v48 = vpop.permute.xlu1 %1187 }
 0x147   : > { %1205 = vst.msk [vmem:[#allocation3 + $0x38] sm:$0xff] %vm1197_vm9, %v1188_v48 }
 0x14b   : > { %v1212_v59 = vld [vmem:[#allocation3 + $0x30] sm:$0xff] }
 0x14c   : > { %1847 = vmatprep.mubr.msk.bf16.mxu1 %vm1234_vm10, %v1212_v59 }
 0x14e   : > { %v1213_v27 = vld [vmem:[#allocation3 + $0x38] sm:$0xff] }
 0x14f   : > { %1848 = vmatmul.mubr.msk.bf16.gmra.mrb[4].mxu1 %vm1234_vm10, %v1213_v27 }
 0x1fc   : > { %v1837_v22 = vpop.f32.mrb[0].mxu0 }
 0x1fd   : > { %v1756_v21 = vpack.c.bf16 %v1837_v22, %v1837_v22  ;;  %v1297_v23 = vpop.f32.mrb[1].mxu0  ;;  %v1480_v60 = vmul.f32 %v1837_v22, %v1837_v22  ;;  %v1444_v17 = vsel %vm505_vm1, %v1837_v22, 0.0 }
 0x1fe   : > { %v1754_v20 = vpack.c.bf16 %v1297_v23, %v1297_v23  ;;  %v1478_v35 = vmul.f32 %v1297_v23, %v1297_v23  ;;  %v1838_v44 = vpop.f32.mrb[2].mxu0  ;;  %v1441_v1 = vsel %vm505_vm1, %v1297_v23, 0.0 }
 0x1ff   : > { %1427 = vst.msk [vmem:[%s2736_s8 + $0x8] sm:$0xf] %vm1424_vm11, %v1756_v21  ;;  %v1757_v46 = vpack.c.bf16 %v1838_v44, %v1838_v44  ;;  %v1300_v62 = vpop.f32.mrb[3].mxu0  ;;  %v1481_v53 = vmul.f32 %v1838_v44, %v1838_v44  ;;  %v1497_v31 = vsel %vm505_vm1, %v1480_v60, 0.0  ;;  %v1446_v9 = vsel %vm505_vm1, %v1838_v44, 0.0 }
 0x200   : > { %1425 = vst.msk [vmem:[%s2736_s8] sm:$0xf] %vm1424_vm11, %v1754_v20  ;;  %v1755_v50 = vpack.c.bf16 %v1300_v62, %v1300_v62  ;;  %v1442_v56 = vsel %vm505_vm1, %v1300_v62, 0.0  ;;  %v1479_v63 = vmul.f32 %v1300_v62, %v1300_v62  ;;  %v1494_v52 = vsel %vm505_vm1, %v1478_v35, 0.0 }
 0x201   : > { %1428 = vst.msk [vmem:[%s2736_s8 + $0xc] sm:$0xf] %vm1424_vm11, %v1757_v46  ;;  %v1443_v61 = vadd.f32 %v1442_v56, %v1441_v1  ;;  %v1499_v54 = vsel %vm505_vm1, %v1481_v53, 0.0 }
 0x202   : > { %1426 = vst.msk [vmem:[%s2736_s8 + $0x4] sm:$0xf] %vm1424_vm11, %v1755_v50  ;;  %v1495_v45 = vsel %vm505_vm1, %v1479_v63, 0.0 }
 0x203   : > { %v1445_v18 = vadd.f32 %v1444_v17, %v1443_v61  ;;  %v1496_v30 = vadd.f32 %v1495_v45, %v1494_v52 }
 0x205   : > { %v1498_v11 = vadd.f32 %v1497_v31, %v1496_v30  ;;  %v1447_v49 = vadd.f32 %v1446_v9, %v1445_v18 }
 0x207   : > { %v1500_v14 = vadd.f32 %v1499_v54, %v1498_v11 }
 0x208   : > { %v1841_v7 = vpop.f32.mrb[4].mxu0 }
 0x209   : > { %v1760_v55 = vpack.c.bf16 %v1841_v7, %v1841_v7  ;;  %v1313_v12 = vpop.f32.mrb[5].mxu0  ;;  %v1484_v2 = vmul.f32 %v1841_v7, %v1841_v7  ;;  %v1452_v3 = vsel %vm505_vm1, %v1841_v7, 0.0 }
 0x20a   : > { %v1758_v15 = vpack.c.bf16 %v1313_v12, %v1313_v12  ;;  %v1448_v57 = vsel %vm505_vm1, %v1313_v12, 0.0  ;;  %v1482_v38 = vmul.f32 %v1313_v12, %v1313_v12  ;;  %v1842_v5 = vpop.f32.mrb[6].mxu0 }
 0x20b   : > { %1431 = vst.msk [vmem:[%s2736_s8 + $0x18] sm:$0xf] %vm1424_vm11, %v1760_v55  ;;  %v1449_v36 = vadd.f32 %v1448_v57, %v1447_v49  ;;  %v1761_v37 = vpack.c.bf16 %v1842_v5, %v1842_v5  ;;  %v1316_v58 = vpop.f32.mrb[7].mxu0  ;;  %v1485_v0 = vmul.f32 %v1842_v5, %v1842_v5  ;;  %v1454_v24 = vsel %vm505_vm1, %v1842_v5, 0.0 }
 0x20c   : > { %1429 = vst.msk [vmem:[%s2736_s8 + $0x10] sm:$0xf] %vm1424_vm11, %v1758_v15  ;;  %v1501_v6 = vsel %vm505_vm1, %v1482_v38, 0.0  ;;  %v1759_v39 = vpack.c.bf16 %v1316_v58, %v1316_v58  ;;  %v1450_v28 = vsel %vm505_vm1, %v1316_v58, 0.0  ;;  %v1483_v41 = vmul.f32 %v1316_v58, %v1316_v58 }
 0x20d   : > { %v1502_v40 = vadd.f32 %v1501_v6, %v1500_v14  ;;  %1432 = vst.msk [vmem:[%s2736_s8 + $0x1c] sm:$0xf] %vm1424_vm11, %v1761_v37  ;;  %v1451_v29 = vadd.f32 %v1450_v28, %v1449_v36  ;;  %v1505_v25 = vsel %vm505_vm1, %v1484_v2, 0.0  ;;  %v1507_v43 = vsel %vm505_vm1, %v1485_v0, 0.0 }
 0x20e   : > { %1430 = vst.msk [vmem:[%s2736_s8 + $0x14] sm:$0xf] %vm1424_vm11, %v1759_v39  ;;  %v1503_v16 = vsel %vm505_vm1, %v1483_v41, 0.0 }
 0x20f   : > { %v1453_v4 = vadd.f32 %v1452_v3, %v1451_v29  ;;  %v1504_v8 = vadd.f32 %v1503_v16, %v1502_v40 }
 0x211   : > { %v1455_v42 = vadd.f32 %v1454_v24, %v1453_v4  ;;  %v1506_v32 = vadd.f32 %v1505_v25, %v1504_v8 }
 0x213   : > { %v1508_v33 = vadd.f32 %v1507_v43, %v1506_v32 }
 0x214   : > { %v1845_v13 = vpop.f32.mrb[0].mxu1 }
 0x215   : > { %v1764_v19 = vpack.c.bf16 %v1845_v13, %v1845_v13  ;;  %v1329_v51 = vpop.f32.mrb[1].mxu1  ;;  %v1488_v20 = vmul.f32 %v1845_v13, %v1845_v13  ;;  %v1460_v46 = vsel %vm505_vm1, %v1845_v13, 0.0 }
 0x216   : > { %v1762_v34 = vpack.c.bf16 %v1329_v51, %v1329_v51  ;;  %v1456_v26 = vsel %vm505_vm1, %v1329_v51, 0.0  ;;  %v1486_v10 = vmul.f32 %v1329_v51, %v1329_v51  ;;  %v1846_v47 = vpop.f32.mrb[2].mxu1 }
 0x217   : > { %1435 = vst.msk [vmem:[%s2736_s8 + $0x28] sm:$0xf] %vm1424_vm11, %v1764_v19  ;;  %v1457_v48 = vadd.f32 %v1456_v26, %v1455_v42  ;;  %v1765_v59 = vpack.c.bf16 %v1846_v47, %v1846_v47  ;;  %v1332_v27 = vpop.f32.mrb[3].mxu1  ;;  %v1489_v62 = vmul.f32 %v1846_v47, %v1846_v47  ;;  %v1462_v56 = vsel %vm505_vm1, %v1846_v47, 0.0 }
 0x218   : > { %1433 = vst.msk [vmem:[%s2736_s8 + $0x20] sm:$0xf] %vm1424_vm11, %v1762_v34  ;;  %v1509_v22 = vsel %vm505_vm1, %v1486_v10, 0.0  ;;  %v1763_v21 = vpack.c.bf16 %v1332_v27, %v1332_v27  ;;  %v1458_v23 = vsel %vm505_vm1, %v1332_v27, 0.0  ;;  %v1487_v60 = vmul.f32 %v1332_v27, %v1332_v27 }
 0x219   : > { %v1510_v35 = vadd.f32 %v1509_v22, %v1508_v33  ;;  %1436 = vst.msk [vmem:[%s2736_s8 + $0x2c] sm:$0xf] %vm1424_vm11, %v1765_v59  ;;  %v1459_v44 = vadd.f32 %v1458_v23, %v1457_v48  ;;  %v1513_v61 = vsel %vm505_vm1, %v1488_v20, 0.0  ;;  %v1515_v53 = vsel %vm505_vm1, %v1489_v62, 0.0 }
 0x21a   : > { %1434 = vst.msk [vmem:[%s2736_s8 + $0x24] sm:$0xf] %vm1424_vm11, %v1763_v21  ;;  %v1511_v50 = vsel %vm505_vm1, %v1487_v60, 0.0 }
 0x21b   : > { %v1461_v1 = vadd.f32 %v1460_v46, %v1459_v44  ;;  %v1512_v63 = vadd.f32 %v1511_v50, %v1510_v35 }
 0x21d   : > { %v1463_v17 = vadd.f32 %v1462_v56, %v1461_v1  ;;  %v1514_v52 = vadd.f32 %v1513_v61, %v1512_v63 }
 0x21f   : > { %v1516_v45 = vadd.f32 %v1515_v53, %v1514_v52 }
 0x222   : > { %v1849_v18 = vpop.f32.mrb[4].mxu1 }
 0x223   : > { %v1768_v30 = vpack.c.bf16 %v1849_v18, %v1849_v18  ;;  %v1345_v31 = vpop.f32.mrb[5].mxu1  ;;  %v1492_v38 = vmul.f32 %v1849_v18, %v1849_v18  ;;  %v1468_v58 = vsel %vm505_vm1, %v1849_v18, 0.0 }
 0x224   : > { %v1766_v9 = vpack.c.bf16 %v1345_v31, %v1345_v31  ;;  %v1464_v11 = vsel %vm505_vm1, %v1345_v31, 0.0  ;;  %v1490_v49 = vmul.f32 %v1345_v31, %v1345_v31  ;;  %v1850_v54 = vpop.f32.mrb[6].mxu1 }
 0x225   : > { %1439 = vst.msk [vmem:[%s2736_s8 + $0x38] sm:$0xf] %vm1424_vm11, %v1768_v30  ;;  %v1465_v14 = vadd.f32 %v1464_v11, %v1463_v17  ;;  %v1769_v7 = vpack.c.bf16 %v1850_v54, %v1850_v54  ;;  %v1348_v55 = vpop.f32.mrb[7].mxu1  ;;  %v1493_v6 = vmul.f32 %v1850_v54, %v1850_v54  ;;  %v1470_v2 = vsel %vm505_vm1, %v1850_v54, 0.0 }
 0x226   : > { %1437 = vst.msk [vmem:[%s2736_s8 + $0x30] sm:$0xf] %vm1424_vm11, %v1766_v9  ;;  %v1517_v12 = vsel %vm505_vm1, %v1490_v49, 0.0  ;;  %v1767_v15 = vpack.c.bf16 %v1348_v55, %v1348_v55  ;;  %v1466_v57 = vsel %vm505_vm1, %v1348_v55, 0.0  ;;  %v1491_v37 = vmul.f32 %v1348_v55, %v1348_v55 }
 0x227   : > { %v1518_v5 = vadd.f32 %v1517_v12, %v1516_v45  ;;  %1440 = vst.msk [vmem:[%s2736_s8 + $0x3c] sm:$0xf] %vm1424_vm11, %v1769_v7  ;;  %v1467_v36 = vadd.f32 %v1466_v57, %v1465_v14  ;;  %v1521_v29 = vsel %vm505_vm1, %v1492_v38, 0.0  ;;  %v1523_v0 = vsel %vm505_vm1, %v1493_v6, 0.0 }
 0x228   : > { %1438 = vst.msk [vmem:[%s2736_s8 + $0x34] sm:$0xf] %vm1424_vm11, %v1767_v15  ;;  %v1519_v28 = vsel %vm505_vm1, %v1491_v37, 0.0 }
 0x229   : > { %v1469_v39 = vadd.f32 %v1468_v58, %v1467_v36  ;;  %v1520_v40 = vadd.f32 %v1519_v28, %v1518_v5 }
 0x22b   : > { %v1471_v41 = vadd.f32 %v1470_v2, %v1469_v39  ;;  %v1522_v3 = vadd.f32 %v1521_v29, %v1520_v40 }
 0x22d   : > { %v1472_v4 = vrot.slane %v1471_v41, 4  ;;  %v1524_v16 = vadd.f32 %v1523_v0, %v1522_v3 }
 0x22f   : > { %v1473_v24 = vadd.f32 %v1472_v4, %v1471_v41  ;;  %v1525_v8 = vrot.slane %v1524_v16, 4 }
 0x231   : > { %v1474_v25 = vrot.slane %v1473_v24, 2  ;;  %v1526_v42 = vadd.f32 %v1525_v8, %v1524_v16 }
 0x233   : > { %v1475_v32 = vadd.f32 %v1474_v25, %v1473_v24  ;;  %v1527_v43 = vrot.slane %v1526_v42, 2 }
 0x235   : > { %v1476_v13 = vrot.slane %v1475_v32, 1  ;;  %v1528_v33 = vadd.f32 %v1527_v43, %v1526_v42 }
 0x237   : > { %v1529_v19 = vrot.slane %v1528_v33, 1  ;;  %v1477_v51 = vadd.f32 %v1476_v13, %v1475_v32 }
 0x239   : > { %v1530_v34 = vadd.f32 %v1529_v19, %v1528_v33 }
 0x23b   : > { %v1532_v26 = vsel %vm1531_vm12, %v1477_v51, %v1530_v34 }
 0x23c   : > { %1534 = vst.msk [vmem:[%s355_s14] sm:$0x3] %vm1533_vm13, %v1532_v26 }
 0x23d PF: > { %s17_s25 = sadd.s32 1, %s2106_s25   ;;  %s2833_s21 = smov %s2098_s23 }
 0x23e   : > { %p14_p11 = scmp.ge.s32.totalorder %s17_s25, 6   ;;  %s2834_s22 = smov %s2102_s24 }
 0x23f   : > { %s2835_s23 = smov %s2838_s26  ;;  %s2836_s24 = smov %s2842_s27 }
 0x240   :  { %16 = sbr.rel (!%p14_p11) target bundleno = 3 (0x3), region = 89 }

</bundles_post_ra>
